<compile_context>
chip_gen: v5e
topology: v5e:2x2
jax: 0.10.0
libtpu: 0.0.40
codegen_flags: <defaults>
</compile_context>

<pallas_src>
import numpy as np

import jax
import jax.numpy as jnp
from jax import lax
from jax.experimental import pallas as pl
from jax.experimental.pallas import tpu as pltpu


# ----------------------------------------------------------------------------
# Kernels
# ----------------------------------------------------------------------------
def _conv_pool_relu_kernel(xe_ref, xo_ref, w_ref, b_ref, o_ref):
    """Fused valid KxK conv + bias + 2x2 max-pool + ReLU for one image.

    xe_ref / xo_ref: even / odd input rows, each [H//2, W*Cin]      (VMEM)
    w_ref: banded weights [2, K, W*Cin, Qo*Cout]; w_ref[dj, kh] maps a full
           (kh-shifted) input row to the conv outputs at columns wo = 2*j + dj
           (W pool phase dj) for all output channels.
    b_ref: [1, Qo*Cout]   bias tiled over pooled output columns
    o_ref: [Po, Qo*Cout]  pooled output (rows = pooled H, lanes = (w, c))
    """
    K = w_ref.shape[1]
    Po, QoC = o_ref.shape
    xrefs = (xe_ref, xo_ref)

    def conv_rows(di):
        # conv output rows ho = 2*i + di (H pool phase di), both W pool phases.
        acc0 = jnp.zeros((Po, QoC), jnp.float32)
        acc1 = jnp.zeros((Po, QoC), jnp.float32)
        for kh in range(K):
            s = di + kh                                   # absolute input-row offset
            xs = xrefs[s % 2][pl.ds(s // 2, Po), :]       # [Po, W*Cin], contiguous slice
            acc0 = acc0 + jnp.dot(xs, w_ref[0, kh], preferred_element_type=jnp.float32)
            acc1 = acc1 + jnp.dot(xs, w_ref[1, kh], preferred_element_type=jnp.float32)
        return jnp.maximum(acc0, acc1)                    # max over W pool phase

    m = jnp.maximum(conv_rows(0), conv_rows(1))           # max over H pool phase
    m = m + b_ref[...]                                    # max(x) + b == max(x + b)
    o_ref[...] = jnp.maximum(m, 0.0)                      # ReLU (monotone, commutes w/ max)


def _head_kernel(x_ref, w1_ref, b1_ref, w2_ref, b2_ref, o_ref):
    # fc1 + ReLU; the [B, 50] intermediate lives only in VMEM/vregs.
    h = jnp.dot(x_ref[...], w1_ref[...], preferred_element_type=jnp.float32)
    h = jnp.maximum(h + b1_ref[...], 0.0)
    # TODO(synk): F.dropout / Dropout2d are identities in eval mode; training-mode RNG masks not implemented.
    z = jnp.dot(h, w2_ref[...], preferred_element_type=jnp.float32) + b2_ref[...]
    zmax = jnp.max(z, axis=1, keepdims=True)
    s = z - zmax
    lse = jnp.log(jnp.sum(jnp.exp(s), axis=1, keepdims=True))
    o_ref[...] = (s - lse).astype(o_ref.dtype)


# ----------------------------------------------------------------------------
# pallas_call wrappers
# ----------------------------------------------------------------------------
def conv_pool_relu(x, bw, bias_row):
    """x: [B, H, W*Cin] activation (channels packed into the lane dimension)."""
    B, H, WC = x.shape
    two, K, WC2, QoC = bw.shape
    assert two == 2 and WC2 == WC
    Po = (H - K + 1) // 2
    xe, xo = x[:, 0::2, :], x[:, 1::2, :]   # complementary halves: 1x total read traffic
    return pl.pallas_call(
        _conv_pool_relu_kernel,
        out_shape=jax.ShapeDtypeStruct((B, Po, QoC), jnp.float32),
        grid=(B,),
        in_specs=[
            pl.BlockSpec((None, H // 2, WC), lambda b: (b, 0, 0)),
            pl.BlockSpec((None, H // 2, WC), lambda b: (b, 0, 0)),
            pl.BlockSpec((2, K, WC, QoC), lambda b: (0, 0, 0, 0)),   # weights resident across grid
            pl.BlockSpec((1, QoC), lambda b: (0, 0)),
        ],
        out_specs=pl.BlockSpec((None, Po, QoC), lambda b: (b, 0, 0)),
        compiler_params=pltpu.CompilerParams(dimension_semantics=("parallel",)),
    )(xe, xo, bw, bias_row)


def mlp_head(flat, w1, b1, w2, b2):
    B, F = flat.shape
    N1, N2 = w1.shape[1], w2.shape[1]
    return pl.pallas_call(
        _head_kernel,
        out_shape=jax.ShapeDtypeStruct((B, N2), jnp.float32),
        grid=(1,),
        in_specs=[pl.BlockSpec((B, F), lambda i: (0, 0)),
                  pl.BlockSpec((F, N1), lambda i: (0, 0)),
                  pl.BlockSpec((1, N1), lambda i: (0, 0)),
                  pl.BlockSpec((N1, N2), lambda i: (0, 0)),
                  pl.BlockSpec((1, N2), lambda i: (0, 0))],
        out_specs=pl.BlockSpec((B, N2), lambda i: (0, 0)),
    )(flat, w1, b1, w2, b2)


# ----------------------------------------------------------------------------
# Parameters (deterministic, shapes from Net.__init__) + one-time preprocessing
# ----------------------------------------------------------------------------
def init_params(key):
    ks = jax.random.split(key, 8)
    scale = 0.1
    return {
        "conv1_w": scale * jax.random.normal(ks[0], (10, 1, 5, 5), jnp.float32),
        "conv1_b": scale * jax.random.normal(ks[1], (10,), jnp.float32),
        "conv2_w": scale * jax.random.normal(ks[2], (20, 10, 5, 5), jnp.float32),
        "conv2_b": scale * jax.random.normal(ks[3], (20,), jnp.float32),
        "fc1_w": scale * jax.random.normal(ks[4], (50, 500), jnp.float32),
        "fc1_b": scale * jax.random.normal(ks[5], (50,), jnp.float32),
        "fc2_w": scale * jax.random.normal(ks[6], (36, 50), jnp.float32),
        "fc2_b": scale * jax.random.normal(ks[7], (36,), jnp.float32),
    }


def _banded_conv_weights(w_conv, w_in):
    """bw[dj, kh, w*Cin + ci, j*Cout + co] = w_conv[co, ci, kh, w - (2*j + dj)]
    (zero outside the 5-tap band).  One-time preprocessing of the conv weights."""
    w = np.asarray(w_conv, np.float32)              # [Cout, Cin, K, K]
    cout, cin, K, _ = w.shape
    qo = (w_in - K + 1) // 2
    bw = np.zeros((2, K, w_in * cin, qo * cout), np.float32)
    for dj in range(2):
        for kh in range(K):
            for j in range(qo):
                for kw in range(K):
                    col = 2 * j + dj + kw           # input column read by this tap
                    bw[dj, kh, col * cin:(col + 1) * cin,
                       j * cout:(j + 1) * cout] = w[:, :, kh, kw].T
    return jnp.asarray(bw)


def prepare_params(p):
    """One-time weight preprocessing; nothing here is re-done per forward call."""
    c2, s2 = 20, 5                                   # channels / spatial after conv2 + pool
    idx = np.arange(c2 * s2 * s2)
    h_i, w_i, c_i = idx // (s2 * c2), (idx // c2) % s2, idx % c2
    perm = c_i * (s2 * s2) + h_i * s2 + w_i          # NHWC-flat -> PyTorch NCHW-flat index
    fc1_w = np.asarray(p["fc1_w"], np.float32)       # [50, 500]
    fc2_w = np.asarray(p["fc2_w"], np.float32)       # [36, 50]
    return {
        "conv1_bw": _banded_conv_weights(p["conv1_w"], 32),      # [2, 5, 32, 140]
        "conv1_b": jnp.tile(p["conv1_b"], 14).reshape(1, 140),
        "conv2_bw": _banded_conv_weights(p["conv2_w"], 14),      # [2, 5, 140, 100]
        "conv2_b": jnp.tile(p["conv2_b"], 5).reshape(1, 100),
        "fc1_w": jnp.asarray(fc1_w[:, perm].T),                  # [500, 50], NHWC-ordered rows
        "fc1_b": jnp.asarray(p["fc1_b"]).reshape(1, 50),
        "fc2_w": jnp.asarray(fc2_w.T),                           # [50, 36]
        "fc2_b": jnp.asarray(p["fc2_b"]).reshape(1, 36),
    }


# ----------------------------------------------------------------------------
# Forward pass (eval mode)
# ----------------------------------------------------------------------------
def net_forward(x_nchw, prep):
    B = x_nchw.shape[0]
    # NCHW -> [B, H, W*Cin]: channels packed into the lane dimension.
    x = jnp.transpose(x_nchw, (0, 2, 3, 1)).reshape(B, 32, 32)
    y1 = conv_pool_relu(x, prep["conv1_bw"], prep["conv1_b"])    # [B, 14, 140]
    y2 = conv_pool_relu(y1, prep["conv2_bw"], prep["conv2_b"])   # [B, 5, 100]
    flat = y2.reshape(B, 500)            # free NHWC flatten; fc1_w rows pre-permuted to match
    return mlp_head(flat, prep["fc1_w"], prep["fc1_b"], prep["fc2_w"], prep["fc2_b"])


# ----------------------------------------------------------------------------
# Pure-JAX reference (for correctness check only)
# ----------------------------------------------------------------------------
def _ref_forward(x_nchw, p):
    hp = lax.Precision.HIGHEST

    def conv(x, w, b):
        y = lax.conv_general_dilated(x, w, (1, 1), "VALID",
                                     dimension_numbers=("NCHW", "OIHW", "NCHW"),
                                     precision=hp)
        return y + b[None, :, None, None]

    def pool_relu(x):
        B, C, H, W = x.shape
        x = x.reshape(B, C, H // 2, 2, W // 2, 2).max(axis=(3, 5))
        return jnp.maximum(x, 0.0)

    y = pool_relu(conv(x_nchw, p["conv1_w"], p["conv1_b"]))
    y = pool_relu(conv(y, p["conv2_w"], p["conv2_b"]))
    flat = y.reshape(y.shape[0], -1)
    h = jnp.maximum(jnp.dot(flat, p["fc1_w"].T, precision=hp) + p["fc1_b"], 0.0)
    z = jnp.dot(h, p["fc2_w"].T, precision=hp) + p["fc2_b"]
    return jax.nn.log_softmax(z, axis=1)


if __name__ == "__main__":
    key = jax.random.PRNGKey(0)
    k_params, k_x = jax.random.split(key)
    params = init_params(k_params)
    prep = prepare_params(params)
    # fc1 = Linear(500, 50) with 20 channels after conv2 => 5x5 spatial => 32x32 input
    x = jax.random.normal(k_x, (2, 1, 32, 32), jnp.float32)

    fwd = jax.jit(net_forward)
    out = jax.block_until_ready(fwd(x, prep))

    assert out.shape == (2, 36), out.shape
    assert bool(jnp.all(jnp.isfinite(out)))
    row_sums = jnp.sum(jnp.exp(out), axis=1)
    assert bool(jnp.all(jnp.abs(row_sums - 1.0) < 1e-4)), row_sums

    ref = _ref_forward(x, params)
    np.testing.assert_allclose(np.asarray(out), np.asarray(ref), rtol=5e-3, atol=5e-3)
    print("KERNEL_OK")
</pallas_src>

<mosaic_0001>
module attributes {stable_mosaic.version = 11 : i64} {
  func.func @_conv_pool_relu_kernel(%arg0: i32, %arg1: memref<1x16x32xf32, #tpu.memory_space<vmem>>, %arg2: memref<1x16x32xf32, #tpu.memory_space<vmem>>, %arg3: memref<2x5x32x140xf32, #tpu.memory_space<vmem>>, %arg4: memref<1x140xf32, #tpu.memory_space<vmem>>, %arg5: memref<1x14x140xf32, #tpu.memory_space<vmem>>) attributes {dimension_semantics = [#tpu.dimension_semantics<parallel>], iteration_bounds = array<i64: 2>, scalar_prefetch = 0 : i64, scratch_operands = 0 : i64, tpu.core_type = #tpu.core_type<tc>, window_params = [{transform_indices = @transform_0, window_bounds = array<i64: 1, 16, 32>}, {transform_indices = @transform_1, window_bounds = array<i64: 1, 16, 32>}, {pipeline_mode = #tpu.pipeline_mode<synchronous>, transform_indices = @transform_2, window_bounds = array<i64: 2, 5, 32, 140>}, {pipeline_mode = #tpu.pipeline_mode<synchronous>, transform_indices = @transform_3, window_bounds = array<i64: 1, 140>}, {transform_indices = @transform_4, window_bounds = array<i64: 1, 14, 140>}]} {
    %cst = arith.constant 0.000000e+00 : f32
    %0 = vector.broadcast %cst : f32 to vector<14x140xf32>
    %cst_0 = arith.constant 0.000000e+00 : f32
    %1 = vector.broadcast %cst_0 : f32 to vector<14x140xf32>
    %c0 = arith.constant 0 : index
    %c0_1 = arith.constant 0 : index
    %c0_2 = arith.constant 0 : index
    %2 = vector.load %arg1[%c0, %c0_1, %c0_2] : memref<1x16x32xf32, #tpu.memory_space<vmem>>, vector<1x14x32xf32>
    %3 = vector.shape_cast %2 : vector<1x14x32xf32> to vector<14x32xf32>
    %c0_3 = arith.constant 0 : index
    %c0_4 = arith.constant 0 : index
    %c0_5 = arith.constant 0 : index
    %c0_6 = arith.constant 0 : index
    %4 = vector.load %arg3[%c0_3, %c0_4, %c0_5, %c0_6] : memref<2x5x32x140xf32, #tpu.memory_space<vmem>>, vector<1x1x32x140xf32>
    %5 = vector.shape_cast %4 : vector<1x1x32x140xf32> to vector<32x140xf32>
    %cst_7 = arith.constant dense<0.000000e+00> : vector<14x140xf32>
    %6 = tpu.matmul %3, %5, %cst_7 {dimension_numbers = #tpu.dot_dimension_numbers<[1], [0], [0], [1], [0, 0, 1, 1], [], []>} : vector<14x32xf32>, vector<32x140xf32>, vector<14x140xf32> -> vector<14x140xf32>
    %7 = arith.addf %0, %6 : vector<14x140xf32>
    %c1 = arith.constant 1 : index
    %c0_8 = arith.constant 0 : index
    %c0_9 = arith.constant 0 : index
    %c0_10 = arith.constant 0 : index
    %8 = vector.load %arg3[%c1, %c0_8, %c0_9, %c0_10] : memref<2x5x32x140xf32, #tpu.memory_space<vmem>>, vector<1x1x32x140xf32>
    %9 = vector.shape_cast %8 : vector<1x1x32x140xf32> to vector<32x140xf32>
    %cst_11 = arith.constant dense<0.000000e+00> : vector<14x140xf32>
    %10 = tpu.matmul %3, %9, %cst_11 {dimension_numbers = #tpu.dot_dimension_numbers<[1], [0], [0], [1], [0, 0, 1, 1], [], []>} : vector<14x32xf32>, vector<32x140xf32>, vector<14x140xf32> -> vector<14x140xf32>
    %11 = arith.addf %1, %10 : vector<14x140xf32>
    %c0_12 = arith.constant 0 : index
    %c0_13 = arith.constant 0 : index
    %c0_14 = arith.constant 0 : index
    %12 = vector.load %arg2[%c0_12, %c0_13, %c0_14] : memref<1x16x32xf32, #tpu.memory_space<vmem>>, vector<1x14x32xf32>
    %13 = vector.shape_cast %12 : vector<1x14x32xf32> to vector<14x32xf32>
    %c0_15 = arith.constant 0 : index
    %c1_16 = arith.constant 1 : index
    %c0_17 = arith.constant 0 : index
    %c0_18 = arith.constant 0 : index
    %14 = vector.load %arg3[%c0_15, %c1_16, %c0_17, %c0_18] : memref<2x5x32x140xf32, #tpu.memory_space<vmem>>, vector<1x1x32x140xf32>
    %15 = vector.shape_cast %14 : vector<1x1x32x140xf32> to vector<32x140xf32>
    %cst_19 = arith.constant dense<0.000000e+00> : vector<14x140xf32>
    %16 = tpu.matmul %13, %15, %cst_19 {dimension_numbers = #tpu.dot_dimension_numbers<[1], [0], [0], [1], [0, 0, 1, 1], [], []>} : vector<14x32xf32>, vector<32x140xf32>, vector<14x140xf32> -> vector<14x140xf32>
    %17 = arith.addf %7, %16 : vector<14x140xf32>
    %c1_20 = arith.constant 1 : index
    %c1_21 = arith.constant 1 : index
    %c0_22 = arith.constant 0 : index
    %c0_23 = arith.constant 0 : index
    %18 = vector.load %arg3[%c1_20, %c1_21, %c0_22, %c0_23] : memref<2x5x32x140xf32, #tpu.memory_space<vmem>>, vector<1x1x32x140xf32>
    %19 = vector.shape_cast %18 : vector<1x1x32x140xf32> to vector<32x140xf32>
    %cst_24 = arith.constant dense<0.000000e+00> : vector<14x140xf32>
    %20 = tpu.matmul %13, %19, %cst_24 {dimension_numbers = #tpu.dot_dimension_numbers<[1], [0], [0], [1], [0, 0, 1, 1], [], []>} : vector<14x32xf32>, vector<32x140xf32>, vector<14x140xf32> -> vector<14x140xf32>
    %21 = arith.addf %11, %20 : vector<14x140xf32>
    %c0_25 = arith.constant 0 : index
    %c1_26 = arith.constant 1 : index
    %c0_27 = arith.constant 0 : index
    %22 = vector.load %arg1[%c0_25, %c1_26, %c0_27] : memref<1x16x32xf32, #tpu.memory_space<vmem>>, vector<1x14x32xf32>
    %23 = vector.shape_cast %22 : vector<1x14x32xf32> to vector<14x32xf32>
    %c0_28 = arith.constant 0 : index
    %c2 = arith.constant 2 : index
    %c0_29 = arith.constant 0 : index
    %c0_30 = arith.constant 0 : index
    %24 = vector.load %arg3[%c0_28, %c2, %c0_29, %c0_30] : memref<2x5x32x140xf32, #tpu.memory_space<vmem>>, vector<1x1x32x140xf32>
    %25 = vector.shape_cast %24 : vector<1x1x32x140xf32> to vector<32x140xf32>
    %cst_31 = arith.constant dense<0.000000e+00> : vector<14x140xf32>
    %26 = tpu.matmul %23, %25, %cst_31 {dimension_numbers = #tpu.dot_dimension_numbers<[1], [0], [0], [1], [0, 0, 1, 1], [], []>} : vector<14x32xf32>, vector<32x140xf32>, vector<14x140xf32> -> vector<14x140xf32>
    %27 = arith.addf %17, %26 : vector<14x140xf32>
    %c1_32 = arith.constant 1 : index
    %c2_33 = arith.constant 2 : index
    %c0_34 = arith.constant 0 : index
    %c0_35 = arith.constant 0 : index
    %28 = vector.load %arg3[%c1_32, %c2_33, %c0_34, %c0_35] : memref<2x5x32x140xf32, #tpu.memory_space<vmem>>, vector<1x1x32x140xf32>
    %29 = vector.shape_cast %28 : vector<1x1x32x140xf32> to vector<32x140xf32>
    %cst_36 = arith.constant dense<0.000000e+00> : vector<14x140xf32>
    %30 = tpu.matmul %23, %29, %cst_36 {dimension_numbers = #tpu.dot_dimension_numbers<[1], [0], [0], [1], [0, 0, 1, 1], [], []>} : vector<14x32xf32>, vector<32x140xf32>, vector<14x140xf32> -> vector<14x140xf32>
    %31 = arith.addf %21, %30 : vector<14x140xf32>
    %c0_37 = arith.constant 0 : index
    %c1_38 = arith.constant 1 : index
    %c0_39 = arith.constant 0 : index
    %32 = vector.load %arg2[%c0_37, %c1_38, %c0_39] : memref<1x16x32xf32, #tpu.memory_space<vmem>>, vector<1x14x32xf32>
    %33 = vector.shape_cast %32 : vector<1x14x32xf32> to vector<14x32xf32>
    %c0_40 = arith.constant 0 : index
    %c3 = arith.constant 3 : index
    %c0_41 = arith.constant 0 : index
    %c0_42 = arith.constant 0 : index
    %34 = vector.load %arg3[%c0_40, %c3, %c0_41, %c0_42] : memref<2x5x32x140xf32, #tpu.memory_space<vmem>>, vector<1x1x32x140xf32>
    %35 = vector.shape_cast %34 : vector<1x1x32x140xf32> to vector<32x140xf32>
    %cst_43 = arith.constant dense<0.000000e+00> : vector<14x140xf32>
    %36 = tpu.matmul %33, %35, %cst_43 {dimension_numbers = #tpu.dot_dimension_numbers<[1], [0], [0], [1], [0, 0, 1, 1], [], []>} : vector<14x32xf32>, vector<32x140xf32>, vector<14x140xf32> -> vector<14x140xf32>
    %37 = arith.addf %27, %36 : vector<14x140xf32>
    %c1_44 = arith.constant 1 : index
    %c3_45 = arith.constant 3 : index
    %c0_46 = arith.constant 0 : index
    %c0_47 = arith.constant 0 : index
    %38 = vector.load %arg3[%c1_44, %c3_45, %c0_46, %c0_47] : memref<2x5x32x140xf32, #tpu.memory_space<vmem>>, vector<1x1x32x140xf32>
    %39 = vector.shape_cast %38 : vector<1x1x32x140xf32> to vector<32x140xf32>
    %cst_48 = arith.constant dense<0.000000e+00> : vector<14x140xf32>
    %40 = tpu.matmul %33, %39, %cst_48 {dimension_numbers = #tpu.dot_dimension_numbers<[1], [0], [0], [1], [0, 0, 1, 1], [], []>} : vector<14x32xf32>, vector<32x140xf32>, vector<14x140xf32> -> vector<14x140xf32>
    %41 = arith.addf %31, %40 : vector<14x140xf32>
    %c0_49 = arith.constant 0 : index
    %c2_50 = arith.constant 2 : index
    %c0_51 = arith.constant 0 : index
    %42 = vector.load %arg1[%c0_49, %c2_50, %c0_51] : memref<1x16x32xf32, #tpu.memory_space<vmem>>, vector<1x14x32xf32>
    %43 = vector.shape_cast %42 : vector<1x14x32xf32> to vector<14x32xf32>
    %c0_52 = arith.constant 0 : index
    %c4 = arith.constant 4 : index
    %c0_53 = arith.constant 0 : index
    %c0_54 = arith.constant 0 : index
    %44 = vector.load %arg3[%c0_52, %c4, %c0_53, %c0_54] : memref<2x5x32x140xf32, #tpu.memory_space<vmem>>, vector<1x1x32x140xf32>
    %45 = vector.shape_cast %44 : vector<1x1x32x140xf32> to vector<32x140xf32>
    %cst_55 = arith.constant dense<0.000000e+00> : vector<14x140xf32>
    %46 = tpu.matmul %43, %45, %cst_55 {dimension_numbers = #tpu.dot_dimension_numbers<[1], [0], [0], [1], [0, 0, 1, 1], [], []>} : vector<14x32xf32>, vector<32x140xf32>, vector<14x140xf32> -> vector<14x140xf32>
    %47 = arith.addf %37, %46 : vector<14x140xf32>
    %c1_56 = arith.constant 1 : index
    %c4_57 = arith.constant 4 : index
    %c0_58 = arith.constant 0 : index
    %c0_59 = arith.constant 0 : index
    %48 = vector.load %arg3[%c1_56, %c4_57, %c0_58, %c0_59] : memref<2x5x32x140xf32, #tpu.memory_space<vmem>>, vector<1x1x32x140xf32>
    %49 = vector.shape_cast %48 : vector<1x1x32x140xf32> to vector<32x140xf32>
    %cst_60 = arith.constant dense<0.000000e+00> : vector<14x140xf32>
    %50 = tpu.matmul %43, %49, %cst_60 {dimension_numbers = #tpu.dot_dimension_numbers<[1], [0], [0], [1], [0, 0, 1, 1], [], []>} : vector<14x32xf32>, vector<32x140xf32>, vector<14x140xf32> -> vector<14x140xf32>
    %51 = arith.addf %41, %50 : vector<14x140xf32>
    %52 = arith.maximumf %47, %51 : vector<14x140xf32>
    %cst_61 = arith.constant 0.000000e+00 : f32
    %53 = vector.broadcast %cst_61 : f32 to vector<14x140xf32>
    %cst_62 = arith.constant 0.000000e+00 : f32
    %54 = vector.broadcast %cst_62 : f32 to vector<14x140xf32>
    %c0_63 = arith.constant 0 : index
    %c0_64 = arith.constant 0 : index
    %c0_65 = arith.constant 0 : index
    %55 = vector.load %arg2[%c0_63, %c0_64, %c0_65] : memref<1x16x32xf32, #tpu.memory_space<vmem>>, vector<1x14x32xf32>
    %56 = vector.shape_cast %55 : vector<1x14x32xf32> to vector<14x32xf32>
    %c0_66 = arith.constant 0 : index
    %c0_67 = arith.constant 0 : index
    %c0_68 = arith.constant 0 : index
    %c0_69 = arith.constant 0 : index
    %57 = vector.load %arg3[%c0_66, %c0_67, %c0_68, %c0_69] : memref<2x5x32x140xf32, #tpu.memory_space<vmem>>, vector<1x1x32x140xf32>
    %58 = vector.shape_cast %57 : vector<1x1x32x140xf32> to vector<32x140xf32>
    %cst_70 = arith.constant dense<0.000000e+00> : vector<14x140xf32>
    %59 = tpu.matmul %56, %58, %cst_70 {dimension_numbers = #tpu.dot_dimension_numbers<[1], [0], [0], [1], [0, 0, 1, 1], [], []>} : vector<14x32xf32>, vector<32x140xf32>, vector<14x140xf32> -> vector<14x140xf32>
    %60 = arith.addf %53, %59 : vector<14x140xf32>
    %c1_71 = arith.constant 1 : index
    %c0_72 = arith.constant 0 : index
    %c0_73 = arith.constant 0 : index
    %c0_74 = arith.constant 0 : index
    %61 = vector.load %arg3[%c1_71, %c0_72, %c0_73, %c0_74] : memref<2x5x32x140xf32, #tpu.memory_space<vmem>>, vector<1x1x32x140xf32>
    %62 = vector.shape_cast %61 : vector<1x1x32x140xf32> to vector<32x140xf32>
    %cst_75 = arith.constant dense<0.000000e+00> : vector<14x140xf32>
    %63 = tpu.matmul %56, %62, %cst_75 {dimension_numbers = #tpu.dot_dimension_numbers<[1], [0], [0], [1], [0, 0, 1, 1], [], []>} : vector<14x32xf32>, vector<32x140xf32>, vector<14x140xf32> -> vector<14x140xf32>
    %64 = arith.addf %54, %63 : vector<14x140xf32>
    %c0_76 = arith.constant 0 : index
    %c1_77 = arith.constant 1 : index
    %c0_78 = arith.constant 0 : index
    %65 = vector.load %arg1[%c0_76, %c1_77, %c0_78] : memref<1x16x32xf32, #tpu.memory_space<vmem>>, vector<1x14x32xf32>
    %66 = vector.shape_cast %65 : vector<1x14x32xf32> to vector<14x32xf32>
    %c0_79 = arith.constant 0 : index
    %c1_80 = arith.constant 1 : index
    %c0_81 = arith.constant 0 : index
    %c0_82 = arith.constant 0 : index
    %67 = vector.load %arg3[%c0_79, %c1_80, %c0_81, %c0_82] : memref<2x5x32x140xf32, #tpu.memory_space<vmem>>, vector<1x1x32x140xf32>
    %68 = vector.shape_cast %67 : vector<1x1x32x140xf32> to vector<32x140xf32>
    %cst_83 = arith.constant dense<0.000000e+00> : vector<14x140xf32>
    %69 = tpu.matmul %66, %68, %cst_83 {dimension_numbers = #tpu.dot_dimension_numbers<[1], [0], [0], [1], [0, 0, 1, 1], [], []>} : vector<14x32xf32>, vector<32x140xf32>, vector<14x140xf32> -> vector<14x140xf32>
    %70 = arith.addf %60, %69 : vector<14x140xf32>
    %c1_84 = arith.constant 1 : index
    %c1_85 = arith.constant 1 : index
    %c0_86 = arith.constant 0 : index
    %c0_87 = arith.constant 0 : index
    %71 = vector.load %arg3[%c1_84, %c1_85, %c0_86, %c0_87] : memref<2x5x32x140xf32, #tpu.memory_space<vmem>>, vector<1x1x32x140xf32>
    %72 = vector.shape_cast %71 : vector<1x1x32x140xf32> to vector<32x140xf32>
    %cst_88 = arith.constant dense<0.000000e+00> : vector<14x140xf32>
    %73 = tpu.matmul %66, %72, %cst_88 {dimension_numbers = #tpu.dot_dimension_numbers<[1], [0], [0], [1], [0, 0, 1, 1], [], []>} : vector<14x32xf32>, vector<32x140xf32>, vector<14x140xf32> -> vector<14x140xf32>
    %74 = arith.addf %64, %73 : vector<14x140xf32>
    %c0_89 = arith.constant 0 : index
    %c1_90 = arith.constant 1 : index
    %c0_91 = arith.constant 0 : index
    %75 = vector.load %arg2[%c0_89, %c1_90, %c0_91] : memref<1x16x32xf32, #tpu.memory_space<vmem>>, vector<1x14x32xf32>
    %76 = vector.shape_cast %75 : vector<1x14x32xf32> to vector<14x32xf32>
    %c0_92 = arith.constant 0 : index
    %c2_93 = arith.constant 2 : index
    %c0_94 = arith.constant 0 : index
    %c0_95 = arith.constant 0 : index
    %77 = vector.load %arg3[%c0_92, %c2_93, %c0_94, %c0_95] : memref<2x5x32x140xf32, #tpu.memory_space<vmem>>, vector<1x1x32x140xf32>
    %78 = vector.shape_cast %77 : vector<1x1x32x140xf32> to vector<32x140xf32>
    %cst_96 = arith.constant dense<0.000000e+00> : vector<14x140xf32>
    %79 = tpu.matmul %76, %78, %cst_96 {dimension_numbers = #tpu.dot_dimension_numbers<[1], [0], [0], [1], [0, 0, 1, 1], [], []>} : vector<14x32xf32>, vector<32x140xf32>, vector<14x140xf32> -> vector<14x140xf32>
    %80 = arith.addf %70, %79 : vector<14x140xf32>
    %c1_97 = arith.constant 1 : index
    %c2_98 = arith.constant 2 : index
    %c0_99 = arith.constant 0 : index
    %c0_100 = arith.constant 0 : index
    %81 = vector.load %arg3[%c1_97, %c2_98, %c0_99, %c0_100] : memref<2x5x32x140xf32, #tpu.memory_space<vmem>>, vector<1x1x32x140xf32>
    %82 = vector.shape_cast %81 : vector<1x1x32x140xf32> to vector<32x140xf32>
    %cst_101 = arith.constant dense<0.000000e+00> : vector<14x140xf32>
    %83 = tpu.matmul %76, %82, %cst_101 {dimension_numbers = #tpu.dot_dimension_numbers<[1], [0], [0], [1], [0, 0, 1, 1], [], []>} : vector<14x32xf32>, vector<32x140xf32>, vector<14x140xf32> -> vector<14x140xf32>
    %84 = arith.addf %74, %83 : vector<14x140xf32>
    %c0_102 = arith.constant 0 : index
    %c2_103 = arith.constant 2 : index
    %c0_104 = arith.constant 0 : index
    %85 = vector.load %arg1[%c0_102, %c2_103, %c0_104] : memref<1x16x32xf32, #tpu.memory_space<vmem>>, vector<1x14x32xf32>
    %86 = vector.shape_cast %85 : vector<1x14x32xf32> to vector<14x32xf32>
    %c0_105 = arith.constant 0 : index
    %c3_106 = arith.constant 3 : index
    %c0_107 = arith.constant 0 : index
    %c0_108 = arith.constant 0 : index
    %87 = vector.load %arg3[%c0_105, %c3_106, %c0_107, %c0_108] : memref<2x5x32x140xf32, #tpu.memory_space<vmem>>, vector<1x1x32x140xf32>
    %88 = vector.shape_cast %87 : vector<1x1x32x140xf32> to vector<32x140xf32>
    %cst_109 = arith.constant dense<0.000000e+00> : vector<14x140xf32>
    %89 = tpu.matmul %86, %88, %cst_109 {dimension_numbers = #tpu.dot_dimension_numbers<[1], [0], [0], [1], [0, 0, 1, 1], [], []>} : vector<14x32xf32>, vector<32x140xf32>, vector<14x140xf32> -> vector<14x140xf32>
    %90 = arith.addf %80, %89 : vector<14x140xf32>
    %c1_110 = arith.constant 1 : index
    %c3_111 = arith.constant 3 : index
    %c0_112 = arith.constant 0 : index
    %c0_113 = arith.constant 0 : index
    %91 = vector.load %arg3[%c1_110, %c3_111, %c0_112, %c0_113] : memref<2x5x32x140xf32, #tpu.memory_space<vmem>>, vector<1x1x32x140xf32>
    %92 = vector.shape_cast %91 : vector<1x1x32x140xf32> to vector<32x140xf32>
    %cst_114 = arith.constant dense<0.000000e+00> : vector<14x140xf32>
    %93 = tpu.matmul %86, %92, %cst_114 {dimension_numbers = #tpu.dot_dimension_numbers<[1], [0], [0], [1], [0, 0, 1, 1], [], []>} : vector<14x32xf32>, vector<32x140xf32>, vector<14x140xf32> -> vector<14x140xf32>
    %94 = arith.addf %84, %93 : vector<14x140xf32>
    %c0_115 = arith.constant 0 : index
    %c2_116 = arith.constant 2 : index
    %c0_117 = arith.constant 0 : index
    %95 = vector.load %arg2[%c0_115, %c2_116, %c0_117] : memref<1x16x32xf32, #tpu.memory_space<vmem>>, vector<1x14x32xf32>
    %96 = vector.shape_cast %95 : vector<1x14x32xf32> to vector<14x32xf32>
    %c0_118 = arith.constant 0 : index
    %c4_119 = arith.constant 4 : index
    %c0_120 = arith.constant 0 : index
    %c0_121 = arith.constant 0 : index
    %97 = vector.load %arg3[%c0_118, %c4_119, %c0_120, %c0_121] : memref<2x5x32x140xf32, #tpu.memory_space<vmem>>, vector<1x1x32x140xf32>
    %98 = vector.shape_cast %97 : vector<1x1x32x140xf32> to vector<32x140xf32>
    %cst_122 = arith.constant dense<0.000000e+00> : vector<14x140xf32>
    %99 = tpu.matmul %96, %98, %cst_122 {dimension_numbers = #tpu.dot_dimension_numbers<[1], [0], [0], [1], [0, 0, 1, 1], [], []>} : vector<14x32xf32>, vector<32x140xf32>, vector<14x140xf32> -> vector<14x140xf32>
    %100 = arith.addf %90, %99 : vector<14x140xf32>
    %c1_123 = arith.constant 1 : index
    %c4_124 = arith.constant 4 : index
    %c0_125 = arith.constant 0 : index
    %c0_126 = arith.constant 0 : index
    %101 = vector.load %arg3[%c1_123, %c4_124, %c0_125, %c0_126] : memref<2x5x32x140xf32, #tpu.memory_space<vmem>>, vector<1x1x32x140xf32>
    %102 = vector.shape_cast %101 : vector<1x1x32x140xf32> to vector<32x140xf32>
    %cst_127 = arith.constant dense<0.000000e+00> : vector<14x140xf32>
    %103 = tpu.matmul %96, %102, %cst_127 {dimension_numbers = #tpu.dot_dimension_numbers<[1], [0], [0], [1], [0, 0, 1, 1], [], []>} : vector<14x32xf32>, vector<32x140xf32>, vector<14x140xf32> -> vector<14x140xf32>
    %104 = arith.addf %94, %103 : vector<14x140xf32>
    %105 = arith.maximumf %100, %104 : vector<14x140xf32>
    %106 = arith.maximumf %52, %105 : vector<14x140xf32>
    %c0_128 = arith.constant 0 : index
    %c0_129 = arith.constant 0 : index
    %107 = vector.load %arg4[%c0_128, %c0_129] : memref<1x140xf32, #tpu.memory_space<vmem>>, vector<1x140xf32>
    %108 = vector.broadcast %107 : vector<1x140xf32> to vector<14x140xf32>
    %109 = arith.addf %106, %108 : vector<14x140xf32>
    %cst_130 = arith.constant 0.000000e+00 : f32
    %110 = vector.broadcast %cst_130 : f32 to vector<14x140xf32>
    %111 = arith.maximumf %109, %110 : vector<14x140xf32>
    %c0_131 = arith.constant 0 : index
    %c0_132 = arith.constant 0 : index
    %c0_133 = arith.constant 0 : index
    %112 = vector.load %arg5[%c0_131, %c0_132, %c0_133] : memref<1x14x140xf32, #tpu.memory_space<vmem>>, vector<1x14x140xf32>
    %113 = vector.shape_cast %112 : vector<1x14x140xf32> to vector<14x140xf32>
    %114 = vector.shape_cast %111 : vector<14x140xf32> to vector<1x14x140xf32>
    tpu.vector_store %arg5[%c0_131, %c0_132, %c0_133], %114 {strides = array<i32>} : memref<1x14x140xf32, #tpu.memory_space<vmem>>, vector<1x14x140xf32>,
    return
  }
  func.func @transform_0(%arg0: i32) -> (i32, i32, i32) {
    %c0_i32 = arith.constant 0 : i32
    %c0_i32_0 = arith.constant 0 : i32
    %c0_i32_1 = arith.constant 0 : i32
    return %arg0, %c0_i32, %c0_i32_0 : i32, i32, i32
  }
  func.func @transform_1(%arg0: i32) -> (i32, i32, i32) {
    %c0_i32 = arith.constant 0 : i32
    %c0_i32_0 = arith.constant 0 : i32
    %c0_i32_1 = arith.constant 0 : i32
    return %arg0, %c0_i32, %c0_i32_0 : i32, i32, i32
  }
  func.func @transform_2(%arg0: i32) -> (i32, i32, i32, i32) {
    %c0_i32 = arith.constant 0 : i32
    %c0_i32_0 = arith.constant 0 : i32
    %c0_i32_1 = arith.constant 0 : i32
    %c0_i32_2 = arith.constant 0 : i32
    %c0_i32_3 = arith.constant 0 : i32
    return %c0_i32, %c0_i32_0, %c0_i32_1, %c0_i32_2 : i32, i32, i32, i32
  }
  func.func @transform_3(%arg0: i32) -> (i32, i32) {
    %c0_i32 = arith.constant 0 : i32
    %c0_i32_0 = arith.constant 0 : i32
    %c0_i32_1 = arith.constant 0 : i32
    return %c0_i32, %c0_i32_0 : i32, i32
  }
  func.func @transform_4(%arg0: i32) -> (i32, i32, i32) {
    %c0_i32 = arith.constant 0 : i32
    %c0_i32_0 = arith.constant 0 : i32
    %c0_i32_1 = arith.constant 0 : i32
    return %arg0, %c0_i32, %c0_i32_0 : i32, i32, i32
  }
}

module attributes {stable_mosaic.version = 11 : i64} {
  func.func @_conv_pool_relu_kernel(%arg0: i32, %arg1: memref<1x7x140xf32, #tpu.memory_space<vmem>>, %arg2: memref<1x7x140xf32, #tpu.memory_space<vmem>>, %arg3: memref<2x5x140x100xf32, #tpu.memory_space<vmem>>, %arg4: memref<1x100xf32, #tpu.memory_space<vmem>>, %arg5: memref<1x5x100xf32, #tpu.memory_space<vmem>>) attributes {dimension_semantics = [#tpu.dimension_semantics<parallel>], iteration_bounds = array<i64: 2>, scalar_prefetch = 0 : i64, scratch_operands = 0 : i64, tpu.core_type = #tpu.core_type<tc>, window_params = [{transform_indices = @transform_0, window_bounds = array<i64: 1, 7, 140>}, {transform_indices = @transform_1, window_bounds = array<i64: 1, 7, 140>}, {pipeline_mode = #tpu.pipeline_mode<synchronous>, transform_indices = @transform_2, window_bounds = array<i64: 2, 5, 140, 100>}, {pipeline_mode = #tpu.pipeline_mode<synchronous>, transform_indices = @transform_3, window_bounds = array<i64: 1, 100>}, {transform_indices = @transform_4, window_bounds = array<i64: 1, 5, 100>}]} {
    %cst = arith.constant 0.000000e+00 : f32
    %0 = vector.broadcast %cst : f32 to vector<5x100xf32>
    %cst_0 = arith.constant 0.000000e+00 : f32
    %1 = vector.broadcast %cst_0 : f32 to vector<5x100xf32>
    %c0 = arith.constant 0 : index
    %c0_1 = arith.constant 0 : index
    %c0_2 = arith.constant 0 : index
    %2 = vector.load %arg1[%c0, %c0_1, %c0_2] : memref<1x7x140xf32, #tpu.memory_space<vmem>>, vector<1x5x140xf32>
    %3 = vector.shape_cast %2 : vector<1x5x140xf32> to vector<5x140xf32>
    %c0_3 = arith.constant 0 : index
    %c0_4 = arith.constant 0 : index
    %c0_5 = arith.constant 0 : index
    %c0_6 = arith.constant 0 : index
    %4 = vector.load %arg3[%c0_3, %c0_4, %c0_5, %c0_6] : memref<2x5x140x100xf32, #tpu.memory_space<vmem>>, vector<1x1x140x100xf32>
    %5 = vector.shape_cast %4 : vector<1x1x140x100xf32> to vector<140x100xf32>
    %cst_7 = arith.constant dense<0.000000e+00> : vector<5x100xf32>
    %6 = tpu.matmul %3, %5, %cst_7 {dimension_numbers = #tpu.dot_dimension_numbers<[1], [0], [0], [1], [0, 0, 1, 1], [], []>} : vector<5x140xf32>, vector<140x100xf32>, vector<5x100xf32> -> vector<5x100xf32>
    %7 = arith.addf %0, %6 : vector<5x100xf32>
    %c1 = arith.constant 1 : index
    %c0_8 = arith.constant 0 : index
    %c0_9 = arith.constant 0 : index
    %c0_10 = arith.constant 0 : index
    %8 = vector.load %arg3[%c1, %c0_8, %c0_9, %c0_10] : memref<2x5x140x100xf32, #tpu.memory_space<vmem>>, vector<1x1x140x100xf32>
    %9 = vector.shape_cast %8 : vector<1x1x140x100xf32> to vector<140x100xf32>
    %cst_11 = arith.constant dense<0.000000e+00> : vector<5x100xf32>
    %10 = tpu.matmul %3, %9, %cst_11 {dimension_numbers = #tpu.dot_dimension_numbers<[1], [0], [0], [1], [0, 0, 1, 1], [], []>} : vector<5x140xf32>, vector<140x100xf32>, vector<5x100xf32> -> vector<5x100xf32>
    %11 = arith.addf %1, %10 : vector<5x100xf32>
    %c0_12 = arith.constant 0 : index
    %c0_13 = arith.constant 0 : index
    %c0_14 = arith.constant 0 : index
    %12 = vector.load %arg2[%c0_12, %c0_13, %c0_14] : memref<1x7x140xf32, #tpu.memory_space<vmem>>, vector<1x5x140xf32>
    %13 = vector.shape_cast %12 : vector<1x5x140xf32> to vector<5x140xf32>
    %c0_15 = arith.constant 0 : index
    %c1_16 = arith.constant 1 : index
    %c0_17 = arith.constant 0 : index
    %c0_18 = arith.constant 0 : index
    %14 = vector.load %arg3[%c0_15, %c1_16, %c0_17, %c0_18] : memref<2x5x140x100xf32, #tpu.memory_space<vmem>>, vector<1x1x140x100xf32>
    %15 = vector.shape_cast %14 : vector<1x1x140x100xf32> to vector<140x100xf32>
    %cst_19 = arith.constant dense<0.000000e+00> : vector<5x100xf32>
    %16 = tpu.matmul %13, %15, %cst_19 {dimension_numbers = #tpu.dot_dimension_numbers<[1], [0], [0], [1], [0, 0, 1, 1], [], []>} : vector<5x140xf32>, vector<140x100xf32>, vector<5x100xf32> -> vector<5x100xf32>
    %17 = arith.addf %7, %16 : vector<5x100xf32>
    %c1_20 = arith.constant 1 : index
    %c1_21 = arith.constant 1 : index
    %c0_22 = arith.constant 0 : index
    %c0_23 = arith.constant 0 : index
    %18 = vector.load %arg3[%c1_20, %c1_21, %c0_22, %c0_23] : memref<2x5x140x100xf32, #tpu.memory_space<vmem>>, vector<1x1x140x100xf32>
    %19 = vector.shape_cast %18 : vector<1x1x140x100xf32> to vector<140x100xf32>
    %cst_24 = arith.constant dense<0.000000e+00> : vector<5x100xf32>
    %20 = tpu.matmul %13, %19, %cst_24 {dimension_numbers = #tpu.dot_dimension_numbers<[1], [0], [0], [1], [0, 0, 1, 1], [], []>} : vector<5x140xf32>, vector<140x100xf32>, vector<5x100xf32> -> vector<5x100xf32>
    %21 = arith.addf %11, %20 : vector<5x100xf32>
    %c0_25 = arith.constant 0 : index
    %c1_26 = arith.constant 1 : index
    %c0_27 = arith.constant 0 : index
    %22 = vector.load %arg1[%c0_25, %c1_26, %c0_27] : memref<1x7x140xf32, #tpu.memory_space<vmem>>, vector<1x5x140xf32>
    %23 = vector.shape_cast %22 : vector<1x5x140xf32> to vector<5x140xf32>
    %c0_28 = arith.constant 0 : index
    %c2 = arith.constant 2 : index
    %c0_29 = arith.constant 0 : index
    %c0_30 = arith.constant 0 : index
    %24 = vector.load %arg3[%c0_28, %c2, %c0_29, %c0_30] : memref<2x5x140x100xf32, #tpu.memory_space<vmem>>, vector<1x1x140x100xf32>
    %25 = vector.shape_cast %24 : vector<1x1x140x100xf32> to vector<140x100xf32>
    %cst_31 = arith.constant dense<0.000000e+00> : vector<5x100xf32>
    %26 = tpu.matmul %23, %25, %cst_31 {dimension_numbers = #tpu.dot_dimension_numbers<[1], [0], [0], [1], [0, 0, 1, 1], [], []>} : vector<5x140xf32>, vector<140x100xf32>, vector<5x100xf32> -> vector<5x100xf32>
    %27 = arith.addf %17, %26 : vector<5x100xf32>
    %c1_32 = arith.constant 1 : index
    %c2_33 = arith.constant 2 : index
    %c0_34 = arith.constant 0 : index
    %c0_35 = arith.constant 0 : index
    %28 = vector.load %arg3[%c1_32, %c2_33, %c0_34, %c0_35] : memref<2x5x140x100xf32, #tpu.memory_space<vmem>>, vector<1x1x140x100xf32>
    %29 = vector.shape_cast %28 : vector<1x1x140x100xf32> to vector<140x100xf32>
    %cst_36 = arith.constant dense<0.000000e+00> : vector<5x100xf32>
    %30 = tpu.matmul %23, %29, %cst_36 {dimension_numbers = #tpu.dot_dimension_numbers<[1], [0], [0], [1], [0, 0, 1, 1], [], []>} : vector<5x140xf32>, vector<140x100xf32>, vector<5x100xf32> -> vector<5x100xf32>
    %31 = arith.addf %21, %30 : vector<5x100xf32>
    %c0_37 = arith.constant 0 : index
    %c1_38 = arith.constant 1 : index
    %c0_39 = arith.constant 0 : index
    %32 = vector.load %arg2[%c0_37, %c1_38, %c0_39] : memref<1x7x140xf32, #tpu.memory_space<vmem>>, vector<1x5x140xf32>
    %33 = vector.shape_cast %32 : vector<1x5x140xf32> to vector<5x140xf32>
    %c0_40 = arith.constant 0 : index
    %c3 = arith.constant 3 : index
    %c0_41 = arith.constant 0 : index
    %c0_42 = arith.constant 0 : index
    %34 = vector.load %arg3[%c0_40, %c3, %c0_41, %c0_42] : memref<2x5x140x100xf32, #tpu.memory_space<vmem>>, vector<1x1x140x100xf32>
    %35 = vector.shape_cast %34 : vector<1x1x140x100xf32> to vector<140x100xf32>
    %cst_43 = arith.constant dense<0.000000e+00> : vector<5x100xf32>
    %36 = tpu.matmul %33, %35, %cst_43 {dimension_numbers = #tpu.dot_dimension_numbers<[1], [0], [0], [1], [0, 0, 1, 1], [], []>} : vector<5x140xf32>, vector<140x100xf32>, vector<5x100xf32> -> vector<5x100xf32>
    %37 = arith.addf %27, %36 : vector<5x100xf32>
    %c1_44 = arith.constant 1 : index
    %c3_45 = arith.constant 3 : index
    %c0_46 = arith.constant 0 : index
    %c0_47 = arith.constant 0 : index
    %38 = vector.load %arg3[%c1_44, %c3_45, %c0_46, %c0_47] : memref<2x5x140x100xf32, #tpu.memory_space<vmem>>, vector<1x1x140x100xf32>
    %39 = vector.shape_cast %38 : vector<1x1x140x100xf32> to vector<140x100xf32>
    %cst_48 = arith.constant dense<0.000000e+00> : vector<5x100xf32>
    %40 = tpu.matmul %33, %39, %cst_48 {dimension_numbers = #tpu.dot_dimension_numbers<[1], [0], [0], [1], [0, 0, 1, 1], [], []>} : vector<5x140xf32>, vector<140x100xf32>, vector<5x100xf32> -> vector<5x100xf32>
    %41 = arith.addf %31, %40 : vector<5x100xf32>
    %c0_49 = arith.constant 0 : index
    %c2_50 = arith.constant 2 : index
    %c0_51 = arith.constant 0 : index
    %42 = vector.load %arg1[%c0_49, %c2_50, %c0_51] : memref<1x7x140xf32, #tpu.memory_space<vmem>>, vector<1x5x140xf32>
    %43 = vector.shape_cast %42 : vector<1x5x140xf32> to vector<5x140xf32>
    %c0_52 = arith.constant 0 : index
    %c4 = arith.constant 4 : index
    %c0_53 = arith.constant 0 : index
    %c0_54 = arith.constant 0 : index
    %44 = vector.load %arg3[%c0_52, %c4, %c0_53, %c0_54] : memref<2x5x140x100xf32, #tpu.memory_space<vmem>>, vector<1x1x140x100xf32>
    %45 = vector.shape_cast %44 : vector<1x1x140x100xf32> to vector<140x100xf32>
    %cst_55 = arith.constant dense<0.000000e+00> : vector<5x100xf32>
    %46 = tpu.matmul %43, %45, %cst_55 {dimension_numbers = #tpu.dot_dimension_numbers<[1], [0], [0], [1], [0, 0, 1, 1], [], []>} : vector<5x140xf32>, vector<140x100xf32>, vector<5x100xf32> -> vector<5x100xf32>
    %47 = arith.addf %37, %46 : vector<5x100xf32>
    %c1_56 = arith.constant 1 : index
    %c4_57 = arith.constant 4 : index
    %c0_58 = arith.constant 0 : index
    %c0_59 = arith.constant 0 : index
    %48 = vector.load %arg3[%c1_56, %c4_57, %c0_58, %c0_59] : memref<2x5x140x100xf32, #tpu.memory_space<vmem>>, vector<1x1x140x100xf32>
    %49 = vector.shape_cast %48 : vector<1x1x140x100xf32> to vector<140x100xf32>
    %cst_60 = arith.constant dense<0.000000e+00> : vector<5x100xf32>
    %50 = tpu.matmul %43, %49, %cst_60 {dimension_numbers = #tpu.dot_dimension_numbers<[1], [0], [0], [1], [0, 0, 1, 1], [], []>} : vector<5x140xf32>, vector<140x100xf32>, vector<5x100xf32> -> vector<5x100xf32>
    %51 = arith.addf %41, %50 : vector<5x100xf32>
    %52 = arith.maximumf %47, %51 : vector<5x100xf32>
    %cst_61 = arith.constant 0.000000e+00 : f32
    %53 = vector.broadcast %cst_61 : f32 to vector<5x100xf32>
    %cst_62 = arith.constant 0.000000e+00 : f32
    %54 = vector.broadcast %cst_62 : f32 to vector<5x100xf32>
    %c0_63 = arith.constant 0 : index
    %c0_64 = arith.constant 0 : index
    %c0_65 = arith.constant 0 : index
    %55 = vector.load %arg2[%c0_63, %c0_64, %c0_65] : memref<1x7x140xf32, #tpu.memory_space<vmem>>, vector<1x5x140xf32>
    %56 = vector.shape_cast %55 : vector<1x5x140xf32> to vector<5x140xf32>
    %c0_66 = arith.constant 0 : index
    %c0_67 = arith.constant 0 : index
    %c0_68 = arith.constant 0 : index
    %c0_69 = arith.constant 0 : index
    %57 = vector.load %arg3[%c0_66, %c0_67, %c0_68, %c0_69] : memref<2x5x140x100xf32, #tpu.memory_space<vmem>>, vector<1x1x140x100xf32>
    %58 = vector.shape_cast %57 : vector<1x1x140x100xf32> to vector<140x100xf32>
    %cst_70 = arith.constant dense<0.000000e+00> : vector<5x100xf32>
    %59 = tpu.matmul %56, %58, %cst_70 {dimension_numbers = #tpu.dot_dimension_numbers<[1], [0], [0], [1], [0, 0, 1, 1], [], []>} : vector<5x140xf32>, vector<140x100xf32>, vector<5x100xf32> -> vector<5x100xf32>
    %60 = arith.addf %53, %59 : vector<5x100xf32>
    %c1_71 = arith.constant 1 : index
    %c0_72 = arith.constant 0 : index
    %c0_73 = arith.constant 0 : index
    %c0_74 = arith.constant 0 : index
    %61 = vector.load %arg3[%c1_71, %c0_72, %c0_73, %c0_74] : memref<2x5x140x100xf32, #tpu.memory_space<vmem>>, vector<1x1x140x100xf32>
    %62 = vector.shape_cast %61 : vector<1x1x140x100xf32> to vector<140x100xf32>
    %cst_75 = arith.constant dense<0.000000e+00> : vector<5x100xf32>
    %63 = tpu.matmul %56, %62, %cst_75 {dimension_numbers = #tpu.dot_dimension_numbers<[1], [0], [0], [1], [0, 0, 1, 1], [], []>} : vector<5x140xf32>, vector<140x100xf32>, vector<5x100xf32> -> vector<5x100xf32>
    %64 = arith.addf %54, %63 : vector<5x100xf32>
    %c0_76 = arith.constant 0 : index
    %c1_77 = arith.constant 1 : index
    %c0_78 = arith.constant 0 : index
    %65 = vector.load %arg1[%c0_76, %c1_77, %c0_78] : memref<1x7x140xf32, #tpu.memory_space<vmem>>, vector<1x5x140xf32>
    %66 = vector.shape_cast %65 : vector<1x5x140xf32> to vector<5x140xf32>
    %c0_79 = arith.constant 0 : index
    %c1_80 = arith.constant 1 : index
    %c0_81 = arith.constant 0 : index
    %c0_82 = arith.constant 0 : index
    %67 = vector.load %arg3[%c0_79, %c1_80, %c0_81, %c0_82] : memref<2x5x140x100xf32, #tpu.memory_space<vmem>>, vector<1x1x140x100xf32>
    %68 = vector.shape_cast %67 : vector<1x1x140x100xf32> to vector<140x100xf32>
    %cst_83 = arith.constant dense<0.000000e+00> : vector<5x100xf32>
    %69 = tpu.matmul %66, %68, %cst_83 {dimension_numbers = #tpu.dot_dimension_numbers<[1], [0], [0], [1], [0, 0, 1, 1], [], []>} : vector<5x140xf32>, vector<140x100xf32>, vector<5x100xf32> -> vector<5x100xf32>
    %70 = arith.addf %60, %69 : vector<5x100xf32>
    %c1_84 = arith.constant 1 : index
    %c1_85 = arith.constant 1 : index
    %c0_86 = arith.constant 0 : index
    %c0_87 = arith.constant 0 : index
    %71 = vector.load %arg3[%c1_84, %c1_85, %c0_86, %c0_87] : memref<2x5x140x100xf32, #tpu.memory_space<vmem>>, vector<1x1x140x100xf32>
    %72 = vector.shape_cast %71 : vector<1x1x140x100xf32> to vector<140x100xf32>
    %cst_88 = arith.constant dense<0.000000e+00> : vector<5x100xf32>
    %73 = tpu.matmul %66, %72, %cst_88 {dimension_numbers = #tpu.dot_dimension_numbers<[1], [0], [0], [1], [0, 0, 1, 1], [], []>} : vector<5x140xf32>, vector<140x100xf32>, vector<5x100xf32> -> vector<5x100xf32>
    %74 = arith.addf %64, %73 : vector<5x100xf32>
    %c0_89 = arith.constant 0 : index
    %c1_90 = arith.constant 1 : index
    %c0_91 = arith.constant 0 : index
    %75 = vector.load %arg2[%c0_89, %c1_90, %c0_91] : memref<1x7x140xf32, #tpu.memory_space<vmem>>, vector<1x5x140xf32>
    %76 = vector.shape_cast %75 : vector<1x5x140xf32> to vector<5x140xf32>
    %c0_92 = arith.constant 0 : index
    %c2_93 = arith.constant 2 : index
    %c0_94 = arith.constant 0 : index
    %c0_95 = arith.constant 0 : index
    %77 = vector.load %arg3[%c0_92, %c2_93, %c0_94, %c0_95] : memref<2x5x140x100xf32, #tpu.memory_space<vmem>>, vector<1x1x140x100xf32>
    %78 = vector.shape_cast %77 : vector<1x1x140x100xf32> to vector<140x100xf32>
    %cst_96 = arith.constant dense<0.000000e+00> : vector<5x100xf32>
    %79 = tpu.matmul %76, %78, %cst_96 {dimension_numbers = #tpu.dot_dimension_numbers<[1], [0], [0], [1], [0, 0, 1, 1], [], []>} : vector<5x140xf32>, vector<140x100xf32>, vector<5x100xf32> -> vector<5x100xf32>
    %80 = arith.addf %70, %79 : vector<5x100xf32>
    %c1_97 = arith.constant 1 : index
    %c2_98 = arith.constant 2 : index
    %c0_99 = arith.constant 0 : index
    %c0_100 = arith.constant 0 : index
    %81 = vector.load %arg3[%c1_97, %c2_98, %c0_99, %c0_100] : memref<2x5x140x100xf32, #tpu.memory_space<vmem>>, vector<1x1x140x100xf32>
    %82 = vector.shape_cast %81 : vector<1x1x140x100xf32> to vector<140x100xf32>
    %cst_101 = arith.constant dense<0.000000e+00> : vector<5x100xf32>
    %83 = tpu.matmul %76, %82, %cst_101 {dimension_numbers = #tpu.dot_dimension_numbers<[1], [0], [0], [1], [0, 0, 1, 1], [], []>} : vector<5x140xf32>, vector<140x100xf32>, vector<5x100xf32> -> vector<5x100xf32>
    %84 = arith.addf %74, %83 : vector<5x100xf32>
    %c0_102 = arith.constant 0 : index
    %c2_103 = arith.constant 2 : index
    %c0_104 = arith.constant 0 : index
    %85 = vector.load %arg1[%c0_102, %c2_103, %c0_104] : memref<1x7x140xf32, #tpu.memory_space<vmem>>, vector<1x5x140xf32>
    %86 = vector.shape_cast %85 : vector<1x5x140xf32> to vector<5x140xf32>
    %c0_105 = arith.constant 0 : index
    %c3_106 = arith.constant 3 : index
    %c0_107 = arith.constant 0 : index
    %c0_108 = arith.constant 0 : index
    %87 = vector.load %arg3[%c0_105, %c3_106, %c0_107, %c0_108] : memref<2x5x140x100xf32, #tpu.memory_space<vmem>>, vector<1x1x140x100xf32>
    %88 = vector.shape_cast %87 : vector<1x1x140x100xf32> to vector<140x100xf32>
    %cst_109 = arith.constant dense<0.000000e+00> : vector<5x100xf32>
    %89 = tpu.matmul %86, %88, %cst_109 {dimension_numbers = #tpu.dot_dimension_numbers<[1], [0], [0], [1], [0, 0, 1, 1], [], []>} : vector<5x140xf32>, vector<140x100xf32>, vector<5x100xf32> -> vector<5x100xf32>
    %90 = arith.addf %80, %89 : vector<5x100xf32>
    %c1_110 = arith.constant 1 : index
    %c3_111 = arith.constant 3 : index
    %c0_112 = arith.constant 0 : index
    %c0_113 = arith.constant 0 : index
    %91 = vector.load %arg3[%c1_110, %c3_111, %c0_112, %c0_113] : memref<2x5x140x100xf32, #tpu.memory_space<vmem>>, vector<1x1x140x100xf32>
    %92 = vector.shape_cast %91 : vector<1x1x140x100xf32> to vector<140x100xf32>
    %cst_114 = arith.constant dense<0.000000e+00> : vector<5x100xf32>
    %93 = tpu.matmul %86, %92, %cst_114 {dimension_numbers = #tpu.dot_dimension_numbers<[1], [0], [0], [1], [0, 0, 1, 1], [], []>} : vector<5x140xf32>, vector<140x100xf32>, vector<5x100xf32> -> vector<5x100xf32>
    %94 = arith.addf %84, %93 : vector<5x100xf32>
    %c0_115 = arith.constant 0 : index
    %c2_116 = arith.constant 2 : index
    %c0_117 = arith.constant 0 : index
    %95 = vector.load %arg2[%c0_115, %c2_116, %c0_117] : memref<1x7x140xf32, #tpu.memory_space<vmem>>, vector<1x5x140xf32>
    %96 = vector.shape_cast %95 : vector<1x5x140xf32> to vector<5x140xf32>
    %c0_118 = arith.constant 0 : index
    %c4_119 = arith.constant 4 : index
    %c0_120 = arith.constant 0 : index
    %c0_121 = arith.constant 0 : index
    %97 = vector.load %arg3[%c0_118, %c4_119, %c0_120, %c0_121] : memref<2x5x140x100xf32, #tpu.memory_space<vmem>>, vector<1x1x140x100xf32>
    %98 = vector.shape_cast %97 : vector<1x1x140x100xf32> to vector<140x100xf32>
    %cst_122 = arith.constant dense<0.000000e+00> : vector<5x100xf32>
    %99 = tpu.matmul %96, %98, %cst_122 {dimension_numbers = #tpu.dot_dimension_numbers<[1], [0], [0], [1], [0, 0, 1, 1], [], []>} : vector<5x140xf32>, vector<140x100xf32>, vector<5x100xf32> -> vector<5x100xf32>
    %100 = arith.addf %90, %99 : vector<5x100xf32>
    %c1_123 = arith.constant 1 : index
    %c4_124 = arith.constant 4 : index
    %c0_125 = arith.constant 0 : index
    %c0_126 = arith.constant 0 : index
    %101 = vector.load %arg3[%c1_123, %c4_124, %c0_125, %c0_126] : memref<2x5x140x100xf32, #tpu.memory_space<vmem>>, vector<1x1x140x100xf32>
    %102 = vector.shape_cast %101 : vector<1x1x140x100xf32> to vector<140x100xf32>
    %cst_127 = arith.constant dense<0.000000e+00> : vector<5x100xf32>
    %103 = tpu.matmul %96, %102, %cst_127 {dimension_numbers = #tpu.dot_dimension_numbers<[1], [0], [0], [1], [0, 0, 1, 1], [], []>} : vector<5x140xf32>, vector<140x100xf32>, vector<5x100xf32> -> vector<5x100xf32>
    %104 = arith.addf %94, %103 : vector<5x100xf32>
    %105 = arith.maximumf %100, %104 : vector<5x100xf32>
    %106 = arith.maximumf %52, %105 : vector<5x100xf32>
    %c0_128 = arith.constant 0 : index
    %c0_129 = arith.constant 0 : index
    %107 = vector.load %arg4[%c0_128, %c0_129] : memref<1x100xf32, #tpu.memory_space<vmem>>, vector<1x100xf32>
    %108 = vector.broadcast %107 : vector<1x100xf32> to vector<5x100xf32>
    %109 = arith.addf %106, %108 : vector<5x100xf32>
    %cst_130 = arith.constant 0.000000e+00 : f32
    %110 = vector.broadcast %cst_130 : f32 to vector<5x100xf32>
    %111 = arith.maximumf %109, %110 : vector<5x100xf32>
    %c0_131 = arith.constant 0 : index
    %c0_132 = arith.constant 0 : index
    %c0_133 = arith.constant 0 : index
    %112 = vector.load %arg5[%c0_131, %c0_132, %c0_133] : memref<1x5x100xf32, #tpu.memory_space<vmem>>, vector<1x5x100xf32>
    %113 = vector.shape_cast %112 : vector<1x5x100xf32> to vector<5x100xf32>
    %114 = vector.shape_cast %111 : vector<5x100xf32> to vector<1x5x100xf32>
    tpu.vector_store %arg5[%c0_131, %c0_132, %c0_133], %114 {strides = array<i32>} : memref<1x5x100xf32, #tpu.memory_space<vmem>>, vector<1x5x100xf32>,
    return
  }
  func.func @transform_0(%arg0: i32) -> (i32, i32, i32) {
    %c0_i32 = arith.constant 0 : i32
    %c0_i32_0 = arith.constant 0 : i32
    %c0_i32_1 = arith.constant 0 : i32
    return %arg0, %c0_i32, %c0_i32_0 : i32, i32, i32
  }
  func.func @transform_1(%arg0: i32) -> (i32, i32, i32) {
    %c0_i32 = arith.constant 0 : i32
    %c0_i32_0 = arith.constant 0 : i32
    %c0_i32_1 = arith.constant 0 : i32
    return %arg0, %c0_i32, %c0_i32_0 : i32, i32, i32
  }
  func.func @transform_2(%arg0: i32) -> (i32, i32, i32, i32) {
    %c0_i32 = arith.constant 0 : i32
    %c0_i32_0 = arith.constant 0 : i32
    %c0_i32_1 = arith.constant 0 : i32
    %c0_i32_2 = arith.constant 0 : i32
    %c0_i32_3 = arith.constant 0 : i32
    return %c0_i32, %c0_i32_0, %c0_i32_1, %c0_i32_2 : i32, i32, i32, i32
  }
  func.func @transform_3(%arg0: i32) -> (i32, i32) {
    %c0_i32 = arith.constant 0 : i32
    %c0_i32_0 = arith.constant 0 : i32
    %c0_i32_1 = arith.constant 0 : i32
    return %c0_i32, %c0_i32_0 : i32, i32
  }
  func.func @transform_4(%arg0: i32) -> (i32, i32, i32) {
    %c0_i32 = arith.constant 0 : i32
    %c0_i32_0 = arith.constant 0 : i32
    %c0_i32_1 = arith.constant 0 : i32
    return %arg0, %c0_i32, %c0_i32_0 : i32, i32, i32
  }
}

module attributes {stable_mosaic.version = 11 : i64} {
  func.func @_head_kernel(%arg0: i32, %arg1: memref<2x500xf32, #tpu.memory_space<vmem>>, %arg2: memref<500x50xf32, #tpu.memory_space<vmem>>, %arg3: memref<1x50xf32, #tpu.memory_space<vmem>>, %arg4: memref<50x36xf32, #tpu.memory_space<vmem>>, %arg5: memref<1x36xf32, #tpu.memory_space<vmem>>, %arg6: memref<2x36xf32, #tpu.memory_space<vmem>>) attributes {dimension_semantics = [#tpu.dimension_semantics<arbitrary>], iteration_bounds = array<i64: 1>, scalar_prefetch = 0 : i64, scratch_operands = 0 : i64, tpu.core_type = #tpu.core_type<tc>, window_params = [{pipeline_mode = #tpu.pipeline_mode<synchronous>, transform_indices = @transform_0, window_bounds = array<i64: 2, 500>}, {pipeline_mode = #tpu.pipeline_mode<synchronous>, transform_indices = @transform_1, window_bounds = array<i64: 500, 50>}, {pipeline_mode = #tpu.pipeline_mode<synchronous>, transform_indices = @transform_2, window_bounds = array<i64: 1, 50>}, {pipeline_mode = #tpu.pipeline_mode<synchronous>, transform_indices = @transform_3, window_bounds = array<i64: 50, 36>}, {pipeline_mode = #tpu.pipeline_mode<synchronous>, transform_indices = @transform_4, window_bounds = array<i64: 1, 36>}, {pipeline_mode = #tpu.pipeline_mode<synchronous>, transform_indices = @transform_5, window_bounds = array<i64: 2, 36>}]} {
    %c0 = arith.constant 0 : index
    %c0_0 = arith.constant 0 : index
    %0 = vector.load %arg1[%c0, %c0_0] : memref<2x500xf32, #tpu.memory_space<vmem>>, vector<2x500xf32>
    %c0_1 = arith.constant 0 : index
    %c0_2 = arith.constant 0 : index
    %1 = vector.load %arg2[%c0_1, %c0_2] : memref<500x50xf32, #tpu.memory_space<vmem>>, vector<500x50xf32>
    %cst = arith.constant dense<0.000000e+00> : vector<2x50xf32>
    %2 = tpu.matmul %0, %1, %cst {dimension_numbers = #tpu.dot_dimension_numbers<[1], [0], [0], [1], [0, 0, 1, 1], [], []>} : vector<2x500xf32>, vector<500x50xf32>, vector<2x50xf32> -> vector<2x50xf32>
    %c0_3 = arith.constant 0 : index
    %c0_4 = arith.constant 0 : index
    %3 = vector.load %arg3[%c0_3, %c0_4] : memref<1x50xf32, #tpu.memory_space<vmem>>, vector<1x50xf32>
    %4 = vector.broadcast %3 : vector<1x50xf32> to vector<2x50xf32>
    %5 = arith.addf %2, %4 : vector<2x50xf32>
    %cst_5 = arith.constant 0.000000e+00 : f32
    %6 = vector.broadcast %cst_5 : f32 to vector<2x50xf32>
    %7 = arith.maximumf %5, %6 : vector<2x50xf32>
    %c0_6 = arith.constant 0 : index
    %c0_7 = arith.constant 0 : index
    %8 = vector.load %arg4[%c0_6, %c0_7] : memref<50x36xf32, #tpu.memory_space<vmem>>, vector<50x36xf32>
    %cst_8 = arith.constant dense<0.000000e+00> : vector<2x36xf32>
    %9 = tpu.matmul %7, %8, %cst_8 {dimension_numbers = #tpu.dot_dimension_numbers<[1], [0], [0], [1], [0, 0, 1, 1], [], []>} : vector<2x50xf32>, vector<50x36xf32>, vector<2x36xf32> -> vector<2x36xf32>
    %c0_9 = arith.constant 0 : index
    %c0_10 = arith.constant 0 : index
    %10 = vector.load %arg5[%c0_9, %c0_10] : memref<1x36xf32, #tpu.memory_space<vmem>>, vector<1x36xf32>
    %11 = vector.broadcast %10 : vector<1x36xf32> to vector<2x36xf32>
    %12 = arith.addf %9, %11 : vector<2x36xf32>
    %cst_11 = arith.constant dense<0xFF800000> : vector<2xf32>
    %13 = vector.multi_reduction <maximumf>, %12, %cst_11 [1] : vector<2x36xf32> to vector<2xf32>
    %14 = vector.shape_cast %13 : vector<2xf32> to vector<2x1xf32>
    %15 = vector.broadcast %14 : vector<2x1xf32> to vector<2x36xf32>
    %16 = arith.subf %12, %15 : vector<2x36xf32>
    %17 = math.exp %16 : vector<2x36xf32>
    %cst_12 = arith.constant dense<0.000000e+00> : vector<2xf32>
    %18 = vector.multi_reduction <add>, %17, %cst_12 [1] : vector<2x36xf32> to vector<2xf32>
    %19 = vector.shape_cast %18 : vector<2xf32> to vector<2x1xf32>
    %20 = math.log %19 : vector<2x1xf32>
    %21 = vector.broadcast %20 : vector<2x1xf32> to vector<2x36xf32>
    %22 = arith.subf %16, %21 : vector<2x36xf32>
    %c0_13 = arith.constant 0 : index
    %c0_14 = arith.constant 0 : index
    %23 = vector.load %arg6[%c0_13, %c0_14] : memref<2x36xf32, #tpu.memory_space<vmem>>, vector<2x36xf32>
    tpu.vector_store %arg6[%c0_13, %c0_14], %22 {strides = array<i32>} : memref<2x36xf32, #tpu.memory_space<vmem>>, vector<2x36xf32>,
    return
  }
  func.func @transform_0(%arg0: i32) -> (i32, i32) {
    %c0_i32 = arith.constant 0 : i32
    %c0_i32_0 = arith.constant 0 : i32
    %c0_i32_1 = arith.constant 0 : i32
    return %c0_i32, %c0_i32_0 : i32, i32
  }
  func.func @transform_1(%arg0: i32) -> (i32, i32) {
    %c0_i32 = arith.constant 0 : i32
    %c0_i32_0 = arith.constant 0 : i32
    %c0_i32_1 = arith.constant 0 : i32
    return %c0_i32, %c0_i32_0 : i32, i32
  }
  func.func @transform_2(%arg0: i32) -> (i32, i32) {
    %c0_i32 = arith.constant 0 : i32
    %c0_i32_0 = arith.constant 0 : i32
    %c0_i32_1 = arith.constant 0 : i32
    return %c0_i32, %c0_i32_0 : i32, i32
  }
  func.func @transform_3(%arg0: i32) -> (i32, i32) {
    %c0_i32 = arith.constant 0 : i32
    %c0_i32_0 = arith.constant 0 : i32
    %c0_i32_1 = arith.constant 0 : i32
    return %c0_i32, %c0_i32_0 : i32, i32
  }
  func.func @transform_4(%arg0: i32) -> (i32, i32) {
    %c0_i32 = arith.constant 0 : i32
    %c0_i32_0 = arith.constant 0 : i32
    %c0_i32_1 = arith.constant 0 : i32
    return %c0_i32, %c0_i32_0 : i32, i32
  }
  func.func @transform_5(%arg0: i32) -> (i32, i32) {
    %c0_i32 = arith.constant 0 : i32
    %c0_i32_0 = arith.constant 0 : i32
    %c0_i32_1 = arith.constant 0 : i32
    return %c0_i32, %c0_i32_0 : i32, i32
  }
}

</mosaic_0001>

<bundles_post_ra>
// kernel: net_forward.5
= control target key start
LH: loop header
LB: loop body
LE: loop exit
PB: predicated region body
PF: predicated region fallthrough
CT: control target
= control target key end

     0   :  { %vm101_vm0 = vcmask 1043456   ;;  %s548_s0 = inlined_call_operand.vmem [shape: f32[2,500], index: 0, kind: input, shape index: {}]   ;;  %s549_s1 = inlined_call_operand.vmem [shape: f32[500,50], index: 1, kind: input, shape index: {}]   ;;  %s550_s2 = inlined_call_operand.vmem [shape: f32[1,50], index: 2, kind: input, shape index: {}]   ;;  %s551_s3 = inlined_call_operand.vmem [shape: f32[50,36], index: 3, kind: input, shape index: {}]   ;;  %s552_s4 = inlined_call_operand.vmem [shape: f32[1,36], index: 4, kind: input, shape index: {}]   ;;  %s553_s5 = inlined_call_operand.hbm [shape: f32[2,36], index: 5, kind: output, shape index: {}]  }
   0x1   :  { %v69_v0 = vld [vmem:[%s549_s1 + $0x178] sm:$0xff]  ;;  %v68_v2 = vld [vmem:[%s549_s1 + $0x170] sm:$0xff]  ;;  %v67_v5 = vld [vmem:[%s549_s1 + $0x168] sm:$0xff] }
   0x2   :  { %v37_v1 = vld [vmem:[%s549_s1 + $0x78] sm:$0xff]  ;;  %145 = vmatpush.msra.mxu2 %v69_v0  ;;  %v36_v3 = vld [vmem:[%s549_s1 + $0x70] sm:$0xff]  ;;  %v35_v7 = vld [vmem:[%s549_s1 + $0x68] sm:$0xff] }
   0x3   :  { %105 = vmatpush.msra.mxu0 %v37_v1  ;;  %v53_v4 = vld [vmem:[%s549_s1 + $0xf8] sm:$0xff]  ;;  %v84_v6 = vld [vmem:[%s549_s1 + $0x1f0] sm:$0xf]  ;;  %v83_v9 = vld [vmem:[%s549_s1 + $0x1e8] sm:$0xff] }
   0x4   :  { %125 = vmatpush.msra.mxu1 %v53_v4  ;;  %v52_v8 = vld [vmem:[%s549_s1 + $0xf0] sm:$0xff]  ;;  %146 = vmatpush.msra.mxu2 %v68_v2  ;;  %v66_v10 = vld [vmem:[%s549_s1 + $0x160] sm:$0xff]  ;;  %v51_v12 = vld [vmem:[%s549_s1 + $0xe8] sm:$0xff] }
   0x5   :  { %106 = vmatpush.msra.mxu0 %v36_v3  ;;  %255 = vmatpush.msk.msra.mxu3 %vm101_vm0, %v84_v6  ;;  %v34_v11 = vld [vmem:[%s549_s1 + $0x60] sm:$0xff]  ;;  %v65_v15 = vld [vmem:[%s549_s1 + $0x158] sm:$0xff]  ;;  %v64_v19 = vld [vmem:[%s549_s1 + $0x150] sm:$0xff] }
   0x6   :  { %126 = vmatpush.msra.mxu1 %v52_v8  ;;  %147 = vmatpush.msra.mxu2 %v67_v5  ;;  %v82_v13 = vld [vmem:[%s549_s1 + $0x1e0] sm:$0xff]  ;;  %v33_v16 = vld [vmem:[%s549_s1 + $0x58] sm:$0xff]  ;;  %v32_v20 = vld [vmem:[%s549_s1 + $0x50] sm:$0xff] }
   0x7   :  { %107 = vmatpush.msra.mxu0 %v35_v7  ;;  %v50_v14 = vld [vmem:[%s549_s1 + $0xe0] sm:$0xff]  ;;  %167 = vmatpush.msra.mxu3 %v83_v9  ;;  %v81_v17 = vld [vmem:[%s549_s1 + $0x1d8] sm:$0xff]  ;;  %v80_v21 = vld [vmem:[%s549_s1 + $0x1d0] sm:$0xff] }
   0x8   :  { %127 = vmatpush.msra.mxu1 %v51_v12  ;;  %148 = vmatpush.msra.mxu2 %v66_v10  ;;  %v49_v18 = vld [vmem:[%s549_s1 + $0xd8] sm:$0xff]  ;;  %v48_v22 = vld [vmem:[%s549_s1 + $0xd0] sm:$0xff]  ;;  %v63_v23 = vld [vmem:[%s549_s1 + $0x148] sm:$0xff] }
   0x9   :  { %108 = vmatpush.msra.mxu0 %v34_v11  ;;  %168 = vmatpush.msra.mxu3 %v82_v13  ;;  %v31_v24 = vld [vmem:[%s549_s1 + $0x48] sm:$0xff]  ;;  %v62_v27 = vld [vmem:[%s549_s1 + $0x140] sm:$0xff]  ;;  %v61_v31 = vld [vmem:[%s549_s1 + $0x138] sm:$0xff] }
   0xa   :  { %128 = vmatpush.msra.mxu1 %v50_v14  ;;  %149 = vmatpush.msra.mxu2 %v65_v15  ;;  %v79_v25 = vld [vmem:[%s549_s1 + $0x1c8] sm:$0xff]  ;;  %v30_v28 = vld [vmem:[%s549_s1 + $0x40] sm:$0xff]  ;;  %v29_v32 = vld [vmem:[%s549_s1 + $0x38] sm:$0xff] }
   0xb   :  { %109 = vmatpush.msra.mxu0 %v33_v16  ;;  %169 = vmatpush.msra.mxu3 %v81_v17  ;;  %v47_v26 = vld [vmem:[%s549_s1 + $0xc8] sm:$0xff]  ;;  %v78_v29 = vld [vmem:[%s549_s1 + $0x1c0] sm:$0xff]  ;;  %v77_v33 = vld [vmem:[%s549_s1 + $0x1b8] sm:$0xff] }
   0xc   :  { %129 = vmatpush.msra.mxu1 %v49_v18  ;;  %150 = vmatpush.msra.mxu2 %v64_v19  ;;  %v46_v30 = vld [vmem:[%s549_s1 + $0xc0] sm:$0xff]  ;;  %v45_v34 = vld [vmem:[%s549_s1 + $0xb8] sm:$0xff]  ;;  %v60_v35 = vld [vmem:[%s549_s1 + $0x130] sm:$0xff] }
   0xd   :  { %110 = vmatpush.msra.mxu0 %v32_v20  ;;  %170 = vmatpush.msra.mxu3 %v80_v21  ;;  %v28_v36 = vld [vmem:[%s549_s1 + $0x30] sm:$0xff]  ;;  %v59_v39 = vld [vmem:[%s549_s1 + $0x128] sm:$0xff]  ;;  %v21_v43 = vld [vmem:[%s548_s0] sm:$0xff] }
   0xe   :  { %130 = vmatpush.msra.mxu1 %v48_v22  ;;  %151 = vmatpush.msra.mxu2 %v63_v23  ;;  %v76_v37 = vld [vmem:[%s549_s1 + $0x1b0] sm:$0xff]  ;;  %v27_v40 = vld [vmem:[%s549_s1 + $0x28] sm:$0xff]  ;;  %v58_v44 = vld [vmem:[%s549_s1 + $0x120] sm:$0xff]  ;;  %90 = vst [vmem:[#allocation1] ss:$4 sm:$0xff] %v21_v43 }
   0xf   :  { %111 = vmatpush.msra.mxu0 %v31_v24  ;;  %171 = vmatpush.msra.mxu3 %v79_v25  ;;  %v44_v38 = vld [vmem:[%s549_s1 + $0xb0] sm:$0xff]  ;;  %v75_v41 = vld [vmem:[%s549_s1 + $0x1a8] sm:$0xff]  ;;  %v26_v45 = vld [vmem:[%s549_s1 + $0x20] sm:$0xff] }
  0x10   :  { %131 = vmatpush.msra.mxu1 %v47_v26  ;;  %152 = vmatpush.msra.mxu2 %v62_v27  ;;  %v43_v42 = vld [vmem:[%s549_s1 + $0xa8] sm:$0xff]  ;;  %v57_v46 = vld [vmem:[%s549_s1 + $0x118] sm:$0xff]  ;;  %v74_v47 = vld [vmem:[%s549_s1 + $0x1a0] sm:$0xff] }
  0x11   :  { %112 = vmatpush.msra.mxu0 %v30_v28  ;;  %172 = vmatpush.msra.mxu3 %v78_v29  ;;  %v42_v48 = vld [vmem:[%s549_s1 + $0xa0] sm:$0xff]  ;;  %v25_v49 = vld [vmem:[%s549_s1 + $0x18] sm:$0xff] }
  0x12   :  { %132 = vmatpush.msra.mxu1 %v46_v30  ;;  %153 = vmatpush.msra.mxu2 %v61_v31 }
  0x13   :  { %113 = vmatpush.msra.mxu0 %v29_v32  ;;  %173 = vmatpush.msra.mxu3 %v77_v33 }
  0x14   :  { %133 = vmatpush.msra.mxu1 %v45_v34  ;;  %154 = vmatpush.msra.mxu2 %v60_v35 }
  0x15   :  { %114 = vmatpush.msra.mxu0 %v28_v36  ;;  %174 = vmatpush.msra.mxu3 %v76_v37 }
  0x16   :  { %134 = vmatpush.msra.mxu1 %v44_v38  ;;  %155 = vmatpush.msra.mxu2 %v59_v39 }
  0x17   :  { %115 = vmatpush.msra.mxu0 %v27_v40  ;;  %175 = vmatpush.msra.mxu3 %v75_v41 }
  0x18   :  { %135 = vmatpush.msra.mxu1 %v43_v42 }
  0x19   :  { %10 = vsyncpa [#allocation3], 0  ;;  %156 = vmatpush.msra.mxu2 %v58_v44  ;;  %116 = vmatpush.msra.mxu0 %v26_v45  ;;  %v73_v50 = vld [vmem:[%s549_s1 + $0x198] sm:$0xff]  ;;  %v56_v52 = vld [vmem:[%s549_s1 + $0x110] sm:$0xff]  ;;  %vm98_vm1 = vcmask 949248   ;;  %vm201_vm2 = vcmask 1041408  }
  0x1a   :  { %v41_v51 = vld [vmem:[%s549_s1 + $0x98] sm:$0xff]  ;;  %176 = vmatpush.msra.mxu3 %v74_v47  ;;  %136 = vmatpush.msra.mxu1 %v42_v48  ;;  %v24_v53 = vld [vmem:[%s549_s1 + $0x10] sm:$0xff]  ;;  %v55_v56 = vld [vmem:[%s549_s1 + $0x108] sm:$0xff]  ;;  %vm197_vm3 = vcmask 408576   ;;  %vm225_vm4 = vcmask 287744   ;;  %s246_s12 = sshll.u32 %s553_s5, 4  ;;  %s247_s12 = int_to_ptr.hbm [resolvable:$true] %s246_s12 }
  0x1b   :  { %157 = vmatpush.msra.mxu2 %v57_v46  ;;  %117 = vmatpush.msra.mxu0 %v25_v49  ;;  %v72_v54 = vld [vmem:[%s549_s1 + $0x190] sm:$0xff]  ;;  %v23_v57 = vld [vmem:[%s549_s1 + $0x8] sm:$0xff]  ;;  %v54_v60 = vld [vmem:[%s549_s1 + $0x100] sm:$0xff] }
  0x1c   :  { %v40_v55 = vld [vmem:[%s549_s1 + $0x90] sm:$0xff]  ;;  %177 = vmatpush.msra.mxu3 %v73_v50  ;;  %137 = vmatpush.msra.mxu1 %v41_v51  ;;  %v71_v58 = vld [vmem:[%s549_s1 + $0x188] sm:$0xff]  ;;  %v22_v61 = vld [vmem:[%s549_s1] sm:$0xff] }
  0x1d   :  { %158 = vmatpush.msra.mxu2 %v56_v52  ;;  %118 = vmatpush.msra.mxu0 %v24_v53  ;;  %v39_v59 = vld [vmem:[%s549_s1 + $0x88] sm:$0xff]  ;;  %v93_v62 = vld.sshfl [vmem:[#allocation1 + $0x10] sm:$0xff pattern:$0x73625140]  ;;  %v70_v63 = vld [vmem:[%s549_s1 + $0x180] sm:$0xff] }
  0x1e   :  { %178 = vmatpush.msra.mxu3 %v72_v54  ;;  %138 = vmatpush.msra.mxu1 %v40_v55  ;;  %v91_v0 = vld.sshfl [vmem:[#allocation1] sm:$0xff pattern:$0x73625140]  ;;  %v94_v1 = vld.sshfl [vmem:[#allocation1 + $0x18] sm:$0xff pattern:$0x73625140] }
  0x1f   :  { %159 = vmatpush.msra.mxu2 %v55_v56  ;;  %119 = vmatpush.msra.mxu0 %v23_v57  ;;  %v38_v2 = vld [vmem:[%s549_s1 + $0x80] sm:$0xff]  ;;  %v192_v3 = vld [vmem:[%s551_s3 + $0x30] sm:$0x3]  ;;  %v92_v4 = vld.sshfl [vmem:[#allocation1 + $0x8] sm:$0xff pattern:$0x73625140] }
  0x20   :  { %179 = vmatpush.msra.mxu3 %v71_v58  ;;  %139 = vmatpush.msra.mxu1 %v39_v59  ;;  %v191_v5 = vld [vmem:[%s551_s3 + $0x28] sm:$0xff]  ;;  %v190_v6 = vld [vmem:[%s551_s3 + $0x20] sm:$0xff]  ;;  %v189_v7 = vld [vmem:[%s551_s3 + $0x18] sm:$0xff] }
  0x21   :  { %160 = vmatpush.msra.mxu2 %v54_v60  ;;  %120 = vmatpush.msra.mxu0 %v22_v61  ;;  %v188_v8 = vld [vmem:[%s551_s3 + $0x10] sm:$0xff]  ;;  %v187_v9 = vld [vmem:[%s551_s3 + $0x8] sm:$0xff]  ;;  %v186_v10 = vld [vmem:[%s551_s3] sm:$0xff] }
  0x22   :  { %161 = vmatmul.f32.vlgmr.msra.gmra.mxu2 %v93_v62  ;;  %180 = vmatpush.msra.mxu3 %v70_v63  ;;  %v260_v11 = vld [vmem:[%s550_s2] ss:$0 sm:$0xff]  ;;  %s292_s2 = smov [#allocation2]  }
  0x23   :  { %121 = vmatmul.f32.vlgmr.msra.gmra.mxu0 %v91_v0  ;;  %256 = vmatmul.msk.f32.vlgmr.msra.gmra.mxu3 %vm98_vm1, %v94_v1  ;;  %v261_v21 = vld [vmem:[%s552_s4] ss:$0 sm:$0xff]  ;;  %s244_s3 = sshll.u32 %s292_s2, 4  ;;  %s245_s3 = int_to_ptr.vmem [resolvable:$true] %s244_s3 }
  0x24   :  { %140 = vmatpush.msra.mxu1 %v38_v2  ;;  %257 = vmatpush.msk.msrb.mxu3 %vm201_vm2, %v192_v3 }
  0x25   :  { %141 = vmatmul.f32.vlgmr.msra.gmra.mxu1 %v92_v4 }
  0x26   :  { %215 = vmatpush.msrb.mxu3 %v191_v5 }
  0x28   :  { %216 = vmatpush.msrb.mxu3 %v190_v6 }
  0x2a   :  { %217 = vmatpush.msrb.mxu3 %v189_v7 }
  0x2c   :  { %218 = vmatpush.msrb.mxu3 %v188_v8 }
  0x2e   :  { %219 = vmatpush.msrb.mxu3 %v187_v9 }
  0x30   :  { %220 = vmatpush.msrb.mxu3 %v186_v10 }
  0xa0   :  { %v122_v12 = vpop.f32.mrf.mxu0 }
  0xa1   :  { %v123_v13 = vadd.f32 %v260_v11, %v122_v12 }
  0xa2   :  { %v142_v14 = vpop.f32.mrf.mxu1 }
  0xa3   :  { %v143_v15 = vadd.f32 %v142_v14, %v123_v13 }
  0xa5   :  { %v162_v16 = vpop.f32.mrf.mxu2 }
  0xa6   :  { %v163_v17 = vadd.f32 %v162_v16, %v143_v15  ;;  %v182_v18 = vpop.f32.mrf.mxu3 }
  0xa8   :  { %v183_v19 = vadd.f32 %v182_v18, %v163_v17 }
  0xaa   :  { %v185_v20 = vmax.f32 %v183_v19, 0.0 }
  0xac   :  { %258 = vmatmul.msk.f32.vlgmr.msrb.gmra.mxu3 %vm197_vm3, %v185_v20 }
 0x12f   :  { %v222_v22 = vpop.f32.mrf.mxu3 }
 0x130   :  { %v223_v23 = vadd.f32 %v261_v21, %v222_v22 }
 0x132   :  { %v226_v24 = vsel %vm225_vm4, %v223_v23, -inf }
 0x133   :  { %227 = vmax.xlane.f32.xlu0 %v226_v24 }
 0x1a6   :  { %v228_v25 = vpop.xlane.xlu0 %227 }
 0x1a7   :  { %v229_v26 = vsub.f32 %v223_v23, %v228_v25 }
 0x1a9   :  { %v230_v27 = vmul.f32 1.442695, %v229_v26 }
 0x1ab   :  { %262 = vpow2.f32 %v230_v27 }
 0x1b1   :  { %v263_v28 = vpop.eup %262 }
 0x1b2   :  { %v232_v29 = vsel %vm225_vm4, %v263_v28, 0.0 }
 0x1b3   :  { %233 = vadd.xlane.f32.xlu0 %v232_v29 }
 0x226   :  { %v234_v30 = vpop.xlane.xlu0 %233 }
 0x227   :  { %264 = vlog2.f32 %v234_v30 }
 0x22d   :  { %v265_v31 = vpop.eup %264 }
 0x22e   :  { %v236_v32 = vmul.f32 0.6931472, %v265_v31 }
 0x230   :  { %v237_v33 = vsub.f32 %v229_v26, %v236_v32 }
 0x232   :  { %238 = vst.msk [vmem:[#allocation2] sm:$0x3] %vm225_vm4, %v237_v33 }
 0x233   :  { %249 = dma.vmem_to_hbm [thread:$0]  %s245_s3, 32, %s247_s12, [#allocation3]  }
 0x234   :  { %290 = dma.done.wait [#allocation3], 32  }
 0x235   :  { %291 = vsyncadd [#allocation3], 4294967264 }
 0x236   :  { %254 = vsyncpa [#allocation3], 1 }

// kernel: net_forward.4
= control target key start
LH: loop header
LB: loop body
LE: loop exit
PB: predicated region body
PF: predicated region fallthrough
CT: control target
= control target key end

     0   :  { %s1629_s15 = smov 0   ;;  %s3031_s0 = inlined_call_operand.vmem [shape: f32[2,7,140], index: 0, kind: input, shape index: {}]   ;;  %s3032_s1 = inlined_call_operand.vmem [shape: f32[2,7,140], index: 1, kind: input, shape index: {}]   ;;  %s3033_s2 = inlined_call_operand.vmem [shape: f32[2,5,140,100], index: 2, kind: input, shape index: {}]   ;;  %s3034_s3 = inlined_call_operand.vmem [shape: f32[1,100], index: 3, kind: input, shape index: {}]   ;;  %s3035_s4 = inlined_call_operand.vmem [shape: f32[2,5,100], index: 4, kind: output, shape index: {}]  }
   0x1 LB: > { %s1371_s16 = sadd.s32 4294967295, %s1602_s15   ;;  %p1375_p0 = scmp.ge.s32.totalorder %s1602_s15, 1  ;;  %s1602_s15 = sphi %s1629_s15, %s14_s15  }
   0x2   : > { %p172_p1 = scmp.lt.s32.totalorder %s1602_s15, 3 }
   0x4   : > { %p173_p2 = pnand %p1375_p0, %p172_p1 }
   0x6   : > { %176 = sbr.rel (%p173_p2) target bundleno = 378 (0x17a), region = 36 }
   0xb   : > { %v1640_v0 = vld [vmem:[%s3033_s2 + $0x108] sm:$0xff]  ;;  %v1645_v1 = vld [vmem:[%s3033_s2 + $0x78] sm:$0xff]  ;;  %vm280_vm0 = vcmask 1043456   ;;  %p202_p3 = scmp.lt.s32.totalorder %s1371_s16, 1  ;;  %v1657_v3 = vld [vmem:[%s3033_s2 + $0x100] sm:$0xff]  ;;  %vm276_vm1 = vcmask 97280  }
   0xc   : > { %v1650_v2 = vld [vmem:[%s3033_s2 + $0x88] sm:$0xf]  ;;  %284 = vmatpush.msra.mxu0 %v1640_v0  ;;  %330 = vmatpush.msra.mxu2 %v1645_v1  ;;  %v1662_v4 = vld [vmem:[%s3033_s2 + $0x70] sm:$0xff]  ;;  %v1667_v5 = vld [vmem:[%s3033_s2 + $0x80] sm:$0xff]  ;;  %vm1304_vm2 = vcmask 815104  }
   0xd   : > { %1419 = vmatpush.msk.msra.mxu3 %vm280_vm0, %v1650_v2  ;;  %v1674_v6 = vld [vmem:[%s3033_s2 + $0x3e8] sm:$0xf]  ;;  %v1679_v7 = vld [vmem:[%s3033_s2 + $0xf8] sm:$0xff]  ;;  %s3356_s16 = smov (!%p202_p3, %s1371_s16), 1  ;;  %v1694_v9 = vld [vmem:[%s3033_s2 + $0x3e0] sm:$0xff] }
   0xe   : > { %285 = vmatpush.msra.mxu0 %v1657_v3  ;;  %331 = vmatpush.msra.mxu2 %v1662_v4  ;;  %v1688_v8 = vld [vmem:[%s3033_s2 + $0x68] sm:$0xff]  ;;  %v1699_v10 = vld [vmem:[%s3033_s2 + $0xf0] sm:$0xff]  ;;  %s1585_s13 = sshll.u32 %s3356_s16, 4  ;;  %v1705_v11 = vld [vmem:[%s3033_s2 + $0x3d8] sm:$0xff]  ;;  %s1380_s29 = sshll.u32 %s3356_s16, 3 }
   0xf   : > { %365 = vmatpush.msra.mxu3 %v1667_v5  ;;  %v1713_v12 = vld [vmem:[%s3033_s2 + $0x60] sm:$0xff]  ;;  %s1720_s22 = scalar_lea.vmem %s3031_s0, %s1585_s13  ;;  %392 = vmatpush.msra.mxu1 %v1705_v11  ;;  %v1730_v14 = vld [vmem:[%s3033_s2 + $0x348] sm:$0xff]  ;;  %v1742_v16 = vld [vmem:[%s3033_s2 + $0x58] sm:$0xff]  ;;  %s1983_s20 = scalar_lea.vmem %s3032_s1, %s1585_s13 }
  0x10   : > { %286 = vmatpush.msra.mxu0 %v1679_v7  ;;  %332 = vmatpush.msra.mxu2 %v1688_v8  ;;  %v1724_v13 = vld [vmem:[%s1720_s22 + $0x8] sm:$0x1f]  ;;  %v1747_v17 = vld [vmem:[%s3033_s2 + $0x3d0] sm:$0xff]  ;;  %v1755_v18 = vld [vmem:[%s3033_s2 + $0x340] sm:$0xff]  ;;  %s215_s6 = scalar_lea.vmem %s3035_s4, %s1380_s29 }
  0x11   : > { %1439 = vmatpush.msk.msrb.mxu3 %vm280_vm0, %v1674_v6  ;;  %v1735_v15 = vld [vmem:[%s3033_s2 + $0xe8] sm:$0xff]  ;;  %v1760_v19 = vld [vmem:[%s3033_s2 + $0xe0] sm:$0xff]  ;;  %v1767_v20 = vld [vmem:[%s3033_s2 + $0x50] sm:$0xff]  ;;  %393 = vmatpush.msra.mxu1 %v1747_v17 }
  0x12   : > { %287 = vmatpush.msra.mxu0 %v1699_v10  ;;  %333 = vmatpush.msra.mxu2 %v1713_v12  ;;  %v1772_v21 = vld [vmem:[%s3033_s2 + $0x3c8] sm:$0xff]  ;;  %v1779_v22 = vld [vmem:[%s3033_s2 + $0x338] sm:$0xff]  ;;  %v1796_v25 = vld [vmem:[%s3033_s2 + $0x3c0] sm:$0xff] }
  0x13   : > { %427 = vmatpush.msrb.mxu3 %v1694_v9  ;;  %v1784_v23 = vld [vmem:[%s3033_s2 + $0xd8] sm:$0xff]  ;;  %v1791_v24 = vld [vmem:[%s3033_s2 + $0x48] sm:$0xff]  ;;  %394 = vmatpush.msra.mxu1 %v1772_v21  ;;  %v1803_v26 = vld [vmem:[%s3033_s2 + $0x330] sm:$0xff] }
  0x14   : > { %1420 = vmatmul.msk.f32.vlgmr.msra.gmra.mxu3 %vm276_vm1, %v1724_v13  ;;  %288 = vmatpush.msra.mxu0 %v1735_v15  ;;  %3143 = vst [vmem:[#allocation2_spill] sm:$0xff] %v1803_v26  ;;  %v1808_v27 = vld [vmem:[%s3033_s2 + $0xd0] sm:$0xff]  ;;  %v1815_v28 = vld [vmem:[%s3033_s2 + $0x40] sm:$0xff]  ;;  %v1820_v29 = vld [vmem:[%s3033_s2 + $0x3b8] sm:$0xff] }
  0x15   : > { %435 = vmatpush.msra.mxu3 %v1730_v14  ;;  %334 = vmatpush.msra.mxu2 %v1742_v16  ;;  %v1827_v30 = vld [vmem:[%s3033_s2 + $0x328] sm:$0xff]  ;;  %v1839_v32 = vld [vmem:[%s3033_s2 + $0x38] sm:$0xff]  ;;  %v1844_v33 = vld [vmem:[%s3033_s2 + $0x3b0] sm:$0xff] }
  0x16   : > { %289 = vmatpush.msra.mxu0 %v1760_v19  ;;  %395 = vmatpush.msra.mxu1 %v1796_v25  ;;  %3144 = vst [vmem:[#allocation3_spill] sm:$0xff] %v1827_v30  ;;  %v1832_v31 = vld [vmem:[%s3033_s2 + $0xc8] sm:$0xff]  ;;  %v1851_v34 = vld [vmem:[%s3033_s2 + $0x320] sm:$0xff]  ;;  %v1863_v36 = vld [vmem:[%s3033_s2 + $0x30] sm:$0xff] }
  0x17   : > { %436 = vmatpush.msra.mxu3 %v1755_v18  ;;  %335 = vmatpush.msra.mxu2 %v1767_v20  ;;  %3145 = vst [vmem:[#allocation4_spill] sm:$0xff] %v1851_v34  ;;  %v1856_v35 = vld [vmem:[%s3033_s2 + $0xc0] sm:$0xff]  ;;  %v1868_v37 = vld [vmem:[%s3033_s2 + $0x3a8] sm:$0xff]  ;;  %v1875_v38 = vld [vmem:[%s3033_s2 + $0x318] sm:$0xff] }
  0x18   : > { %290 = vmatpush.msra.mxu0 %v1784_v23  ;;  %396 = vmatpush.msra.mxu1 %v1820_v29  ;;  %3146 = vst [vmem:[#allocation5_spill] sm:$0xff] %v1868_v37  ;;  %v1880_v39 = vld [vmem:[%s3033_s2 + $0xb8] sm:$0xff]  ;;  %v1887_v40 = vld [vmem:[%s3033_s2 + $0x28] sm:$0xff]  ;;  %v1892_v41 = vld [vmem:[%s3033_s2 + $0x3a0] sm:$0xff] }
  0x19   : > { %437 = vmatpush.msra.mxu3 %v1779_v22  ;;  %336 = vmatpush.msra.mxu2 %v1791_v24  ;;  %3147 = vst [vmem:[#allocation6_spill] sm:$0xff] %v1875_v38  ;;  %v1899_v42 = vld [vmem:[%s3033_s2 + $0x310] sm:$0xff]  ;;  %v1911_v44 = vld [vmem:[%s3033_s2 + $0x20] sm:$0xff]  ;;  %v1916_v45 = vld [vmem:[%s3033_s2 + $0x398] sm:$0xff] }
  0x1a   : > { %291 = vmatpush.msra.mxu0 %v1808_v27  ;;  %397 = vmatpush.msra.mxu1 %v1844_v33  ;;  %3148 = vst [vmem:[#allocation7_spill] sm:$0xff] %v1892_v41  ;;  %v1904_v43 = vld [vmem:[%s3033_s2 + $0xb0] sm:$0xff]  ;;  %v1923_v46 = vld [vmem:[%s3033_s2 + $0x308] sm:$0xff]  ;;  %v1935_v48 = vld [vmem:[%s3033_s2 + $0x18] sm:$0xff] }
  0x1b   : > { %438 = vmatpush.msra.mxu3 %v1803_v26  ;;  %337 = vmatpush.msra.mxu2 %v1815_v28  ;;  %3149 = vst [vmem:[#allocation8_spill] sm:$0xff] %v1899_v42  ;;  %v1928_v47 = vld [vmem:[%s3033_s2 + $0xa8] sm:$0xff]  ;;  %v1940_v49 = vld [vmem:[%s3033_s2 + $0x390] sm:$0xff]  ;;  %v1947_v50 = vld [vmem:[%s3033_s2 + $0x300] sm:$0xff] }
  0x1c   : > { %292 = vmatpush.msra.mxu0 %v1832_v31  ;;  %398 = vmatpush.msra.mxu1 %v1868_v37  ;;  %3150 = vst [vmem:[#allocation9_spill] sm:$0xff] %v1916_v45  ;;  %v1952_v51 = vld [vmem:[%s3033_s2 + $0xa0] sm:$0xff]  ;;  %v1959_v52 = vld [vmem:[%s3033_s2 + $0x10] sm:$0xff]  ;;  %v1964_v53 = vld [vmem:[%s3033_s2 + $0x388] sm:$0xff] }
  0x1d   : > { %439 = vmatpush.msra.mxu3 %v1827_v30  ;;  %338 = vmatpush.msra.mxu2 %v1839_v32  ;;  %3151 = vst [vmem:[#allocation10_spill] sm:$0xff] %v1923_v46  ;;  %v1971_v54 = vld [vmem:[%s3033_s2 + $0x2f8] sm:$0xff]  ;;  %v1990_v56 = vld [vmem:[%s3033_s2 + $0x8] sm:$0xff]  ;;  %v1995_v57 = vld [vmem:[%s3033_s2 + $0x380] sm:$0xff] }
  0x1e   : > { %293 = vmatpush.msra.mxu0 %v1856_v35  ;;  %399 = vmatpush.msra.mxu1 %v1892_v41  ;;  %3152 = vst [vmem:[#allocation11_spill] sm:$0xff] %v1940_v49  ;;  %v1976_v55 = vld [vmem:[%s3033_s2 + $0x98] sm:$0xff]  ;;  %v2002_v58 = vld [vmem:[%s3033_s2 + $0x2f0] sm:$0xff]  ;;  %v2012_v60 = vld [vmem:[%s1983_s20 + $0x8] sm:$0x1f] }
  0x1f   : > { %440 = vmatpush.msra.mxu3 %v1851_v34  ;;  %339 = vmatpush.msra.mxu2 %v1863_v36  ;;  %3153 = vst [vmem:[#allocation12_spill] sm:$0xff] %v1947_v50  ;;  %v2007_v59 = vld [vmem:[%s3033_s2 + $0x90] sm:$0xff]  ;;  %v2017_v61 = vld [vmem:[%s3033_s2] sm:$0xff]  ;;  %v2024_v62 = vld [vmem:[%s3033_s2 + $0x378] sm:$0xff] }
  0x20   : > { %294 = vmatpush.msra.mxu0 %v1880_v39  ;;  %400 = vmatpush.msra.mxu1 %v1916_v45  ;;  %3154 = vst [vmem:[#allocation13_spill] sm:$0xff] %v1964_v53  ;;  %v2029_v63 = vld [vmem:[%s3033_s2 + $0x2e8] sm:$0xff]  ;;  %v2109_v34 = vld [vmem:[%s3033_s2 + $0x358] sm:$0xf]  ;;  %v2130_v45 = vld [vmem:[%s3033_s2 + $0x350] sm:$0xff] }
  0x21   : > { %441 = vmatpush.msra.mxu3 %v1875_v38  ;;  %340 = vmatpush.msra.mxu2 %v1887_v40  ;;  %3155 = vst [vmem:[#allocation14_spill] sm:$0xff] %v1971_v54  ;;  %v216_v38 = vld [vmem:[%s1720_s22] sm:$0x1f]  ;;  %v476_v26 = vld [vmem:[%s1720_s22 + $0x8] sm:$0x3e] }
  0x22   : > { %295 = vmatpush.msra.mxu0 %v1904_v43  ;;  %401 = vmatpush.msra.mxu1 %v1940_v49  ;;  %3156 = vst [vmem:[#allocation15_spill] sm:$0xff] %v1995_v57  ;;  %v2092_v49 = vld [vmem:[%s3033_s2 + $0x188] sm:$0xff]  ;;  %v2149_v30 = vld [vmem:[%s3033_s2 + $0x1a0] sm:$0xff] }
  0x23   : > { %442 = vmatpush.msra.mxu3 %v1899_v42  ;;  %341 = vmatpush.msra.mxu2 %v1911_v44  ;;  %3157 = vst [vmem:[#allocation16_spill] sm:$0xff] %v2002_v58  ;;  %v2064_v42 = vld [vmem:[%s3033_s2 + $0x190] sm:$0xff]  ;;  %v2175_v41 = vld [vmem:[%s3033_s2 + $0x460] sm:$0xff] }
  0x24   : > { %296 = vmatpush.msra.mxu0 %v1928_v47  ;;  %402 = vmatpush.msra.mxu1 %v1964_v53  ;;  %3158 = vst [vmem:[#allocation17_spill] sm:$0xff] %v2024_v62  ;;  %v2083_v53 = vld [vmem:[%s3033_s2 + $0x110] sm:$0xff]  ;;  %v2498_v37 = vld [vmem:[%s3033_s2 + $0x1c0] sm:$0xff] }
  0x25   : > { %443 = vmatpush.msra.mxu3 %v1923_v46  ;;  %342 = vmatpush.msra.mxu2 %v1935_v48  ;;  %3159 = vst [vmem:[#allocation18_spill] sm:$0xff] %v2029_v63  ;;  %v2047_v46 = vld [vmem:[%s3033_s2 + $0x370] sm:$0xff] }
  0x26   : > { %297 = vmatpush.msra.mxu0 %v1952_v51  ;;  %403 = vmatpush.msra.mxu1 %v1995_v57  ;;  %3161 = vst [vmem:[#allocation20_spill] sm:$0xff] %v2047_v46  ;;  %v2059_v57 = vld [vmem:[%s3033_s2 + $0x118] sm:$0xf] }
  0x27   : > { %444 = vmatpush.msra.mxu3 %v1947_v50  ;;  %343 = vmatpush.msra.mxu2 %v1959_v52  ;;  %v2039_v50 = vld [vmem:[%s3033_s2 + $0x198] sm:$0xff]  ;;  %3163 = vst [vmem:[#allocation22_spill] sm:$0xff] %v2064_v42 }
  0x28   : > { %298 = vmatpush.msra.mxu0 %v1976_v55  ;;  %1440 = vmatmul.msk.f32.vlgmr.msrb.gmra.mxu3 %vm276_vm1, %v2012_v60  ;;  %3166 = vst [vmem:[#allocation25_spill] sm:$0xff] %v2092_v49 }
  0x29   : > { %445 = vmatpush.msra.mxu3 %v1971_v54  ;;  %344 = vmatpush.msra.mxu2 %v1990_v56  ;;  %v2034_v54 = vld [vmem:[%s1983_s20] sm:$0x1f]  ;;  %3173 = vst [vmem:[#allocation32_spill] sm:$0xff] %v2149_v30 }
  0x2a   : > { %299 = vmatpush.msra.mxu0 %v2007_v59  ;;  %3160 = vst [vmem:[#allocation19_spill] sm:$0xff] %v2034_v54  ;;  %404 = vmatpush.msra.mxu1 %v2024_v62  ;;  %v2071_v62 = vld [vmem:[%s3033_s2 + $0x368] sm:$0xff] }
  0x2b   : > { %446 = vmatpush.msra.mxu3 %v2002_v58  ;;  %345 = vmatpush.msra.mxu2 %v2017_v61  ;;  %v2052_v58 = vld [vmem:[%s3033_s2 + $0x2e0] sm:$0xff]  ;;  %3164 = vst [vmem:[#allocation23_spill] sm:$0xff] %v2071_v62 }
  0x2c   : > { %3162 = vst [vmem:[#allocation21_spill] sm:$0xff] %v2052_v58  ;;  %300 = vmatmul.f32.vlgmr.msra.gmra.mxu0 %v2034_v54  ;;  %405 = vmatpush.msra.mxu1 %v2047_v46  ;;  %v2104_v46 = vld [vmem:[%s3033_s2 + $0x2d0] sm:$0xff] }
  0x2d   : > { %447 = vmatpush.msra.mxu3 %v2029_v63  ;;  %506 = vmatpush.msrb.mxu2 %v2039_v50  ;;  %v2076_v63 = vld [vmem:[%s3033_s2 + $0x2d8] sm:$0xff]  ;;  %3168 = vst [vmem:[#allocation27_spill] sm:$0xff] %v2104_v46 }
  0x2e   : > { %3165 = vst [vmem:[#allocation24_spill] sm:$0xff] %v2076_v63  ;;  %1417 = vmatpush.msk.msrb.mxu0 %vm280_vm0, %v2059_v57  ;;  %406 = vmatpush.msra.mxu1 %v2071_v62  ;;  %v2122_v62 = vld [vmem:[%s3033_s2 + $0x1a8] sm:$0xf] }
  0x2f   : > { %448 = vmatpush.msra.mxu3 %v2052_v58  ;;  %507 = vmatpush.msrb.mxu2 %v2064_v42  ;;  %v2097_v58 = vld [vmem:[%s3033_s2 + $0x360] sm:$0xff]  ;;  %3170 = vst [vmem:[#allocation29_spill] sm:$0xff] %v2122_v62  ;;  %v2232_v42 = vrot.slane %v476_v26, 1  ;;  %v2253_v26 = vld [vmem:[%s3033_s2 + $0x158] sm:$0xff] }
  0x30   : > { %3167 = vst [vmem:[#allocation26_spill] sm:$0xff] %v2097_v58  ;;  %319 = vmatpush.msrb.mxu0 %v2083_v53  ;;  %346 = vmatmul.f32.vlgmr.msra.gmra.mxu2 %v216_v38 }
  0x31   : > { %449 = vmatpush.msra.mxu3 %v2076_v63  ;;  %508 = vmatpush.msrb.mxu2 %v2092_v49  ;;  %v2117_v63 = vld [vmem:[%s3033_s2 + $0x180] sm:$0xff]  ;;  %v2167_v49 = vld [vmem:[%s3033_s2 + $0x170] sm:$0xff]  ;;  %3177 = vst [vmem:[#allocation36_spill] sm:$0xff] %v2175_v41 }
  0x32   : > { %407 = vmatpush.msra.mxu1 %v2097_v58  ;;  %3169 = vst [vmem:[#allocation28_spill] sm:$0xff] %v2117_v63  ;;  %1441 = vmatpush.msk.msra.mxu0 %vm280_vm0, %v2109_v34  ;;  %v2135_v58 = vld [vmem:[%s3033_s2 + $0x478] sm:$0xf] }
  0x33   : > { %450 = vmatpush.msra.mxu3 %v2104_v46  ;;  %3171 = vst [vmem:[#allocation30_spill] sm:$0xff] %v2135_v58  ;;  %408 = vmatmul.f32.vlgmr.msra.gmra.mxu1 %v2034_v54  ;;  %v2141_v46 = vld [vmem:[%s3033_s2 + $0x178] sm:$0xff]  ;;  %v2187_v54 = vld [vmem:[%s3033_s2 + $0x220] sm:$0xff] }
  0x34   : > { %451 = vmatmul.f32.vlgmr.msra.gmra.mxu3 %v216_v38  ;;  %3172 = vst [vmem:[#allocation31_spill] sm:$0xff] %v2141_v46  ;;  %509 = vmatpush.msrb.mxu2 %v2117_v63  ;;  %v2154_v38 = vld [vmem:[%s3033_s2 + $0x468] sm:$0xff] }
  0x35   : > { %1461 = vmatpush.msk.msrb.mxu3 %vm280_vm0, %v2122_v62  ;;  %3174 = vst [vmem:[#allocation33_spill] sm:$0xff] %v2154_v38  ;;  %470 = vmatpush.msra.mxu0 %v2130_v45  ;;  %v2162_v63 = vld [vmem:[%s3033_s2 + $0x228] sm:$0xff] }
  0x36   : > { %1481 = vmatpush.msk.msrb.mxu1 %vm280_vm0, %v2135_v58  ;;  %3175 = vst [vmem:[#allocation34_spill] sm:$0xff] %v2162_v63  ;;  %1418 = vmatmul.msk.f32.vlgmr.msrb.gmra.mxu0 %vm276_vm1, %v2012_v60  ;;  %v2180_v58 = vld [vmem:[%s3033_s2 + $0x470] sm:$0xff] }
  0x37   : > { %3176 = vst [vmem:[#allocation35_spill] sm:$0xff] %v2167_v49  ;;  %510 = vmatpush.msrb.mxu2 %v2141_v46  ;;  %541 = vmatpush.msrb.mxu3 %v2149_v30  ;;  %v2192_v46 = vld [vmem:[%s3033_s2 + $0x238] sm:$0xf]  ;;  %v2200_v30 = vld [vmem:[%s3033_s2 + $0x168] sm:$0xff] }
  0x38   : > { %3178 = vst [vmem:[#allocation37_spill] sm:$0xff] %v2180_v58  ;;  %569 = vmatpush.msrb.mxu0 %v2154_v38  ;;  %v2205_v38 = vld [vmem:[%s3033_s2 + $0x458] sm:$0xff]  ;;  %604 = vmatpush.msrb.mxu1 %v2180_v58  ;;  %v2230_v58 = vld [vmem:[%s3033_s2 + $0x450] sm:$0xff] }
  0x39   : > { %3179 = vst [vmem:[#allocation38_spill] sm:$0xff] %v2187_v54  ;;  %641 = vmatpush.msra.mxu3 %v2162_v63  ;;  %511 = vmatpush.msrb.mxu2 %v2167_v49  ;;  %v2212_v63 = vld [vmem:[%s3033_s2 + $0x218] sm:$0xff]  ;;  %v2217_v49 = vld [vmem:[%s3033_s2 + $0x230] sm:$0xff] }
  0x3a   : > { %3180 = vst [vmem:[#allocation39_spill] sm:$0xff] %v2192_v46  ;;  %570 = vmatpush.msrb.mxu0 %v2175_v41  ;;  %1501 = vmatpush.msk.msra.mxu1 %vm280_vm0, %v2192_v46  ;;  %v2225_v41 = vld [vmem:[%s3033_s2 + $0x160] sm:$0xff]  ;;  %v2239_v46 = vld [vmem:[%s3033_s2 + $0x210] sm:$0xff] }
  0x3b   : > { %3181 = vst [vmem:[#allocation40_spill] sm:$0xff] %v2200_v30  ;;  %642 = vmatpush.msra.mxu3 %v2187_v54  ;;  %512 = vmatpush.msrb.mxu2 %v2200_v30  ;;  %v2246_v54 = vld [vmem:[%s3033_s2 + $0x4f8] sm:$0xff]  ;;  %v2279_v30 = vld [vmem:[%s3033_s2 + $0x150] sm:$0xff] }
  0x3c   : > { %3182 = vst [vmem:[#allocation41_spill] sm:$0xff] %v2205_v38  ;;  %571 = vmatpush.msrb.mxu0 %v2205_v38  ;;  %676 = vmatpush.msra.mxu1 %v2217_v49 }
  0x3d   : > { %3183 = vst [vmem:[#allocation42_spill] sm:$0xff] %v2212_v63  ;;  %643 = vmatpush.msra.mxu3 %v2212_v63  ;;  %513 = vmatpush.msrb.mxu2 %v2225_v41  ;;  %v2258_v63 = vld [vmem:[%s3033_s2 + $0x448] sm:$0xff] }
  0x3e   : > { %3184 = vst [vmem:[#allocation43_spill] sm:$0xff] %v2217_v49  ;;  %572 = vmatpush.msrb.mxu0 %v2230_v58  ;;  %1482 = vmatmul.msk.f32.vlgmr.msrb.gmra.mxu1 %vm276_vm1, %v2232_v42  ;;  %v2266_v49 = vld [vmem:[%s3033_s2 + $0x4f0] sm:$0xff] }
  0x3f   : > { %3185 = vst [vmem:[#allocation44_spill] sm:$0xff] %v2225_v41  ;;  %644 = vmatpush.msra.mxu3 %v2239_v46  ;;  %v2271_v41 = vld [vmem:[%s3033_s2 + $0x208] sm:$0xff]  ;;  %704 = vmatpush.msrb.mxu1 %v2246_v54 }
  0x40   : > { %3186 = vst [vmem:[#allocation45_spill] sm:$0xff] %v2230_v58  ;;  %1442 = vmatmul.msk.f32.vlgmr.msra.gmra.mxu0 %vm276_vm1, %v1724_v13  ;;  %514 = vmatpush.msrb.mxu2 %v2253_v26  ;;  %v2296_v13 = vld [vmem:[%s3033_s2 + $0x200] sm:$0xff] }
  0x41   : > { %3187 = vst [vmem:[#allocation46_spill] sm:$0xff] %v2239_v46  ;;  %v2284_v46 = vld [vmem:[%s3033_s2 + $0x440] sm:$0xff]  ;;  %573 = vmatpush.msrb.mxu0 %v2258_v63  ;;  %705 = vmatpush.msrb.mxu1 %v2266_v49 }
  0x42   : > { %3188 = vst [vmem:[#allocation47_spill] sm:$0xff] %v2246_v54  ;;  %v2291_v54 = vld [vmem:[%s3033_s2 + $0x4e8] sm:$0xff]  ;;  %645 = vmatpush.msra.mxu3 %v2271_v41  ;;  %515 = vmatpush.msrb.mxu2 %v2279_v30  ;;  %v475_v58 = vld [vmem:[%s1720_s22] sm:$0x3e] }
  0x43   : > { %3189 = vst [vmem:[#allocation48_spill] sm:$0xff] %v2253_v26  ;;  %v2303_v26 = vld [vmem:[%s3033_s2 + $0x148] sm:$0xff]  ;;  %574 = vmatpush.msrb.mxu0 %v2284_v46  ;;  %706 = vmatpush.msrb.mxu1 %v2291_v54  ;;  %v2431_v38 = vrot.slane %v475_v58, 1 }
  0x44   : > { %3190 = vst [vmem:[#allocation49_spill] sm:$0xff] %v2258_v63  ;;  %v2308_v63 = vld [vmem:[%s3033_s2 + $0x438] sm:$0xff]  ;;  %646 = vmatpush.msra.mxu3 %v2296_v13  ;;  %516 = vmatpush.msrb.mxu2 %v2303_v26  ;;  %v611_v58 = vld [vmem:[%s1983_s20 + $0x8] sm:$0x3e] }
  0x45   : > { %3191 = vst [vmem:[#allocation50_spill] sm:$0xff] %v2266_v49  ;;  %v2315_v49 = vld [vmem:[%s3033_s2 + $0x4e0] sm:$0xff]  ;;  %575 = vmatpush.msrb.mxu0 %v2308_v63  ;;  %1462 = vmatmul.msk.f32.vlgmr.msrb.gmra.mxu3 %vm276_vm1, %v2232_v42 }
  0x46   : > { %3192 = vst [vmem:[#allocation51_spill] sm:$0xff] %v2271_v41  ;;  %v2320_v41 = vld [vmem:[%s3033_s2 + $0x1f8] sm:$0xff]  ;;  %707 = vmatpush.msrb.mxu1 %v2315_v49 }
  0x47   : > { %3193 = vst [vmem:[#allocation52_spill] sm:$0xff] %v2279_v30  ;;  %v2327_v30 = vld [vmem:[%s3033_s2 + $0x140] sm:$0xff]  ;;  %647 = vmatpush.msra.mxu3 %v2320_v41 }
  0x48   : > { %3194 = vst [vmem:[#allocation53_spill] sm:$0xff] %v2284_v46  ;;  %v2332_v46 = vld [vmem:[%s3033_s2 + $0x430] sm:$0xff]  ;;  %517 = vmatpush.msrb.mxu2 %v2327_v30 }
  0x49   : > { %3195 = vst [vmem:[#allocation54_spill] sm:$0xff] %v2291_v54  ;;  %v2339_v54 = vld [vmem:[%s3033_s2 + $0x4d8] sm:$0xff]  ;;  %576 = vmatpush.msrb.mxu0 %v2332_v46 }
  0x4a   : > { %3196 = vst [vmem:[#allocation55_spill] sm:$0xff] %v2296_v13  ;;  %v2344_v13 = vld [vmem:[%s3033_s2 + $0x1f0] sm:$0xff]  ;;  %708 = vmatpush.msrb.mxu1 %v2339_v54 }
  0x4b   : > { %3197 = vst [vmem:[#allocation56_spill] sm:$0xff] %v2303_v26  ;;  %v2351_v26 = vld [vmem:[%s3033_s2 + $0x138] sm:$0xff]  ;;  %648 = vmatpush.msra.mxu3 %v2344_v13 }
  0x4c   : > { %3198 = vst [vmem:[#allocation57_spill] sm:$0xff] %v2308_v63  ;;  %v2356_v63 = vld [vmem:[%s3033_s2 + $0x428] sm:$0xff]  ;;  %518 = vmatpush.msrb.mxu2 %v2351_v26 }
  0x4d   : > { %3199 = vst [vmem:[#allocation58_spill] sm:$0xff] %v2315_v49  ;;  %v2363_v49 = vld [vmem:[%s3033_s2 + $0x4d0] sm:$0xff]  ;;  %577 = vmatpush.msrb.mxu0 %v2356_v63 }
  0x4e   : > { %3200 = vst [vmem:[#allocation59_spill] sm:$0xff] %v2320_v41  ;;  %v2368_v41 = vld [vmem:[%s3033_s2 + $0x1e8] sm:$0xff]  ;;  %709 = vmatpush.msrb.mxu1 %v2363_v49 }
  0x4f   : > { %3201 = vst [vmem:[#allocation60_spill] sm:$0xff] %v2327_v30  ;;  %v2375_v30 = vld [vmem:[%s3033_s2 + $0x130] sm:$0xff]  ;;  %649 = vmatpush.msra.mxu3 %v2368_v41 }
  0x50   : > { %3202 = vst [vmem:[#allocation61_spill] sm:$0xff] %v2332_v46  ;;  %v2380_v46 = vld [vmem:[%s3033_s2 + $0x420] sm:$0xff]  ;;  %519 = vmatpush.msrb.mxu2 %v2375_v30 }
  0x51   : > { %3203 = vst [vmem:[#allocation62_spill] sm:$0xff] %v2339_v54  ;;  %v2387_v54 = vld [vmem:[%s3033_s2 + $0x4c8] sm:$0xff]  ;;  %578 = vmatpush.msrb.mxu0 %v2380_v46 }
  0x52   : > { %3204 = vst [vmem:[#allocation63_spill] sm:$0xff] %v2344_v13  ;;  %v2392_v13 = vld [vmem:[%s3033_s2 + $0x1e0] sm:$0xff]  ;;  %710 = vmatpush.msrb.mxu1 %v2387_v54 }
  0x53   : > { %3205 = vst [vmem:[#allocation64_spill] sm:$0xff] %v2351_v26  ;;  %v2400_v26 = vld [vmem:[%s3033_s2 + $0x128] sm:$0xff]  ;;  %650 = vmatpush.msra.mxu3 %v2392_v13 }
  0x54   : > { %3206 = vst [vmem:[#allocation65_spill] sm:$0xff] %v2356_v63  ;;  %v2405_v63 = vld [vmem:[%s3033_s2 + $0x418] sm:$0xff]  ;;  %520 = vmatpush.msrb.mxu2 %v2400_v26 }
  0x55   : > { %3207 = vst [vmem:[#allocation66_spill] sm:$0xff] %v2363_v49  ;;  %v2412_v49 = vld [vmem:[%s3033_s2 + $0x4c0] sm:$0xff]  ;;  %579 = vmatpush.msrb.mxu0 %v2405_v63 }
  0x56   : > { %3208 = vst [vmem:[#allocation67_spill] sm:$0xff] %v2368_v41  ;;  %v2417_v41 = vld [vmem:[%s3033_s2 + $0x1d8] sm:$0xff]  ;;  %711 = vmatpush.msrb.mxu1 %v2412_v49 }
  0x57   : > { %3209 = vst [vmem:[#allocation68_spill] sm:$0xff] %v2375_v30  ;;  %v2424_v30 = vld [vmem:[%s3033_s2 + $0x120] sm:$0xff]  ;;  %651 = vmatpush.msra.mxu3 %v2417_v41 }
  0x58   : > { %3210 = vst [vmem:[#allocation69_spill] sm:$0xff] %v2380_v46  ;;  %v2429_v46 = vld [vmem:[%s3033_s2 + $0x410] sm:$0xff]  ;;  %521 = vmatpush.msrb.mxu2 %v2424_v30 }
  0x59   : > { %3211 = vst [vmem:[#allocation70_spill] sm:$0xff] %v2387_v54  ;;  %v2438_v54 = vld [vmem:[%s3033_s2 + $0x4b8] sm:$0xff]  ;;  %580 = vmatpush.msrb.mxu0 %v2429_v46  ;;  %522 = vmatmul.f32.vlgmr.msrb.gmra.mxu2 %v2431_v38 }
  0x5a   : > { %3212 = vst [vmem:[#allocation71_spill] sm:$0xff] %v2392_v13  ;;  %v2445_v13 = vld [vmem:[%s3033_s2 + $0x408] sm:$0xff]  ;;  %712 = vmatpush.msrb.mxu1 %v2438_v54 }
  0x5b   : > { %3213 = vst [vmem:[#allocation72_spill] sm:$0xff] %v2400_v26  ;;  %v2453_v26 = vld [vmem:[%s3033_s2 + $0x1d0] sm:$0xff]  ;;  %581 = vmatpush.msrb.mxu0 %v2445_v13 }
  0x5c   : > { %3214 = vst [vmem:[#allocation73_spill] sm:$0xff] %v2405_v63  ;;  %v2485_v63 = vrot.slane %v611_v58, 1  ;;  %652 = vmatpush.msra.mxu3 %v2453_v26  ;;  %v2505_v58 = vld [vmem:[%s3033_s2 + $0x4a0] sm:$0xff] }
  0x5d   : > { %3215 = vst [vmem:[#allocation74_spill] sm:$0xff] %v2412_v49  ;;  %v2458_v49 = vld [vmem:[%s3033_s2 + $0x4b0] sm:$0xff] }
  0x5e   : > { %3216 = vst [vmem:[#allocation75_spill] sm:$0xff] %v2417_v41  ;;  %v2465_v41 = vld [vmem:[%s3033_s2 + $0x400] sm:$0xff]  ;;  %713 = vmatpush.msrb.mxu1 %v2458_v49 }
  0x5f   : > { %3217 = vst [vmem:[#allocation76_spill] sm:$0xff] %v2424_v30  ;;  %v2470_v30 = vld [vmem:[%s3033_s2 + $0x508] sm:$0xf]  ;;  %582 = vmatpush.msrb.mxu0 %v2465_v41  ;;  %1502 = vmatmul.msk.f32.vlgmr.msra.gmra.mxu1 %vm276_vm1, %v2485_v63 }
  0x60   : > { %3218 = vst [vmem:[#allocation77_spill] sm:$0xff] %v2429_v46  ;;  %v2483_v46 = vld [vmem:[%s3033_s2 + $0x4a8] sm:$0xff]  ;;  %1521 = vmatpush.msk.msra.mxu2 %vm280_vm0, %v2470_v30 }
  0x61   : > { %3219 = vst [vmem:[#allocation78_spill] sm:$0xff] %v2438_v54  ;;  %v2478_v54 = vld [vmem:[%s3033_s2 + $0x1c8] sm:$0xff]  ;;  %714 = vmatpush.msrb.mxu1 %v2483_v46 }
  0x62   : > { %3220 = vst [vmem:[#allocation79_spill] sm:$0xff] %v2445_v13  ;;  %v2492_v13 = vld [vmem:[%s3033_s2 + $0x3f8] sm:$0xff]  ;;  %653 = vmatpush.msra.mxu3 %v2478_v54 }
  0x63   : > { %3221 = vst [vmem:[#allocation80_spill] sm:$0xff] %v2453_v26  ;;  %v2517_v26 = vld [vmem:[%s3033_s2 + $0x500] sm:$0xff]  ;;  %583 = vmatpush.msrb.mxu0 %v2492_v13  ;;  %715 = vmatpush.msrb.mxu1 %v2505_v58 }
  0x64   : > { %3222 = vst [vmem:[#allocation81_spill] sm:$0xff] %v2458_v49  ;;  %v2512_v49 = vld [vmem:[%s3033_s2 + $0x3f0] sm:$0xff]  ;;  %654 = vmatpush.msra.mxu3 %v2498_v37  ;;  %739 = vmatpush.msra.mxu2 %v2517_v26 }
  0x65   : > { %3223 = vst [vmem:[#allocation82_spill] sm:$0xff] %v2465_v41  ;;  %v2524_v41 = vld [vmem:[%s3033_s2 + $0x1b8] sm:$0xff]  ;;  %584 = vmatpush.msrb.mxu0 %v2512_v49  ;;  %1522 = vmatmul.msk.f32.vlgmr.msra.gmra.mxu2 %vm276_vm1, %v2485_v63 }
  0x66   : > { %3224 = vst [vmem:[#allocation83_spill] sm:$0xff] %v2470_v30  ;;  %v610_v30 = vld [vmem:[%s1983_s20] sm:$0x3e]  ;;  %655 = vmatpush.msra.mxu3 %v2524_v41  ;;  %585 = vmatmul.f32.vlgmr.msrb.gmra.mxu0 %v2431_v38 }
  0x67   : > { %3225 = vst [vmem:[#allocation84_spill] sm:$0xff] %v2478_v54  ;;  %v2540_v54 = vld [vmem:[%s3033_s2 + $0x1b0] sm:$0xff]  ;;  %v2547_v62 = vrot.slane %v610_v30, 1  ;;  %v2562_v30 = vld [vmem:[%s3033_s2 + $0x588] sm:$0xff] }
  0x68   : > { %3226 = vst [vmem:[#allocation85_spill] sm:$0xff] %v2483_v46  ;;  %v2531_v46 = vld [vmem:[%s3033_s2 + $0x498] sm:$0xff]  ;;  %656 = vmatpush.msra.mxu3 %v2540_v54 }
  0x69   : > { %3227 = vst [vmem:[#allocation86_spill] sm:$0xff] %v2492_v13  ;;  %v2545_v13 = vld [vmem:[%s3033_s2 + $0x2b8] sm:$0xff]  ;;  %716 = vmatpush.msrb.mxu1 %v2531_v46  ;;  %657 = vmatmul.f32.vlgmr.msra.gmra.mxu3 %v2547_v62 }
  0x6a   : > { %3228 = vst [vmem:[#allocation87_spill] sm:$0xff] %v2498_v37  ;;  %776 = vmatpush.msra.mxu0 %v2545_v13  ;;  %v2579_v37 = vld [vmem:[%s3033_s2 + $0x488] sm:$0xff]  ;;  %839 = vmatpush.msrb.mxu3 %v2562_v30 }
  0x6b   : > { %3229 = vst [vmem:[#allocation88_spill] sm:$0xff] %v2505_v58  ;;  %v2554_v58 = vld [vmem:[%s3033_s2 + $0x490] sm:$0xff] }
  0x6c   : > { %3230 = vst [vmem:[#allocation89_spill] sm:$0xff] %v2512_v49  ;;  %717 = vmatpush.msrb.mxu1 %v2554_v58  ;;  %v2598_v49 = vld [vmem:[%s3033_s2 + $0x2c0] sm:$0xff] }
  0x6d   : > { %3231 = vst [vmem:[#allocation90_spill] sm:$0xff] %v2517_v26  ;;  %v746_v26 = vld [vmem:[%s1720_s22 + $0x8] sm:$0x7c] }
  0x6e   : > { %3232 = vst [vmem:[#allocation91_spill] sm:$0xff] %v2524_v41  ;;  %v2574_v41 = vld [vmem:[%s3033_s2 + $0x2c8] sm:$0xf]  ;;  %718 = vmatpush.msrb.mxu1 %v2579_v37 }
  0x6f   : > { %3233 = vst [vmem:[#allocation92_spill] sm:$0xff] %v2531_v46  ;;  %v2567_v46 = vld [vmem:[%s3033_s2 + $0x2b0] sm:$0xff]  ;;  %1541 = vmatpush.msk.msrb.mxu2 %vm280_vm0, %v2574_v41 }
  0x70   : > { %3234 = vst [vmem:[#allocation93_spill] sm:$0xff] %v2540_v54  ;;  %v2586_v54 = vld [vmem:[%s3033_s2 + $0x580] sm:$0xff]  ;;  %777 = vmatpush.msra.mxu0 %v2567_v46 }
  0x71   : > { %3235 = vst [vmem:[#allocation94_spill] sm:$0xff] %v2545_v13  ;;  %v2591_v13 = vld [vmem:[%s3033_s2 + $0x2a8] sm:$0xff]  ;;  %840 = vmatpush.msrb.mxu3 %v2586_v54  ;;  %811 = vmatpush.msrb.mxu2 %v2598_v49 }
  0x72   : > { %3236 = vst [vmem:[#allocation95_spill] sm:$0xff] %v2554_v58  ;;  %v2603_v58 = vld [vmem:[%s3033_s2 + $0x480] sm:$0xff]  ;;  %778 = vmatpush.msra.mxu0 %v2591_v13 }
  0x73   : > { %3237 = vst [vmem:[#allocation96_spill] sm:$0xff] %v2562_v30  ;;  %v2612_v30 = vld [vmem:[%s3033_s2 + $0x578] sm:$0xff]  ;;  %719 = vmatpush.msrb.mxu1 %v2603_v58 }
  0x74   : > { %3238 = vst [vmem:[#allocation97_spill] sm:$0xff] %v2567_v46  ;;  %v2617_v46 = vld [vmem:[%s3033_s2 + $0x598] sm:$0xf]  ;;  %841 = vmatpush.msrb.mxu3 %v2612_v30  ;;  %720 = vmatmul.f32.vlgmr.msrb.gmra.mxu1 %v2547_v62 }
  0x75   : > { %3239 = vst [vmem:[#allocation98_spill] sm:$0xff] %v2574_v41  ;;  %v2624_v41 = vld [vmem:[%s3033_s2 + $0x2a0] sm:$0xff]  ;;  %1561 = vmatpush.msk.msra.mxu2 %vm280_vm0, %v2617_v46  ;;  %1563 = vmatpush.msk.msra.mxu1 %vm280_vm0, %v2059_v57  ;;  %v2704_v57 = vld [vmem:[%s3033_s2 + $0x278] sm:$0xff] }
  0x76   : > { %3240 = vst [vmem:[#allocation99_spill] sm:$0xff] %v2579_v37  ;;  %v2631_v37 = vld [vmem:[%s3033_s2 + $0x570] sm:$0xff]  ;;  %779 = vmatpush.msra.mxu0 %v2624_v41 }
  0x77   : > { %3241 = vst [vmem:[#allocation100_spill] sm:$0xff] %v2586_v54  ;;  %v2636_v54 = vld [vmem:[%s3033_s2 + $0x590] sm:$0xff]  ;;  %842 = vmatpush.msrb.mxu3 %v2631_v37  ;;  %916 = vmatpush.msra.mxu1 %v2083_v53  ;;  %v745_v53 = vld [vmem:[%s1720_s22] sm:$0x7c] }
  0x78   : > { %3242 = vst [vmem:[#allocation101_spill] sm:$0xff] %v2591_v13  ;;  %v2638_v13 = vrot.slane %v746_v26, 2  ;;  %874 = vmatpush.msra.mxu2 %v2636_v54  ;;  %v2660_v26 = vld [vmem:[%s3033_s2 + $0x290] sm:$0xff] }
  0x79   : > { %3243 = vst [vmem:[#allocation102_spill] sm:$0xff] %v2598_v49  ;;  %v2653_v49 = vld [vmem:[%s3033_s2 + $0x568] sm:$0xff]  ;;  %921 = vmatpush.msrb.mxu1 %v1645_v1 }
  0x7a   : > { %3244 = vst [vmem:[#allocation103_spill] sm:$0xff] %v2603_v58  ;;  %v2646_v58 = vld [vmem:[%s3033_s2 + $0x298] sm:$0xff]  ;;  %1542 = vmatmul.msk.f32.vlgmr.msrb.gmra.mxu2 %vm276_vm1, %v2638_v13  ;;  %843 = vmatpush.msrb.mxu3 %v2653_v49  ;;  %v2713_v1 = vld [vmem:[%s3033_s2 + $0x548] sm:$0xff] }
  0x7b   : > { %3245 = vst [vmem:[#allocation104_spill] sm:$0xff] %v2617_v46  ;;  %780 = vmatpush.msra.mxu0 %v2646_v58  ;;  %v2668_v46 = vld [vmem:[%s3033_s2 + $0x560] sm:$0xff]  ;;  %881 = vmatpush.msrb.mxu2 %v1640_v0  ;;  %v2685_v0 = vld [vmem:[%s3033_s2 + $0x558] sm:$0xff] }
  0x7c   : > { %3246 = vst [vmem:[#allocation105_spill] sm:$0xff] %v2636_v54  ;;  %v2675_v54 = vld [vmem:[%s3033_s2 + $0x288] sm:$0xff]  ;;  %844 = vmatpush.msrb.mxu3 %v2668_v46  ;;  %922 = vmatpush.msrb.mxu1 %v1662_v4  ;;  %v2727_v4 = vld [vmem:[%s3033_s2 + $0x540] sm:$0xff] }
  0x7d   : > { %3247 = vst [vmem:[#allocation106_spill] sm:$0xff] %v2653_v49  ;;  %781 = vmatpush.msra.mxu0 %v2660_v26  ;;  %882 = vmatpush.msrb.mxu2 %v1657_v3  ;;  %v2690_v49 = vld [vmem:[%s3033_s2 + $0x280] sm:$0xff]  ;;  %v2699_v3 = vld [vmem:[%s3033_s2 + $0x550] sm:$0xff] }
  0x7e   : > { %845 = vmatpush.msrb.mxu3 %v2685_v0  ;;  %923 = vmatpush.msrb.mxu1 %v1688_v8  ;;  %v2741_v8 = vld [vmem:[%s3033_s2 + $0x538] sm:$0xff] }
  0x7f   : > { %782 = vmatpush.msra.mxu0 %v2675_v54  ;;  %883 = vmatpush.msrb.mxu2 %v1679_v7  ;;  %v2718_v7 = vld [vmem:[%s3033_s2 + $0x270] sm:$0xff] }
  0x80   : > { %846 = vmatpush.msrb.mxu3 %v2699_v3  ;;  %924 = vmatpush.msrb.mxu1 %v1713_v12  ;;  %v2755_v12 = vld [vmem:[%s3033_s2 + $0x530] sm:$0xff] }
  0x81   : > { %783 = vmatpush.msra.mxu0 %v2690_v49  ;;  %884 = vmatpush.msrb.mxu2 %v1699_v10  ;;  %v2732_v10 = vld [vmem:[%s3033_s2 + $0x268] sm:$0xff] }
  0x82   : > { %847 = vmatpush.msrb.mxu3 %v2713_v1  ;;  %925 = vmatpush.msrb.mxu1 %v1742_v16  ;;  %v2769_v16 = vld [vmem:[%s3033_s2 + $0x528] sm:$0xff] }
  0x83   : > { %784 = vmatpush.msra.mxu0 %v2704_v57  ;;  %885 = vmatpush.msrb.mxu2 %v1735_v15  ;;  %v2746_v15 = vld [vmem:[%s3033_s2 + $0x260] sm:$0xff]  ;;  %3248 = vst [vmem:[#allocation107_spill] sm:$0xff] %v2769_v16 }
  0x84   : > { %848 = vmatpush.msrb.mxu3 %v2727_v4  ;;  %926 = vmatpush.msrb.mxu1 %v1767_v20  ;;  %v2783_v20 = vld [vmem:[%s3033_s2 + $0x520] sm:$0xff] }
  0x85   : > { %785 = vmatpush.msra.mxu0 %v2718_v7  ;;  %886 = vmatpush.msrb.mxu2 %v1760_v19  ;;  %v2760_v19 = vld [vmem:[%s3033_s2 + $0x258] sm:$0xff] }
  0x86   : > { %849 = vmatpush.msrb.mxu3 %v2741_v8  ;;  %927 = vmatpush.msrb.mxu1 %v1791_v24  ;;  %v2798_v24 = vld [vmem:[%s3033_s2 + $0x518] sm:$0xff] }
  0x87   : > { %786 = vmatpush.msra.mxu0 %v2732_v10  ;;  %887 = vmatpush.msrb.mxu2 %v1784_v23  ;;  %v2774_v23 = vld [vmem:[%s3033_s2 + $0x250] sm:$0xff] }
  0x88   : > { %850 = vmatpush.msrb.mxu3 %v2755_v12  ;;  %928 = vmatpush.msrb.mxu1 %v1815_v28  ;;  %v2814_v28 = vld [vmem:[%s3033_s2 + $0x510] sm:$0xff] }
  0x89   : > { %787 = vmatpush.msra.mxu0 %v2746_v15  ;;  %888 = vmatpush.msrb.mxu2 %v1808_v27  ;;  %v2788_v27 = vld [vmem:[%s3033_s2 + $0x248] sm:$0xff] }
  0x8a   : > { %851 = vmatpush.msrb.mxu3 %v2769_v16  ;;  %v2807_v16 = vrot.slane %v745_v53, 2  ;;  %929 = vmatpush.msrb.mxu1 %v1839_v32  ;;  %v3261_v32 = vld [vmem:[#allocation36_spill] sm:$0xff] }
  0x8b   : > { %788 = vmatpush.msra.mxu0 %v2760_v19  ;;  %889 = vmatpush.msrb.mxu2 %v1832_v31  ;;  %v2803_v31 = vld [vmem:[%s3033_s2 + $0x240] sm:$0xff]  ;;  %v3280_v53 = vld [vmem:[#allocation48_spill] sm:$0xff] }
  0x8c   : > { %852 = vmatpush.msrb.mxu3 %v2783_v20  ;;  %930 = vmatpush.msrb.mxu1 %v1863_v36  ;;  %v3265_v36 = vld [vmem:[#allocation41_spill] sm:$0xff] }
  0x8d   : > { %789 = vmatpush.msra.mxu0 %v2774_v23  ;;  %890 = vmatpush.msrb.mxu2 %v1856_v35  ;;  %v3264_v35 = vld [vmem:[#allocation31_spill] sm:$0xff] }
  0x8e   : > { %853 = vmatpush.msrb.mxu3 %v2798_v24  ;;  %1562 = vmatmul.msk.f32.vlgmr.msra.gmra.mxu2 %vm276_vm1, %v2638_v13 }
  0x8f   : > { %790 = vmatpush.msra.mxu0 %v2788_v27  ;;  %891 = vmatpush.msrb.mxu2 %v1880_v39  ;;  %v3266_v39 = vld [vmem:[#allocation6_spill] sm:$0xff] }
  0x90   : > { %854 = vmatpush.msrb.mxu3 %v2814_v28  ;;  %931 = vmatpush.msrb.mxu1 %v1887_v40  ;;  %v3267_v40 = vld [vmem:[#allocation13_spill] sm:$0xff] }
  0x91   : > { %791 = vmatpush.msra.mxu0 %v2803_v31  ;;  %892 = vmatpush.msrb.mxu2 %v1904_v43  ;;  %v3268_v43 = vld [vmem:[#allocation35_spill] sm:$0xff] }
  0x92   : > { %792 = vmatmul.f32.vlgmr.msra.gmra.mxu0 %v2807_v16  ;;  %855 = vmatmul.f32.vlgmr.msrb.gmra.mxu3 %v2807_v16 }
  0x93   : > { %893 = vmatpush.msrb.mxu2 %v1928_v47  ;;  %961 = vmatpush.msra.mxu3 %v1705_v11  ;;  %v3253_v11 = vld [vmem:[#allocation32_spill] sm:$0xff]  ;;  %v3271_v47 = vld [vmem:[#allocation15_spill] sm:$0xff] }
  0x94   : > { %1565 = vmatpush.msk.msrb.mxu0 %vm280_vm0, %v1650_v2  ;;  %932 = vmatpush.msrb.mxu1 %v1911_v44  ;;  %v3249_v2 = vld [vmem:[#allocation29_spill] sm:$0xff] }
  0x95   : > { %894 = vmatpush.msrb.mxu2 %v1952_v51  ;;  %962 = vmatpush.msra.mxu3 %v1747_v17  ;;  %v3255_v17 = vld [vmem:[#allocation7_spill] sm:$0xff]  ;;  %v3269_v44 = vld [vmem:[#allocation45_spill] sm:$0xff]  ;;  %v3274_v51 = vld [vmem:[#allocation10_spill] sm:$0xff] }
  0x96   : > { %956 = vmatpush.msrb.mxu0 %v1667_v5  ;;  %933 = vmatpush.msrb.mxu1 %v1935_v48  ;;  %v3250_v5 = vld [vmem:[#allocation5_spill] sm:$0xff]  ;;  %v3272_v48 = vld [vmem:[#allocation40_spill] sm:$0xff] }
  0x97   : > { %895 = vmatpush.msrb.mxu2 %v1976_v55  ;;  %963 = vmatpush.msra.mxu3 %v1772_v21  ;;  %v3257_v21 = vld [vmem:[#allocation33_spill] sm:$0xff]  ;;  %v3276_v55 = vld [vmem:[#allocation44_spill] sm:$0xff] }
  0x98   : > { %1567 = vmatpush.msk.msra.mxu0 %vm280_vm0, %v1674_v6  ;;  %1564 = vmatmul.msk.f32.vlgmr.msra.gmra.mxu1 %vm276_vm1, %v2232_v42  ;;  %v3251_v6 = vld [vmem:[#allocation22_spill] sm:$0xff] }
  0x99   : > { %896 = vmatpush.msrb.mxu2 %v2007_v59  ;;  %934 = vmatpush.msrb.mxu1 %v1959_v52  ;;  %v3275_v52 = vld [vmem:[#allocation17_spill] sm:$0xff]  ;;  %v3278_v59 = vld [vmem:[#allocation12_spill] sm:$0xff] }
  0x9a   : > { %964 = vmatpush.msra.mxu3 %v1796_v25  ;;  %996 = vmatpush.msra.mxu0 %v1694_v9  ;;  %v3252_v9 = vld [vmem:[#allocation2_spill] sm:$0xff]  ;;  %v3259_v25 = vld [vmem:[#allocation9_spill] sm:$0xff] }
  0x9b   : > { %897 = vmatmul.f32.vlgmr.msrb.gmra.mxu2 %v2431_v38  ;;  %1566 = vmatmul.msk.f32.vlgmr.msrb.gmra.mxu0 %vm276_vm1, %v2012_v60 }
  0x9c   : > { %1569 = vmatpush.msk.msra.mxu2 %vm280_vm0, %v2109_v34  ;;  %1001 = vmatpush.msrb.mxu0 %v1730_v14  ;;  %v3254_v14 = vld [vmem:[#allocation19_spill] sm:$0xff] }
  0x9d   : > { %935 = vmatpush.msrb.mxu1 %v1990_v56  ;;  %965 = vmatpush.msra.mxu3 %v1820_v29  ;;  %v3260_v29 = vld [vmem:[#allocation28_spill] sm:$0xff]  ;;  %v3263_v34 = vld [vmem:[#allocation11_spill] sm:$0xff]  ;;  %v3277_v56 = vld [vmem:[#allocation53_spill] sm:$0xff] }
  0x9e   : > { %1036 = vmatpush.msra.mxu2 %v2130_v45  ;;  %1002 = vmatpush.msrb.mxu0 %v1755_v18  ;;  %v3256_v18 = vld [vmem:[#allocation25_spill] sm:$0xff]  ;;  %v3270_v45 = vld [vmem:[#allocation8_spill] sm:$0xff] }
  0x9f   : > { %936 = vmatpush.msrb.mxu1 %v2017_v61  ;;  %966 = vmatpush.msra.mxu3 %v1844_v33  ;;  %v3262_v33 = vld [vmem:[#allocation4_spill] sm:$0xff] }
  0xa0   : > { %1041 = vmatpush.msrb.mxu2 %v2039_v50  ;;  %1003 = vmatpush.msrb.mxu0 %v1779_v22  ;;  %v3258_v22 = vld [vmem:[#allocation3_spill] sm:$0xff]  ;;  %v3273_v50 = vld [vmem:[#allocation49_spill] sm:$0xff]  ;;  %v3279_v61 = vld [vmem:[#allocation20_spill] sm:$0xff] }
  0xa1   : > { %1571 = vmatpush.msk.msra.mxu1 %vm280_vm0, %v3249_v2  ;;  %967 = vmatpush.msra.mxu3 %v3250_v5  ;;  %v3281_v2 = vld [vmem:[#allocation57_spill] sm:$0xff]  ;;  %v3282_v5 = vld [vmem:[#allocation14_spill] sm:$0xff] }
  0xa2   : > { %1042 = vmatpush.msrb.mxu2 %v3251_v6  ;;  %1004 = vmatpush.msrb.mxu0 %v3252_v9  ;;  %v3283_v6 = vld [vmem:[#allocation23_spill] sm:$0xff]  ;;  %v3284_v9 = vld [vmem:[#allocation52_spill] sm:$0xff] }
  0xa3   : > { %1076 = vmatpush.msra.mxu1 %v3253_v11  ;;  %968 = vmatpush.msra.mxu3 %v3255_v17  ;;  %v3285_v11 = vld [vmem:[#allocation61_spill] sm:$0xff]  ;;  %v3286_v17 = vld [vmem:[#allocation16_spill] sm:$0xff] }
  0xa4   : > { %937 = vmatmul.f32.vlgmr.msrb.gmra.mxu1 %v3254_v14  ;;  %1043 = vmatpush.msrb.mxu2 %v3256_v18  ;;  %v3287_v18 = vld [vmem:[#allocation26_spill] sm:$0xff] }
  0xa5   : > { %1082 = vmatpush.msrb.mxu1 %v3257_v21  ;;  %1005 = vmatpush.msrb.mxu0 %v3258_v22  ;;  %v3288_v21 = vld [vmem:[#allocation56_spill] sm:$0xff]  ;;  %v3289_v22 = vld [vmem:[#allocation65_spill] sm:$0xff] }
  0xa6   : > { %969 = vmatpush.msra.mxu3 %v3259_v25  ;;  %1044 = vmatpush.msrb.mxu2 %v3260_v29  ;;  %v3290_v25 = vld [vmem:[#allocation18_spill] sm:$0xff] }
  0xa7   : > { %1083 = vmatpush.msrb.mxu1 %v3261_v32  ;;  %1006 = vmatpush.msrb.mxu0 %v3262_v33  ;;  %v3291_v29 = vld [vmem:[#allocation30_spill] sm:$0xff]  ;;  %v3292_v32 = vld [vmem:[#allocation60_spill] sm:$0xff]  ;;  %v3293_v33 = vld [vmem:[#allocation69_spill] sm:$0xff] }
  0xa8   : > { %970 = vmatpush.msra.mxu3 %v3263_v34  ;;  %1045 = vmatpush.msrb.mxu2 %v3264_v35  ;;  %v3294_v34 = vld [vmem:[#allocation21_spill] sm:$0xff] }
  0xa9   : > { %1084 = vmatpush.msrb.mxu1 %v3265_v36  ;;  %1007 = vmatpush.msrb.mxu0 %v3266_v39  ;;  %v3295_v35 = vld [vmem:[#allocation37_spill] sm:$0xff]  ;;  %v3298_v39 = vld [vmem:[#allocation34_spill] sm:$0xff] }
  0xaa   : > { %971 = vmatpush.msra.mxu3 %v3267_v40  ;;  %1046 = vmatpush.msrb.mxu2 %v3268_v43  ;;  %v3297_v36 = vld [vmem:[#allocation73_spill] sm:$0xff]  ;;  %v3299_v40 = vld [vmem:[#allocation24_spill] sm:$0xff] }
  0xab   : > { %1085 = vmatpush.msrb.mxu1 %v3269_v44  ;;  %1008 = vmatpush.msrb.mxu0 %v3270_v45  ;;  %v3301_v43 = vld [vmem:[#allocation77_spill] sm:$0xff]  ;;  %v3302_v44 = vld [vmem:[#allocation38_spill] sm:$0xff]  ;;  %v3303_v45 = vld [vmem:[#allocation27_spill] sm:$0xff] }
  0xac   : > { %972 = vmatpush.msra.mxu3 %v3271_v47  ;;  %1047 = vmatpush.msrb.mxu2 %v3272_v48  ;;  %v3305_v47 = vld [vmem:[#allocation79_spill] sm:$0xff]  ;;  %v3306_v48 = vld [vmem:[#allocation42_spill] sm:$0xff] }
  0xad   : > { %1086 = vmatpush.msrb.mxu1 %v3273_v50  ;;  %1009 = vmatpush.msrb.mxu0 %v3274_v51  ;;  %v3307_v50 = vld [vmem:[#allocation39_spill] sm:$0xff]  ;;  %v301_v51 = vpop.f32.mrf.mxu0 }
  0xae   : > { %973 = vmatpush.msra.mxu3 %v3275_v52  ;;  %1048 = vmatpush.msrb.mxu2 %v3276_v55  ;;  %v3308_v52 = vld [vmem:[#allocation76_spill] sm:$0xff]  ;;  %v3309_v55 = vld [vmem:[#allocation82_spill] sm:$0xff] }
  0xaf   : > { %1087 = vmatpush.msrb.mxu1 %v3277_v56  ;;  %1010 = vmatpush.msrb.mxu0 %v3278_v59  ;;  %v3310_v56 = vld [vmem:[#allocation46_spill] sm:$0xff]  ;;  %v3311_v59 = vld [vmem:[#allocation43_spill] sm:$0xff] }
  0xb0   : > { %974 = vmatpush.msra.mxu3 %v3279_v61  ;;  %1049 = vmatpush.msrb.mxu2 %v3280_v53  ;;  %v3312_v61 = vld [vmem:[#allocation47_spill] sm:$0xff] }
  0xb1   : > { %1088 = vmatpush.msrb.mxu1 %v3281_v2  ;;  %1011 = vmatpush.msrb.mxu0 %v3282_v5  ;;  %v3313_v53 = vld [vmem:[#allocation83_spill] sm:$0xff]  ;;  %v3314_v2 = vld [vmem:[#allocation86_spill] sm:$0xff] }
  0xb2   : > { %975 = vmatpush.msra.mxu3 %v3283_v6  ;;  %1050 = vmatpush.msrb.mxu2 %v3284_v9  ;;  %v3317_v5 = vld [vmem:[#allocation90_spill] sm:$0xff]  ;;  %v3318_v6 = vld [vmem:[#allocation89_spill] sm:$0xff]  ;;  %v3319_v9 = vld [vmem:[#allocation55_spill] sm:$0xff] }
  0xb3   : > { %1089 = vmatpush.msrb.mxu1 %v3285_v11  ;;  %1012 = vmatpush.msrb.mxu0 %v3286_v17  ;;  %v3320_v11 = vld [vmem:[#allocation94_spill] sm:$0xff] }
  0xb4   : > { %976 = vmatpush.msra.mxu3 %v3287_v18  ;;  %1051 = vmatpush.msrb.mxu2 %v3288_v21  ;;  %v3321_v17 = vld [vmem:[#allocation54_spill] sm:$0xff]  ;;  %v3323_v21 = vld [vmem:[#allocation59_spill] sm:$0xff] }
  0xb5   : > { %1090 = vmatpush.msrb.mxu1 %v3289_v22  ;;  %977 = vmatmul.f32.vlgmr.msra.gmra.mxu3 %v2431_v38  ;;  %v3296_v38 = vld [vmem:[#allocation64_spill] sm:$0xff]  ;;  %v3322_v18 = vld [vmem:[#allocation98_spill] sm:$0xff]  ;;  %v321_v22 = vpop.f32.mrf.mxu0 }
  0xb6   : > { %1013 = vmatpush.msrb.mxu0 %v3290_v25  ;;  %1573 = vmatpush.msk.msrb.mxu3 %vm280_vm0, %v3291_v29  ;;  %v347_v25 = vpop.f32.mrf.mxu2  ;;  %v3324_v29 = vld [vmem:[#allocation97_spill] sm:$0xff] }
  0xb7   : > { %1568 = vmatmul.msk.f32.vlgmr.msra.gmra.mxu0 %vm276_vm1, %v2232_v42  ;;  %1052 = vmatpush.msrb.mxu2 %v3292_v32  ;;  %v3300_v42 = vld [vmem:[#allocation68_spill] sm:$0xff]  ;;  %v3325_v32 = vld [vmem:[#allocation58_spill] sm:$0xff] }
  0xb8   : > { %1091 = vmatpush.msrb.mxu1 %v3293_v33  ;;  %1014 = vmatpush.msrb.mxu0 %v3294_v34  ;;  %v322_v33 = vadd.f32 %v321_v22, %v301_v51  ;;  %v3326_v34 = vld [vmem:[#allocation102_spill] sm:$0xff] }
  0xb9   : > { %1570 = vmatmul.msk.f32.vlgmr.msra.gmra.mxu2 %vm276_vm1, %v2012_v60  ;;  %1117 = vmatpush.msrb.mxu3 %v3295_v35  ;;  %v3304_v60 = vld [vmem:[#allocation72_spill] sm:$0xff]  ;;  %v3327_v35 = vld [vmem:[#allocation63_spill] sm:$0xff]  ;;  %v3339_v51 = vld [vmem:[#allocation106_spill] sm:$0xff] }
  0xba   : > { %1053 = vmatpush.msrb.mxu2 %v3296_v38  ;;  %1092 = vmatpush.msrb.mxu1 %v3297_v36  ;;  %v3328_v38 = vld [vmem:[#allocation101_spill] sm:$0xff]  ;;  %v348_v36 = vadd.f32 %v347_v25, %v322_v33 }
  0xbb   : > { %1123 = vmatpush.msra.mxu3 %v3298_v39  ;;  %1015 = vmatpush.msrb.mxu0 %v3299_v40  ;;  %v367_v39 = vpop.f32.mrf.mxu3  ;;  %v3330_v40 = vld [vmem:[#allocation62_spill] sm:$0xff] }
  0xbc   : > { %1054 = vmatpush.msrb.mxu2 %v3300_v42  ;;  %1093 = vmatpush.msrb.mxu1 %v3301_v43  ;;  %v3331_v42 = vld [vmem:[#allocation67_spill] sm:$0xff]  ;;  %v3332_v43 = vld [vmem:[#allocation100_spill] sm:$0xff] }
  0xbd   : > { %1124 = vmatpush.msra.mxu3 %v3302_v44  ;;  %1016 = vmatpush.msrb.mxu0 %v3303_v45  ;;  %v2961_v44 = vadd.f32 %v367_v39, %v348_v36  ;;  %v3333_v45 = vld [vmem:[#allocation66_spill] sm:$0xff] }
  0xbe   : > { %1572 = vmatmul.msk.f32.vlgmr.msra.gmra.mxu1 %vm276_vm1, %v2485_v63  ;;  %1055 = vmatpush.msrb.mxu2 %v3304_v60  ;;  %v3334_v60 = vld [vmem:[#allocation71_spill] sm:$0xff] }
  0xbf   : > { %1094 = vmatpush.msrb.mxu1 %v3305_v47  ;;  %1125 = vmatpush.msra.mxu3 %v3306_v48  ;;  %v3335_v47 = vld [vmem:[#allocation70_spill] sm:$0xff]  ;;  %v3336_v48 = vld [vmem:[#allocation75_spill] sm:$0xff] }
  0xc0   : > { %1575 = vmatpush.msk.msra.mxu0 %vm280_vm0, %v3307_v50  ;;  %1574 = vmatmul.msk.f32.vlgmr.msrb.gmra.mxu3 %vm276_vm1, %v2485_v63  ;;  %v3315_v63 = vld [vmem:[#allocation51_spill] sm:$0xff]  ;;  %v3338_v50 = vld [vmem:[#allocation80_spill] sm:$0xff] }
  0xc1   : > { %1017 = vmatmul.f32.vlgmr.msrb.gmra.mxu0 %v3254_v14  ;;  %1056 = vmatpush.msrb.mxu2 %v3308_v52  ;;  %v3316_v14 = vld [vmem:[#allocation50_spill] sm:$0xff]  ;;  %v3345_v52 = vld [vmem:[#allocation91_spill] sm:$0xff] }
  0xc2   : > { %1095 = vmatpush.msrb.mxu1 %v3309_v55  ;;  %1126 = vmatpush.msra.mxu3 %v3310_v56  ;;  %v3346_v55 = vld [vmem:[#allocation88_spill] sm:$0xff] }
  0xc3   : > { %1158 = vmatpush.msra.mxu0 %v3311_v59  ;;  %1057 = vmatmul.f32.vlgmr.msrb.gmra.mxu2 %v2547_v62 }
  0xc4   : > { %1577 = vmatpush.msk.msra.mxu2 %vm280_vm0, %v3313_v53  ;;  %1096 = vmatpush.msrb.mxu1 %v3314_v2 }
  0xc5   : > { %1164 = vmatpush.msrb.mxu0 %v3312_v61  ;;  %1127 = vmatpush.msra.mxu3 %v3315_v63 }
  0xc6   : > { %1199 = vmatpush.msra.mxu2 %v3317_v5  ;;  %1097 = vmatpush.msrb.mxu1 %v3318_v6 }
  0xc7   : > { %1165 = vmatpush.msrb.mxu0 %v3316_v14  ;;  %1128 = vmatpush.msra.mxu3 %v3319_v9 }
  0xc8   : > { %1214 = vmatpush.msrb.mxu2 %v3320_v11  ;;  %1098 = vmatmul.f32.vlgmr.msrb.gmra.mxu1 %v2547_v62  ;;  %v3329_v62 = vld [vmem:[#allocation96_spill] sm:$0xff] }
  0xc9   : > { %1166 = vmatpush.msrb.mxu0 %v3321_v17  ;;  %1579 = vmatpush.msk.msra.mxu1 %vm280_vm0, %v3322_v18 }
  0xca   : > { %1129 = vmatpush.msra.mxu3 %v3323_v21  ;;  %1215 = vmatpush.msrb.mxu2 %v3324_v29 }
  0xcb   : > { %1167 = vmatpush.msrb.mxu0 %v3325_v32  ;;  %1249 = vmatpush.msra.mxu1 %v3326_v34 }
  0xcc   : > { %1130 = vmatpush.msra.mxu3 %v3327_v35  ;;  %1216 = vmatpush.msrb.mxu2 %v3328_v38 }
  0xcd   : > { %1255 = vmatpush.msrb.mxu1 %v3329_v62  ;;  %1168 = vmatpush.msrb.mxu0 %v3330_v40 }
  0xce   : > { %1131 = vmatpush.msra.mxu3 %v3331_v42  ;;  %1217 = vmatpush.msrb.mxu2 %v2624_v41  ;;  %v3337_v41 = vld [vmem:[#allocation74_spill] sm:$0xff] }
  0xcf   : > { %1256 = vmatpush.msrb.mxu1 %v3332_v43  ;;  %1169 = vmatpush.msrb.mxu0 %v3333_v45 }
  0xd0   : > { %1132 = vmatpush.msra.mxu3 %v3334_v60  ;;  %1218 = vmatpush.msrb.mxu2 %v2646_v58  ;;  %v3340_v58 = vld [vmem:[#allocation78_spill] sm:$0xff] }
  0xd1   : > { %1257 = vmatpush.msrb.mxu1 %v2612_v30  ;;  %1170 = vmatpush.msrb.mxu0 %v3335_v47  ;;  %v3341_v30 = vld [vmem:[#allocation84_spill] sm:$0xff] }
  0xd2   : > { %1133 = vmatpush.msra.mxu3 %v3336_v48  ;;  %1219 = vmatpush.msrb.mxu2 %v2660_v26  ;;  %v3342_v26 = vld [vmem:[#allocation81_spill] sm:$0xff] }
  0xd3   : > { %1258 = vmatpush.msrb.mxu1 %v2631_v37  ;;  %1171 = vmatpush.msrb.mxu0 %v3337_v41  ;;  %v3343_v37 = vld [vmem:[#allocation87_spill] sm:$0xff] }
  0xd4   : > { %1134 = vmatpush.msra.mxu3 %v3338_v50  ;;  %1220 = vmatpush.msrb.mxu2 %v2675_v54  ;;  %v3344_v54 = vld [vmem:[#allocation85_spill] sm:$0xff] }
  0xd5   : > { %1259 = vmatpush.msrb.mxu1 %v3339_v51  ;;  %1172 = vmatpush.msrb.mxu0 %v3340_v58 }
  0xd6   : > { %1135 = vmatpush.msra.mxu3 %v3341_v30  ;;  %1221 = vmatpush.msrb.mxu2 %v2690_v49  ;;  %v3347_v49 = vld [vmem:[#allocation93_spill] sm:$0xff] }
  0xd7   : > { %1260 = vmatpush.msrb.mxu1 %v2668_v46  ;;  %1173 = vmatpush.msrb.mxu0 %v3342_v26  ;;  %v1206_v46 = vld [vmem:[%s1983_s20 + $0x8] sm:$0x7c] }
  0xd8   : > { %1136 = vmatpush.msra.mxu3 %v3343_v37  ;;  %1222 = vmatpush.msrb.mxu2 %v2704_v57  ;;  %v3349_v57 = vld [vmem:[#allocation95_spill] sm:$0xff] }
  0xd9   : > { %1261 = vmatpush.msrb.mxu1 %v2685_v0  ;;  %1174 = vmatpush.msrb.mxu0 %v3344_v54  ;;  %v3348_v0 = vld [vmem:[#allocation92_spill] sm:$0xff] }
  0xda   : > { %1137 = vmatpush.msra.mxu3 %v3345_v52  ;;  %1223 = vmatpush.msrb.mxu2 %v2718_v7  ;;  %v3350_v7 = vld [vmem:[#allocation104_spill] sm:$0xff] }
  0xdb   : > { %1262 = vmatpush.msrb.mxu1 %v2699_v3  ;;  %1175 = vmatpush.msrb.mxu0 %v3346_v55  ;;  %v1210_v3 = vrot.slane %v1206_v46, 2 }
  0xdc   : > { %1138 = vmatpush.msra.mxu3 %v3347_v49  ;;  %1576 = vmatmul.msk.f32.vlgmr.msra.gmra.mxu0 %vm276_vm1, %v2638_v13 }
  0xdd   : > { %1224 = vmatpush.msrb.mxu2 %v2732_v10  ;;  %1263 = vmatpush.msrb.mxu1 %v2713_v1  ;;  %v1205_v1 = vld [vmem:[%s1983_s20] sm:$0x7c]  ;;  %v3351_v10 = vld [vmem:[#allocation99_spill] sm:$0xff] }
  0xde   : > { %1139 = vmatmul.f32.vlgmr.msra.gmra.mxu3 %v2807_v16  ;;  %1176 = vmatpush.msrb.mxu0 %v3348_v0 }
  0xdf   : > { %1578 = vmatmul.msk.f32.vlgmr.msra.gmra.mxu2 %vm276_vm1, %v2638_v13  ;;  %1264 = vmatpush.msrb.mxu1 %v2727_v4  ;;  %v3352_v13 = vld [vmem:[#allocation103_spill] sm:$0xff]  ;;  %v3353_v4 = vld [vmem:[#allocation105_spill] sm:$0xff] }
  0xe0   : > { %1225 = vmatpush.msrb.mxu2 %v2746_v15  ;;  %1177 = vmatpush.msrb.mxu0 %v3349_v57  ;;  %v1209_v15 = vrot.slane %v1205_v1, 2 }
  0xe1   : > { %1581 = vmatpush.msk.msrb.mxu3 %vm280_vm0, %v3350_v7  ;;  %1265 = vmatpush.msrb.mxu1 %v2741_v8  ;;  %v429_v8 = vpop.f32.mrf.mxu3 }
  0xe2   : > { %1226 = vmatpush.msrb.mxu2 %v2760_v19  ;;  %1178 = vmatpush.msrb.mxu0 %v3351_v10  ;;  %v3354_v19 = vld [vmem:[#allocation107_spill] sm:$0xff] }
  0xe3   : > { %1580 = vmatmul.msk.f32.vlgmr.msra.gmra.mxu1 %vm276_vm1, %v1210_v3  ;;  %1290 = vmatpush.msrb.mxu3 %v3353_v4 }
  0xe4   : > { %1227 = vmatpush.msrb.mxu2 %v2774_v23  ;;  %1266 = vmatpush.msrb.mxu1 %v2755_v12  ;;  %v409_v12 = vpop.f32.mrf.mxu1  ;;  %v523_v23 = vpop.f32.mrf.mxu2 }
  0xe5   : > { %1179 = vmatpush.msrb.mxu0 %v3352_v13  ;;  %v430_v63 = vadd.f32 %v429_v8, %v409_v12 }
  0xe6   : > { %1180 = vmatmul.f32.vlgmr.msrb.gmra.mxu0 %v2807_v16  ;;  %1228 = vmatpush.msrb.mxu2 %v2788_v27  ;;  %v472_v27 = vpop.f32.mrf.mxu0 }
  0xe7   : > { %1267 = vmatpush.msrb.mxu1 %v3354_v19  ;;  %1582 = vmatmul.msk.f32.vlgmr.msrb.gmra.mxu3 %vm276_vm1, %v1210_v3 }
  0xe8   : > { %1229 = vmatpush.msrb.mxu2 %v2803_v31 }
  0xe9   : > { %1268 = vmatpush.msrb.mxu1 %v2783_v20  ;;  %1230 = vmatmul.f32.vlgmr.msrb.gmra.mxu2 %v1209_v15  ;;  %v452_v16 = vpop.f32.mrf.mxu3 }
  0xea   : > { %v453_v5 = vadd.f32 %v452_v16, %v430_v63 }
  0xeb   : > { %1269 = vmatpush.msrb.mxu1 %v2798_v24 }
  0xec   : > { %v606_v56 = vpop.f32.mrf.mxu1  ;;  %v741_v61 = vpop.f32.mrf.mxu2 }
  0xed   : > { %1270 = vmatpush.msrb.mxu1 %v2814_v28  ;;  %v473_v28 = vadd.f32 %v472_v27, %v453_v5 }
  0xee   : > { %1271 = vmatmul.f32.vlgmr.msrb.gmra.mxu1 %v1209_v15  ;;  %v586_v2 = vpop.f32.mrf.mxu0 }
  0xef   : > { %v607_v24 = vadd.f32 %v606_v56, %v586_v2 }
  0xf1   : > { %v543_v59 = vpop.f32.mrf.mxu3  ;;  %v609_v21 = vadd.f32 %v607_v24, %v473_v28 }
  0xf2   : > { %v544_v6 = vadd.f32 %v543_v59, %v523_v23 }
  0xf4   : > { %v678_v53 = vpop.f32.mrf.mxu1  ;;  %v546_v18 = vadd.f32 %v544_v6, %v2961_v44 }
  0xf9   : > { %v658_v31 = vpop.f32.mrf.mxu3 }
  0xfa   : > { %v679_v17 = vadd.f32 %v678_v53, %v658_v31 }
  0xfc   : > { %v721_v20 = vpop.f32.mrf.mxu1  ;;  %v681_v33 = vadd.f32 %v679_v17, %v546_v18 }
  0xfd   : > { %v813_v14 = vpop.f32.mrf.mxu2  ;;  %v742_v11 = vadd.f32 %v741_v61, %v721_v20  ;;  %v1595_v61 = vld [vmem:[%s3034_s3] ss:$0 sm:$0xff] }
  0xff   : > { %v744_v32 = vadd.f32 %v742_v11, %v609_v21 }
 0x10f   : > { %v793_v9 = vpop.f32.mrf.mxu0 }
 0x110   : > { %v814_v22 = vadd.f32 %v813_v14, %v793_v9 }
 0x111   : > { %v876_v25 = vpop.f32.mrf.mxu2 }
 0x112   : > { %v816_v35 = vadd.f32 %v814_v22, %v681_v33 }
 0x115   : > { %v856_v29 = vpop.f32.mrf.mxu3  ;;  %v918_v36 = vpop.f32.mrf.mxu1 }
 0x116   : > { %v877_v34 = vadd.f32 %v876_v25, %v856_v29 }
 0x118   : > { %v879_v38 = vadd.f32 %v877_v34, %v744_v32  ;;  %v958_v39 = vpop.f32.mrf.mxu0 }
 0x11a   : > { %v880_v62 = vmax.f32 %v816_v35, %v879_v38 }
 0x11e   : > { %v898_v42 = vpop.f32.mrf.mxu2 }
 0x11f   : > { %v919_v58 = vadd.f32 %v918_v36, %v898_v42 }
 0x121   : > { %v938_v40 = vpop.f32.mrf.mxu1 }
 0x122   : > { %v939_v52 = vadd.f32 %v938_v40, %v919_v58 }
 0x124   : > { %v959_v3 = vadd.f32 %v958_v39, %v939_v52 }
 0x134   : > { %v998_v43 = vpop.f32.mrf.mxu0 }
 0x138   : > { %v978_v45 = vpop.f32.mrf.mxu3 }
 0x139   : > { %v999_v30 = vadd.f32 %v998_v43, %v978_v45 }
 0x13b   : > { %v1078_v60 = vpop.f32.mrf.mxu1 }
 0x13c   : > { %v1038_v47 = vpop.f32.mrf.mxu2 }
 0x13e   : > { %v1018_v48 = vpop.f32.mrf.mxu0 }
 0x13f   : > { %v1019_v55 = vadd.f32 %v1018_v48, %v999_v30 }
 0x141   : > { %v1039_v57 = vadd.f32 %v1038_v47, %v1019_v55 }
 0x143   : > { %v1119_v41 = vpop.f32.mrf.mxu3 }
 0x145   : > { %v1099_v44 = vpop.f32.mrf.mxu1 }
 0x146   : > { %v1058_v50 = vpop.f32.mrf.mxu2  ;;  %v1120_v46 = vadd.f32 %v1119_v41, %v1099_v44 }
 0x147   : > { %v1079_v0 = vadd.f32 %v1078_v60, %v1058_v50 }
 0x148   : > { %v1122_v13 = vadd.f32 %v1120_v46, %v1039_v57 }
 0x149   : > { %v1081_v4 = vadd.f32 %v1079_v0, %v959_v3 }
 0x159   : > { %v1160_v51 = vpop.f32.mrf.mxu0 }
 0x160   : > { %v1251_v37 = vpop.f32.mrf.mxu1 }
 0x161   : > { %v1140_v26 = vpop.f32.mrf.mxu3 }
 0x162   : > { %v1201_v54 = vpop.f32.mrf.mxu2  ;;  %v1161_v7 = vadd.f32 %v1160_v51, %v1140_v26 }
 0x163   : > { %v1181_v49 = vpop.f32.mrf.mxu0 }
 0x164   : > { %v1202_v1 = vadd.f32 %v1201_v54, %v1181_v49  ;;  %v1163_v12 = vadd.f32 %v1161_v7, %v1081_v4 }
 0x166   : > { %v1204_v23 = vadd.f32 %v1202_v1, %v1122_v13 }
 0x16a   : > { %v1292_v10 = vpop.f32.mrf.mxu3 }
 0x16b   : > { %v1272_v15 = vpop.f32.mrf.mxu1 }
 0x16c   : > { %v1293_v19 = vadd.f32 %v1292_v10, %v1272_v15  ;;  %v1231_v8 = vpop.f32.mrf.mxu2 }
 0x16d   : > { %v1252_v16 = vadd.f32 %v1251_v37, %v1231_v8 }
 0x16e   : > { %v1295_v56 = vadd.f32 %v1293_v19, %v1204_v23 }
 0x16f   : > { %v1254_v27 = vadd.f32 %v1252_v16, %v1163_v12 }
 0x171   : > { %v1296_v59 = vmax.f32 %v1254_v27, %v1295_v56 }
 0x173   : > { %v1297_v53 = vmax.f32 %v880_v62, %v1296_v59 }
 0x175   : > { %v1302_v2 = vadd.f32 %v1595_v61, %v1297_v53 }
 0x177   : > { %v1303_v63 = vmax.f32 %v1302_v2, 0.0 }
 0x179   : > { %1305 = vst.msk [vmem:[%s215_s6] sm:$0x1f] %vm1304_vm2, %v1303_v63 }
 0x17a PF: > { %s14_s15 = sadd.s32 1, %s1602_s15  }
 0x17b   : > { %p11_p4 = scmp.ge.s32.totalorder %s14_s15, 4  }
 0x17d   :  { %13 = sbr.rel (!%p11_p4) target bundleno = 1 (0x1), region = 78 }

// kernel: net_forward.3
= control target key start
LH: loop header
LB: loop body
LE: loop exit
PB: predicated region body
PF: predicated region fallthrough
CT: control target
= control target key end

     0   :  { %9 = vsyncpa [#allocation3], 0  ;;  %s1641_s15 = smov 0   ;;  %s2215_s0 = inlined_call_operand.vmem [shape: f32[2,16,32], index: 0, kind: input, shape index: {}]   ;;  %s2216_s1 = inlined_call_operand.vmem [shape: f32[2,16,32], index: 1, kind: input, shape index: {}]   ;;  %s2217_s2 = inlined_call_operand.hbm [shape: f32[2,5,32,140], index: 2, kind: input, shape index: {}]   ;;  %s2218_s3 = inlined_call_operand.vmem [shape: f32[1,140], index: 3, kind: input, shape index: {}]   ;;  %s2219_s4 = inlined_call_operand.vmem [shape: f32[2,14,140], index: 4, kind: output, shape index: {}]  }
   0x1 LB: > { %s151_s18 = sshll.u32 %s2217_s2, 4  ;;  %s1452_s19 = sadd.s32 4294967295, %s1611_s15   ;;  %s1611_s15 = sphi %s1641_s15, %s15_s15   ;;  %s152_s18 = int_to_ptr.hbm [resolvable:$true] %s151_s18 }
   0x2   : > { %p1454_p0 = scmp.ge.s32.totalorder %s1611_s15, 1  ;;  %p140_p1 = scmp.lt.s32.totalorder %s1611_s15, 3 }
   0x3   : > { %p1558_p2 = scmp.eq.s32.totalorder %s1452_s19, 0  ;;  %s1613_s20 = smov [#allocation2]  }
   0x4   : > { %p141_p3 = pnand %p1454_p0, %p140_p1  ;;  %s153_s21 = sshll.u32 %s1613_s20, 4  ;;  %s154_s21 = int_to_ptr.vmem [resolvable:$true] %s153_s21 }
   0x5   : > { %s1614_s22 = smov 256   ;;  %s1615_s23 = smov 16  }
   0x6   : > { %p1554_p4 = pneg %p141_p3  ;;  %188 = sbr.rel (%p141_p3) target bundleno = 318 (0x13e), region = 36 }
   0x8   : > { %p1555_p5 = pnand %p1558_p2, %p1554_p4 }
   0xa   : > { %1557 = dma.hbm_to_vmem [thread:$0]  (!%p1555_p5), %s152_s18, 10240, %s154_s21, [#allocation3], %s1614_s22, %s1614_s22, %s1615_s23  }
   0xb   : > { %1606 = dma.done.wait (%p1558_p2), [#allocation3], 10240  }
   0xc   : > { %1608 = vsyncadd (%p1558_p2), [#allocation3], 4294957056  ;;  %p220_p6 = scmp.lt.s32.totalorder %s1452_s19, 1  ;;  %v1654_v0 = vld [vmem:[#allocation2 + $0x70] sm:$0xff]  ;;  %v1656_v1 = vld [vmem:[#allocation2 + $0x78] sm:$0xff]  ;;  %vm265_vm0 = vcmask 261120  }
   0xd   : > { %v1658_v2 = vld [vmem:[#allocation2 + $0x30] sm:$0xff]  ;;  %284 = vmatpush.msra.mxu0 %v1654_v0  ;;  %307 = vmatpush.msra.mxu1 %v1656_v1  ;;  %v1663_v3 = vld [vmem:[#allocation2 + $0x38] sm:$0xff]  ;;  %v1665_v4 = vld [vmem:[#allocation2 + $0x60] sm:$0xff]  ;;  %vm1368_vm1 = vcmask 97280   ;;  %vm1371_vm2 = vcmask 95232  }
   0xe   : > { %s2287_s19 = smov (!%p220_p6, %s1452_s19), 1  ;;  %v1667_v5 = vld [vmem:[#allocation2 + $0x68] sm:$0xff]  ;;  %336 = vmatpush.msra.mxu2 %v1658_v2  ;;  %359 = vmatpush.msra.mxu3 %v1663_v3  ;;  %v1671_v6 = vld [vmem:[#allocation2 + $0x20] sm:$0xff]  ;;  %v1675_v8 = vld [vmem:[#allocation2 + $0x50] sm:$0xff] }
   0xf   : > { %s1547_s24 = sshll.u32 %s2287_s19, 4  ;;  %v1673_v7 = vld [vmem:[#allocation2 + $0x28] sm:$0xff]  ;;  %285 = vmatpush.msra.mxu0 %v1665_v4  ;;  %308 = vmatpush.msra.mxu1 %v1667_v5  ;;  %v1679_v9 = vld [vmem:[#allocation2 + $0x58] sm:$0xff]  ;;  %v1681_v10 = vld [vmem:[#allocation2 + $0x10] sm:$0xff]  ;;  %s1549_s7 = sshll.u32 %s2287_s19, 5 }
  0x10   : > { %v1683_v11 = vld [vmem:[#allocation2 + $0x18] sm:$0xff]  ;;  %s1688_s27 = scalar_lea.vmem %s2216_s1, %s1547_s24  ;;  %337 = vmatpush.msra.mxu2 %v1671_v6  ;;  %360 = vmatpush.msra.mxu3 %v1673_v7  ;;  %v1692_v12 = vld [vmem:[#allocation2 + $0x40] sm:$0xff]  ;;  %v1694_v13 = vld [vmem:[#allocation2 + $0x48] sm:$0xff]  ;;  %s1699_s30 = scalar_lea.vmem %s2215_s0, %s1547_s24 }
  0x11   : > { %286 = vmatpush.msra.mxu0 %v1675_v8  ;;  %309 = vmatpush.msra.mxu1 %v1679_v9  ;;  %v1703_v14 = vld [vmem:[#allocation2] sm:$0xff]  ;;  %v1705_v15 = vld [vmem:[#allocation2 + $0x8] sm:$0xff]  ;;  %v1719_v18 = vld [vmem:[#allocation2 + $0x170] sm:$0xff]  ;;  %s234_s10 = scalar_lea.vmem %s2219_s4, %s1549_s7 }
  0x12   : > { %338 = vmatpush.msra.mxu2 %v1681_v10  ;;  %361 = vmatpush.msra.mxu3 %v1683_v11  ;;  %v1710_v16 = vld [vmem:[%s1688_s27] sm:$0xff]  ;;  %v1721_v19 = vld [vmem:[#allocation2 + $0x178] sm:$0xff]  ;;  %v1727_v20 = vld [vmem:[#allocation2 + $0x1b0] sm:$0xff] }
  0x13   : > { %287 = vmatpush.msra.mxu0 %v1692_v12  ;;  %310 = vmatpush.msra.mxu1 %v1694_v13  ;;  %v1715_v17 = vld [vmem:[%s1699_s30] sm:$0xff]  ;;  %v1729_v21 = vld [vmem:[#allocation2 + $0x1b8] sm:$0xff]  ;;  %v1737_v23 = vld [vmem:[#allocation2 + $0x168] sm:$0xff] }
  0x14   : > { %339 = vmatpush.msra.mxu2 %v1703_v14  ;;  %362 = vmatpush.msra.mxu3 %v1705_v15  ;;  %v1735_v22 = vld [vmem:[#allocation2 + $0x160] sm:$0xff]  ;;  %v1743_v25 = vld [vmem:[#allocation2 + $0x1a8] sm:$0xff]  ;;  %v1747_v26 = vld [vmem:[#allocation2 + $0x150] sm:$0xff] }
  0x15   : > { %1465 = vmatmul.msk.f32.vlgmr.msra.gmra.mxu0 %vm265_vm0, %v1710_v16  ;;  %1467 = vmatmul.msk.f32.vlgmr.msra.gmra.mxu1 %vm265_vm0, %v1710_v16  ;;  %v1741_v24 = vld [vmem:[#allocation2 + $0x1a0] sm:$0xff]  ;;  %v1749_v27 = vld [vmem:[#allocation2 + $0x158] sm:$0xff]  ;;  %v1753_v28 = vld [vmem:[#allocation2 + $0x190] sm:$0xff] }
  0x16   : > { %1469 = vmatmul.msk.f32.vlgmr.msra.gmra.mxu2 %vm265_vm0, %v1715_v17  ;;  %1471 = vmatmul.msk.f32.vlgmr.msra.gmra.mxu3 %vm265_vm0, %v1715_v17  ;;  %v1755_v29 = vld [vmem:[#allocation2 + $0x198] sm:$0xff]  ;;  %v1758_v30 = vld [vmem:[%s1688_s27 + $0x8] sm:$0x3f]  ;;  %v1767_v32 = vld [vmem:[#allocation2 + $0x140] sm:$0xff] }
  0x17   : > { %437 = vmatpush.msrb.mxu2 %v1719_v18  ;;  %460 = vmatpush.msrb.mxu3 %v1721_v19  ;;  %v1763_v31 = vld [vmem:[%s1699_s30 + $0x8] sm:$0x3f]  ;;  %v1777_v34 = vld [vmem:[#allocation2 + $0x180] sm:$0xff]  ;;  %v1785_v36 = vld [vmem:[#allocation2 + $0x1f0] sm:$0xff] }
  0x18   : > { %391 = vmatpush.msrb.mxu0 %v1727_v20  ;;  %414 = vmatpush.msrb.mxu1 %v1729_v21  ;;  %v1769_v33 = vld [vmem:[#allocation2 + $0x148] sm:$0xff]  ;;  %v1787_v37 = vld [vmem:[#allocation2 + $0x1f8] sm:$0xff]  ;;  %v1791_v38 = vld [vmem:[#allocation2 + $0xb0] sm:$0xff] }
  0x19   : > { %438 = vmatpush.msrb.mxu2 %v1735_v22  ;;  %461 = vmatpush.msrb.mxu3 %v1737_v23  ;;  %v1779_v35 = vld [vmem:[#allocation2 + $0x188] sm:$0xff]  ;;  %v1793_v39 = vld [vmem:[#allocation2 + $0xb8] sm:$0xff]  ;;  %v1797_v40 = vld [vmem:[#allocation2 + $0x1e0] sm:$0xff] }
  0x1a   : > { %392 = vmatpush.msrb.mxu0 %v1741_v24  ;;  %415 = vmatpush.msrb.mxu1 %v1743_v25  ;;  %v1799_v41 = vld [vmem:[#allocation2 + $0x1e8] sm:$0xff]  ;;  %v1803_v42 = vld [vmem:[#allocation2 + $0xa0] sm:$0xff]  ;;  %v1811_v44 = vld [vmem:[#allocation2 + $0x1d0] sm:$0xff] }
  0x1b   : > { %439 = vmatpush.msrb.mxu2 %v1747_v26  ;;  %462 = vmatpush.msrb.mxu3 %v1749_v27  ;;  %v1805_v43 = vld [vmem:[#allocation2 + $0xa8] sm:$0xff]  ;;  %v1813_v45 = vld [vmem:[#allocation2 + $0x1d8] sm:$0xff]  ;;  %v1821_v46 = vld [vmem:[#allocation2 + $0x90] sm:$0xff] }
  0x1c   : > { %393 = vmatpush.msrb.mxu0 %v1753_v28  ;;  %416 = vmatpush.msrb.mxu1 %v1755_v29  ;;  %v1823_v47 = vld [vmem:[#allocation2 + $0x98] sm:$0xff]  ;;  %v1829_v48 = vld [vmem:[#allocation2 + $0x1c0] sm:$0xff]  ;;  %v1831_v49 = vld [vmem:[#allocation2 + $0x1c8] sm:$0xff] }
  0x1d   : > { %1466 = vmatmul.msk.f32.gmra.mxu0 %vm265_vm0, %v1758_v30  ;;  %1468 = vmatmul.msk.f32.gmra.mxu1 %vm265_vm0, %v1758_v30  ;;  %v1835_v50 = vld [vmem:[#allocation2 + $0x80] sm:$0xff]  ;;  %v1837_v51 = vld [vmem:[#allocation2 + $0x88] sm:$0xff]  ;;  %v1841_v52 = vld [vmem:[#allocation2 + $0x230] sm:$0xff] }
  0x1e   : > { %1470 = vmatmul.msk.f32.gmra.mxu2 %vm265_vm0, %v1763_v31  ;;  %1472 = vmatmul.msk.f32.gmra.mxu3 %vm265_vm0, %v1763_v31  ;;  %v1843_v53 = vld [vmem:[#allocation2 + $0x238] sm:$0xff]  ;;  %v1847_v54 = vld [vmem:[#allocation2 + $0xf0] sm:$0xff]  ;;  %v1855_v56 = vld [vmem:[#allocation2 + $0x220] sm:$0xff] }
  0x1f   : > { %440 = vmatpush.msrb.mxu2 %v1767_v32  ;;  %463 = vmatpush.msrb.mxu3 %v1769_v33  ;;  %2242 = vst [vmem:[#allocation5_spill] sm:$0xff] %v1847_v54  ;;  %v1849_v55 = vld [vmem:[#allocation2 + $0xf8] sm:$0xff]  ;;  %v1857_v57 = vld [vmem:[#allocation2 + $0x228] sm:$0xff]  ;;  %v1865_v58 = vld [vmem:[#allocation2 + $0xe0] sm:$0xff] }
  0x20   : > { %394 = vmatpush.msrb.mxu0 %v1777_v34  ;;  %417 = vmatpush.msrb.mxu1 %v1779_v35  ;;  %2243 = vst [vmem:[#allocation6_spill] sm:$0xff] %v1849_v55  ;;  %v1867_v59 = vld [vmem:[#allocation2 + $0xe8] sm:$0xff]  ;;  %v1873_v60 = vld [vmem:[#allocation2 + $0x210] sm:$0xff]  ;;  %v1875_v61 = vld [vmem:[#allocation2 + $0x218] sm:$0xff] }
  0x21   : > { %559 = vmatpush.msra.mxu2 %v1785_v36  ;;  %582 = vmatpush.msra.mxu3 %v1787_v37  ;;  %2244 = vst [vmem:[#allocation7_spill] sm:$0xff] %v1855_v56  ;;  %v1879_v62 = vld [vmem:[#allocation2 + $0xd0] sm:$0xff]  ;;  %v1881_v63 = vld [vmem:[#allocation2 + $0xd8] sm:$0xff] }
  0x22   : > { %500 = vmatpush.msra.mxu0 %v1791_v38  ;;  %523 = vmatpush.msra.mxu1 %v1793_v39  ;;  %2245 = vst [vmem:[#allocation8_spill] sm:$0xff] %v1857_v57 }
  0x23   : > { %560 = vmatpush.msra.mxu2 %v1797_v40  ;;  %583 = vmatpush.msra.mxu3 %v1799_v41  ;;  %2246 = vst [vmem:[#allocation9_spill] sm:$0xff] %v1865_v58 }
  0x24   : > { %501 = vmatpush.msra.mxu0 %v1803_v42  ;;  %524 = vmatpush.msra.mxu1 %v1805_v43  ;;  %2247 = vst [vmem:[#allocation10_spill] sm:$0xff] %v1867_v59 }
  0x25   : > { %1473 = vmatmul.msk.f32.vlgmr.msrb.gmra.mxu0 %vm265_vm0, %v1710_v16  ;;  %1475 = vmatmul.msk.f32.vlgmr.msrb.gmra.mxu1 %vm265_vm0, %v1710_v16  ;;  %2248 = vst [vmem:[#allocation11_spill] sm:$0xff] %v1873_v60 }
  0x26   : > { %1477 = vmatmul.msk.f32.vlgmr.msrb.gmra.mxu2 %vm265_vm0, %v1715_v17  ;;  %1479 = vmatmul.msk.f32.vlgmr.msrb.gmra.mxu3 %vm265_vm0, %v1715_v17  ;;  %2249 = vst [vmem:[#allocation12_spill] sm:$0xff] %v1875_v61  ;;  %v1885_v17 = vld [vmem:[#allocation2 + $0x200] sm:$0xff] }
  0x27   : > { %561 = vmatpush.msra.mxu2 %v1811_v44  ;;  %584 = vmatpush.msra.mxu3 %v1813_v45  ;;  %2250 = vst [vmem:[#allocation13_spill] sm:$0xff] %v1879_v62 }
  0x28   : > { %502 = vmatpush.msra.mxu0 %v1821_v46  ;;  %525 = vmatpush.msra.mxu1 %v1823_v47  ;;  %2251 = vst [vmem:[#allocation14_spill] sm:$0xff] %v1881_v63 }
  0x29   : > { %562 = vmatpush.msra.mxu2 %v1829_v48  ;;  %585 = vmatpush.msra.mxu3 %v1831_v49  ;;  %2252 = vst [vmem:[#allocation15_spill] sm:$0xff] %v1885_v17 }
  0x2a   : > { %503 = vmatpush.msra.mxu0 %v1835_v50  ;;  %526 = vmatpush.msra.mxu1 %v1837_v51 }
  0x2b   : > { %685 = vmatpush.msrb.mxu2 %v1841_v52  ;;  %708 = vmatpush.msrb.mxu3 %v1843_v53 }
  0x2c   : > { %626 = vmatpush.msrb.mxu0 %v1847_v54  ;;  %649 = vmatpush.msrb.mxu1 %v1849_v55  ;;  %v1887_v55 = vld [vmem:[#allocation2 + $0x208] sm:$0xff]  ;;  %v1938_v54 = vld [vmem:[#allocation2 + $0x110] sm:$0xff] }
  0x2d   : > { %1474 = vmatmul.msk.f32.gmra.mxu0 %vm265_vm0, %v1758_v30  ;;  %1476 = vmatmul.msk.f32.gmra.mxu1 %vm265_vm0, %v1758_v30  ;;  %2253 = vst [vmem:[#allocation16_spill] sm:$0xff] %v1887_v55 }
  0x2e   : > { %1478 = vmatmul.msk.f32.gmra.mxu2 %vm265_vm0, %v1763_v31  ;;  %1480 = vmatmul.msk.f32.gmra.mxu3 %vm265_vm0, %v1763_v31  ;;  %v1891_v31 = vld [vmem:[#allocation2 + $0xc0] sm:$0xff] }
  0x2f   : > { %686 = vmatpush.msrb.mxu2 %v1855_v56  ;;  %709 = vmatpush.msrb.mxu3 %v1857_v57  ;;  %2254 = vst [vmem:[#allocation17_spill] sm:$0xff] %v1891_v31  ;;  %v1893_v56 = vld [vmem:[#allocation2 + $0xc8] sm:$0xff] }
  0x30   : > { %627 = vmatpush.msrb.mxu0 %v1865_v58  ;;  %650 = vmatpush.msrb.mxu1 %v1867_v59  ;;  %2255 = vst [vmem:[#allocation18_spill] sm:$0xff] %v1893_v56  ;;  %v1896_v57 = vld [vmem:[%s1699_s30 + $0x1] sm:$0xff]  ;;  %v1932_v59 = vld [vmem:[#allocation2 + $0x250] sm:$0xff]  ;;  %v1934_v58 = vld [vmem:[#allocation2 + $0x258] sm:$0xff] }
  0x31   : > { %687 = vmatpush.msrb.mxu2 %v1873_v60  ;;  %710 = vmatpush.msrb.mxu3 %v1875_v61  ;;  %v1904_v60 = vld [vmem:[#allocation2 + $0x270] sm:$0xff]  ;;  %v1906_v61 = vld [vmem:[#allocation2 + $0x278] sm:$0xff]  ;;  %2261 = vst [vmem:[#allocation24_spill] sm:$0xff] %v1932_v59 }
  0x32   : > { %628 = vmatpush.msrb.mxu0 %v1879_v62  ;;  %651 = vmatpush.msrb.mxu1 %v1881_v63  ;;  %2256 = vst [vmem:[#allocation19_spill] sm:$0xff] %v1904_v60  ;;  %v1912_v62 = vld [vmem:[#allocation2 + $0x130] sm:$0xff]  ;;  %v1914_v63 = vld [vmem:[#allocation2 + $0x138] sm:$0xff] }
  0x33   : > { %688 = vmatpush.msrb.mxu2 %v1885_v17  ;;  %711 = vmatpush.msrb.mxu3 %v1887_v55  ;;  %2257 = vst [vmem:[#allocation20_spill] sm:$0xff] %v1906_v61  ;;  %v1926_v55 = vld [vmem:[#allocation2 + $0x120] sm:$0xff]  ;;  %v1928_v17 = vld [vmem:[#allocation2 + $0x128] sm:$0xff] }
  0x34   : > { %629 = vmatpush.msrb.mxu0 %v1891_v31  ;;  %652 = vmatpush.msrb.mxu1 %v1893_v56  ;;  %2258 = vst [vmem:[#allocation21_spill] sm:$0xff] %v1914_v63  ;;  %v1920_v56 = vld [vmem:[#allocation2 + $0x260] sm:$0xff]  ;;  %v1922_v31 = vld [vmem:[#allocation2 + $0x268] sm:$0xff] }
  0x35   : > { %1481 = vmatmul.msk.f32.vlgmr.msra.gmra.mxu0 %vm265_vm0, %v1896_v57  ;;  %1483 = vmatmul.msk.f32.vlgmr.msra.gmra.mxu1 %vm265_vm0, %v1896_v57  ;;  %2259 = vst [vmem:[#allocation22_spill] sm:$0xff] %v1920_v56 }
  0x36   : > { %1485 = vmatmul.msk.f32.vlgmr.msra.gmra.mxu2 %vm265_vm0, %v1896_v57  ;;  %1487 = vmatmul.msk.f32.vlgmr.msra.gmra.mxu3 %vm265_vm0, %v1896_v57  ;;  %2260 = vst [vmem:[#allocation23_spill] sm:$0xff] %v1928_v17 }
  0x37   : > { %811 = vmatpush.msra.mxu2 %v1904_v60  ;;  %834 = vmatpush.msra.mxu3 %v1906_v61  ;;  %v1940_v60 = vld [vmem:[#allocation2 + $0x118] sm:$0xff]  ;;  %v1943_v61 = vld [vmem:[%s1699_s30 + $0x9] sm:$0x3f] }
  0x38   : > { %752 = vmatpush.msra.mxu0 %v1912_v62  ;;  %775 = vmatpush.msra.mxu1 %v1914_v63  ;;  %2262 = vst [vmem:[#allocation25_spill] sm:$0xff] %v1940_v60  ;;  %v1949_v63 = vld [vmem:[#allocation2 + $0x240] sm:$0xff] }
  0x39   : > { %812 = vmatpush.msra.mxu2 %v1920_v56  ;;  %835 = vmatpush.msra.mxu3 %v1922_v31  ;;  %v1951_v56 = vld [vmem:[#allocation2 + $0x248] sm:$0xff] }
  0x3a   : > { %753 = vmatpush.msra.mxu0 %v1926_v55  ;;  %776 = vmatpush.msra.mxu1 %v1928_v17  ;;  %v1959_v17 = vld [vmem:[#allocation2 + $0x100] sm:$0xff] }
  0x3b   : > { %813 = vmatpush.msra.mxu2 %v1932_v59  ;;  %836 = vmatpush.msra.mxu3 %v1934_v58  ;;  %v1961_v59 = vld [vmem:[#allocation2 + $0x108] sm:$0xff] }
  0x3c   : > { %754 = vmatpush.msra.mxu0 %v1938_v54  ;;  %777 = vmatpush.msra.mxu1 %v1940_v60  ;;  %2263 = vst [vmem:[#allocation26_spill] sm:$0xff] %v1961_v59  ;;  %v1972_v60 = vld [vmem:[%s1688_s27 + $0x1] sm:$0xff] }
  0x3d   : > { %1482 = vmatmul.msk.f32.gmra.mxu0 %vm265_vm0, %v1943_v61  ;;  %1484 = vmatmul.msk.f32.gmra.mxu1 %vm265_vm0, %v1943_v61 }
  0x3e   : > { %1486 = vmatmul.msk.f32.gmra.mxu2 %vm265_vm0, %v1943_v61  ;;  %1488 = vmatmul.msk.f32.gmra.mxu3 %vm265_vm0, %v1943_v61 }
  0x3f   : > { %814 = vmatpush.msra.mxu2 %v1949_v63  ;;  %837 = vmatpush.msra.mxu3 %v1951_v56 }
  0x40   : > { %755 = vmatpush.msra.mxu0 %v1959_v17  ;;  %778 = vmatpush.msra.mxu1 %v1961_v59  ;;  %v1989_v59 = vld [vmem:[%s1688_s27 + $0x9] sm:$0x3f] }
  0x45   : > { %1489 = vmatmul.msk.f32.vlgmr.msrb.gmra.mxu0 %vm265_vm0, %v1972_v60  ;;  %1491 = vmatmul.msk.f32.vlgmr.msrb.gmra.mxu1 %vm265_vm0, %v1972_v60 }
  0x46   : > { %1493 = vmatmul.msk.f32.vlgmr.msrb.gmra.mxu2 %vm265_vm0, %v1972_v60  ;;  %1495 = vmatmul.msk.f32.vlgmr.msrb.gmra.mxu3 %vm265_vm0, %v1972_v60 }
  0x47   : > { %911 = vmatpush.msrb.mxu2 %v1658_v2  ;;  %934 = vmatpush.msrb.mxu3 %v1663_v3  ;;  %v2264_v2 = vld [vmem:[#allocation5_spill] sm:$0xff]  ;;  %v2265_v3 = vld [vmem:[#allocation6_spill] sm:$0xff] }
  0x48   : > { %865 = vmatpush.msrb.mxu0 %v1654_v0  ;;  %888 = vmatpush.msrb.mxu1 %v1656_v1  ;;  %v2010_v0 = vld [vmem:[%s1699_s30 + $0x2] sm:$0xff]  ;;  %v2027_v1 = vld [vmem:[%s1699_s30 + $0xa] sm:$0x3f] }
  0x49   : > { %912 = vmatpush.msrb.mxu2 %v1671_v6  ;;  %935 = vmatpush.msrb.mxu3 %v1673_v7  ;;  %v2268_v6 = vld [vmem:[#allocation9_spill] sm:$0xff]  ;;  %v2269_v7 = vld [vmem:[#allocation10_spill] sm:$0xff] }
  0x4a   : > { %866 = vmatpush.msrb.mxu0 %v1665_v4  ;;  %889 = vmatpush.msrb.mxu1 %v1667_v5  ;;  %v2266_v4 = vld [vmem:[#allocation7_spill] sm:$0xff]  ;;  %v2267_v5 = vld [vmem:[#allocation8_spill] sm:$0xff] }
  0x4b   : > { %913 = vmatpush.msrb.mxu2 %v1681_v10  ;;  %936 = vmatpush.msrb.mxu3 %v1683_v11  ;;  %v2272_v10 = vld [vmem:[#allocation13_spill] sm:$0xff]  ;;  %v2273_v11 = vld [vmem:[#allocation14_spill] sm:$0xff] }
  0x4c   : > { %867 = vmatpush.msrb.mxu0 %v1675_v8  ;;  %890 = vmatpush.msrb.mxu1 %v1679_v9  ;;  %v2270_v8 = vld [vmem:[#allocation11_spill] sm:$0xff]  ;;  %v2271_v9 = vld [vmem:[#allocation12_spill] sm:$0xff] }
  0x4d   : > { %1490 = vmatmul.msk.f32.gmra.mxu0 %vm265_vm0, %v1989_v59  ;;  %1492 = vmatmul.msk.f32.gmra.mxu1 %vm265_vm0, %v1989_v59 }
  0x4e   : > { %1494 = vmatmul.msk.f32.gmra.mxu2 %vm265_vm0, %v1989_v59  ;;  %1496 = vmatmul.msk.f32.gmra.mxu3 %vm265_vm0, %v1989_v59 }
  0x4f   : > { %914 = vmatpush.msrb.mxu2 %v1703_v14  ;;  %937 = vmatpush.msrb.mxu3 %v1705_v15  ;;  %v2276_v14 = vld [vmem:[#allocation17_spill] sm:$0xff]  ;;  %v2277_v15 = vld [vmem:[#allocation18_spill] sm:$0xff] }
  0x50   : > { %868 = vmatpush.msrb.mxu0 %v1692_v12  ;;  %891 = vmatpush.msrb.mxu1 %v1694_v13  ;;  %v2274_v12 = vld [vmem:[#allocation15_spill] sm:$0xff]  ;;  %v2275_v13 = vld [vmem:[#allocation16_spill] sm:$0xff] }
  0x55   : > { %1497 = vmatmul.msk.f32.vlgmr.msra.gmra.mxu0 %vm265_vm0, %v2010_v0  ;;  %1499 = vmatmul.msk.f32.vlgmr.msra.gmra.mxu1 %vm265_vm0, %v2010_v0 }
  0x56   : > { %1501 = vmatmul.msk.f32.vlgmr.msra.gmra.mxu2 %vm265_vm0, %v2010_v0  ;;  %1503 = vmatmul.msk.f32.vlgmr.msra.gmra.mxu3 %vm265_vm0, %v2010_v0 }
  0x57   : > { %1003 = vmatpush.msra.mxu2 %v1719_v18  ;;  %1026 = vmatpush.msra.mxu3 %v1721_v19  ;;  %v2279_v18 = vld [vmem:[#allocation20_spill] sm:$0xff]  ;;  %v2280_v19 = vld [vmem:[#allocation21_spill] sm:$0xff] }
  0x58   : > { %957 = vmatpush.msra.mxu0 %v1727_v20  ;;  %980 = vmatpush.msra.mxu1 %v1729_v21  ;;  %v2281_v20 = vld [vmem:[#allocation22_spill] sm:$0xff]  ;;  %v2282_v21 = vld [vmem:[#allocation23_spill] sm:$0xff] }
  0x59   : > { %1004 = vmatpush.msra.mxu2 %v1735_v22  ;;  %1027 = vmatpush.msra.mxu3 %v1737_v23  ;;  %v2283_v22 = vld [vmem:[#allocation24_spill] sm:$0xff]  ;;  %v2284_v23 = vld [vmem:[#allocation25_spill] sm:$0xff] }
  0x5a   : > { %958 = vmatpush.msra.mxu0 %v1741_v24  ;;  %981 = vmatpush.msra.mxu1 %v1743_v25  ;;  %v2285_v24 = vld [vmem:[#allocation26_spill] sm:$0xff] }
  0x5b   : > { %1005 = vmatpush.msra.mxu2 %v1747_v26  ;;  %1028 = vmatpush.msra.mxu3 %v1749_v27 }
  0x5c   : > { %959 = vmatpush.msra.mxu0 %v1753_v28  ;;  %982 = vmatpush.msra.mxu1 %v1755_v29 }
  0x5d   : > { %1498 = vmatmul.msk.f32.gmra.mxu0 %vm265_vm0, %v2027_v1  ;;  %1500 = vmatmul.msk.f32.gmra.mxu1 %vm265_vm0, %v2027_v1 }
  0x5e   : > { %1502 = vmatmul.msk.f32.gmra.mxu2 %vm265_vm0, %v2027_v1  ;;  %1504 = vmatmul.msk.f32.gmra.mxu3 %vm265_vm0, %v2027_v1 }
  0x5f   : > { %1006 = vmatpush.msra.mxu2 %v1767_v32  ;;  %1029 = vmatpush.msra.mxu3 %v1769_v33 }
  0x60   : > { %960 = vmatpush.msra.mxu0 %v1777_v34  ;;  %983 = vmatpush.msra.mxu1 %v1779_v35 }
  0x65   : > { %1505 = vmatmul.msk.f32.vlgmr.msrb.gmra.mxu0 %vm265_vm0, %v1896_v57  ;;  %1507 = vmatmul.msk.f32.vlgmr.msrb.gmra.mxu1 %vm265_vm0, %v1896_v57 }
  0x66   : > { %1509 = vmatmul.msk.f32.vlgmr.msrb.gmra.mxu2 %vm265_vm0, %v1710_v16  ;;  %1511 = vmatmul.msk.f32.vlgmr.msrb.gmra.mxu3 %vm265_vm0, %v1710_v16 }
  0x67   : > { %1099 = vmatpush.msrb.mxu2 %v1785_v36  ;;  %1122 = vmatpush.msrb.mxu3 %v1787_v37 }
  0x68   : > { %1049 = vmatpush.msrb.mxu0 %v1791_v38  ;;  %1072 = vmatpush.msrb.mxu1 %v1793_v39 }
  0x69   : > { %1100 = vmatpush.msrb.mxu2 %v1797_v40  ;;  %1123 = vmatpush.msrb.mxu3 %v1799_v41  ;;  %v1237_v40 = vld [vmem:[%s1688_s27 + $0x2] sm:$0xff] }
  0x6a   : > { %1050 = vmatpush.msrb.mxu0 %v1803_v42  ;;  %1073 = vmatpush.msrb.mxu1 %v1805_v43 }
  0x6b   : > { %1101 = vmatpush.msrb.mxu2 %v1811_v44  ;;  %1124 = vmatpush.msrb.mxu3 %v1813_v45 }
  0x6c   : > { %1051 = vmatpush.msrb.mxu0 %v1821_v46  ;;  %1074 = vmatpush.msrb.mxu1 %v1823_v47  ;;  %v1238_v47 = vld [vmem:[%s1688_s27 + $0xa] sm:$0x3f] }
  0x6d   : > { %1506 = vmatmul.msk.f32.gmra.mxu0 %vm265_vm0, %v1943_v61  ;;  %1508 = vmatmul.msk.f32.gmra.mxu1 %vm265_vm0, %v1943_v61 }
  0x6e   : > { %1510 = vmatmul.msk.f32.gmra.mxu2 %vm265_vm0, %v1758_v30  ;;  %1512 = vmatmul.msk.f32.gmra.mxu3 %vm265_vm0, %v1758_v30 }
  0x6f   : > { %1102 = vmatpush.msrb.mxu2 %v1829_v48  ;;  %1125 = vmatpush.msrb.mxu3 %v1831_v49 }
  0x70   : > { %1052 = vmatpush.msrb.mxu0 %v1835_v50  ;;  %1075 = vmatpush.msrb.mxu1 %v1837_v51 }
  0x75   : > { %1513 = vmatmul.msk.f32.vlgmr.msra.gmra.mxu0 %vm265_vm0, %v1896_v57  ;;  %1515 = vmatmul.msk.f32.vlgmr.msra.gmra.mxu1 %vm265_vm0, %v1896_v57 }
  0x76   : > { %1517 = vmatmul.msk.f32.vlgmr.msra.gmra.mxu2 %vm265_vm0, %v1710_v16  ;;  %1519 = vmatmul.msk.f32.vlgmr.msra.gmra.mxu3 %vm265_vm0, %v1710_v16  ;;  %v2278_v16 = vld [vmem:[#allocation19_spill] sm:$0xff] }
  0x77   : > { %1199 = vmatpush.msra.mxu2 %v1841_v52  ;;  %1222 = vmatpush.msra.mxu3 %v1843_v53 }
  0x78   : > { %1149 = vmatpush.msra.mxu0 %v2264_v2  ;;  %1172 = vmatpush.msra.mxu1 %v2265_v3 }
  0x79   : > { %1200 = vmatpush.msra.mxu2 %v2266_v4  ;;  %1223 = vmatpush.msra.mxu3 %v2267_v5 }
  0x7a   : > { %1150 = vmatpush.msra.mxu0 %v2268_v6  ;;  %1173 = vmatpush.msra.mxu1 %v2269_v7 }
  0x7b   : > { %1201 = vmatpush.msra.mxu2 %v2270_v8  ;;  %1224 = vmatpush.msra.mxu3 %v2271_v9 }
  0x7c   : > { %1151 = vmatpush.msra.mxu0 %v2272_v10  ;;  %1174 = vmatpush.msra.mxu1 %v2273_v11 }
  0x7d   : > { %1514 = vmatmul.msk.f32.gmra.mxu0 %vm265_vm0, %v1943_v61  ;;  %1516 = vmatmul.msk.f32.gmra.mxu1 %vm265_vm0, %v1943_v61 }
  0x7e   : > { %1518 = vmatmul.msk.f32.gmra.mxu2 %vm265_vm0, %v1758_v30  ;;  %1520 = vmatmul.msk.f32.gmra.mxu3 %vm265_vm0, %v1758_v30 }
  0x7f   : > { %1202 = vmatpush.msra.mxu2 %v2274_v12  ;;  %1225 = vmatpush.msra.mxu3 %v2275_v13 }
  0x80   : > { %1152 = vmatpush.msra.mxu0 %v2276_v14  ;;  %1175 = vmatpush.msra.mxu1 %v2277_v15 }
  0x85   : > { %1521 = vmatmul.msk.f32.vlgmr.msrb.gmra.mxu0 %vm265_vm0, %v1972_v60  ;;  %1523 = vmatmul.msk.f32.vlgmr.msrb.gmra.mxu1 %vm265_vm0, %v1972_v60 }
  0x86   : > { %1525 = vmatmul.msk.f32.vlgmr.msrb.gmra.mxu2 %vm265_vm0, %v1972_v60  ;;  %1527 = vmatmul.msk.f32.vlgmr.msrb.gmra.mxu3 %vm265_vm0, %v1972_v60 }
  0x87   : > { %1307 = vmatpush.msrb.mxu2 %v2278_v16  ;;  %1330 = vmatpush.msrb.mxu3 %v2279_v18 }
  0x88   : > { %1257 = vmatpush.msrb.mxu0 %v1912_v62  ;;  %1280 = vmatpush.msrb.mxu1 %v2280_v19 }
  0x89   : > { %1308 = vmatpush.msrb.mxu2 %v2281_v20  ;;  %1331 = vmatpush.msrb.mxu3 %v1922_v31 }
  0x8a   : > { %1258 = vmatpush.msrb.mxu0 %v1926_v55  ;;  %1281 = vmatpush.msrb.mxu1 %v2282_v21 }
  0x8b   : > { %1309 = vmatpush.msrb.mxu2 %v2283_v22  ;;  %1332 = vmatpush.msrb.mxu3 %v1934_v58 }
  0x8c   : > { %1259 = vmatpush.msrb.mxu0 %v1938_v54  ;;  %1282 = vmatpush.msrb.mxu1 %v2284_v23 }
  0x8d   : > { %1522 = vmatmul.msk.f32.gmra.mxu0 %vm265_vm0, %v1989_v59  ;;  %1524 = vmatmul.msk.f32.gmra.mxu1 %vm265_vm0, %v1989_v59 }
  0x8e   : > { %1526 = vmatmul.msk.f32.gmra.mxu2 %vm265_vm0, %v1989_v59  ;;  %1528 = vmatmul.msk.f32.gmra.mxu3 %vm265_vm0, %v1989_v59 }
  0x8f   : > { %1310 = vmatpush.msrb.mxu2 %v1949_v63  ;;  %1333 = vmatpush.msrb.mxu3 %v1951_v56 }
  0x90   : > { %1260 = vmatpush.msrb.mxu0 %v1959_v17  ;;  %1283 = vmatpush.msrb.mxu1 %v2285_v24 }
  0x92   : > { %v289_v25 = vpop.f32.mrf.mxu0  ;;  %v312_v26 = vpop.f32.mrf.mxu1 }
  0x95   : > { %1529 = vmatmul.msk.f32.vlgmr.msra.gmra.mxu0 %vm265_vm0, %v2010_v0  ;;  %1531 = vmatmul.msk.f32.vlgmr.msra.gmra.mxu1 %vm265_vm0, %v2010_v0 }
  0x96   : > { %1533 = vmatmul.msk.f32.vlgmr.msra.gmra.mxu2 %vm265_vm0, %v2010_v0  ;;  %1535 = vmatmul.msk.f32.vlgmr.msra.gmra.mxu3 %vm265_vm0, %v2010_v0 }
  0x99   : > { %v341_v27 = vpop.f32.mrf.mxu2  ;;  %v364_v28 = vpop.f32.mrf.mxu3 }
  0x9a   : > { %v342_v29 = vadd.f32 %v341_v27, %v289_v25  ;;  %v365_v30 = vadd.f32 %v364_v28, %v312_v26  ;;  %v292_v32 = vpop.f32.mrf.mxu0  ;;  %v315_v33 = vpop.f32.mrf.mxu1 }
  0x9d   : > { %1530 = vmatmul.msk.f32.gmra.mxu0 %vm265_vm0, %v2027_v1  ;;  %1532 = vmatmul.msk.f32.gmra.mxu1 %vm265_vm0, %v2027_v1 }
  0x9e   : > { %1534 = vmatmul.msk.f32.gmra.mxu2 %vm265_vm0, %v2027_v1  ;;  %1536 = vmatmul.msk.f32.gmra.mxu3 %vm265_vm0, %v2027_v1 }
  0xa1   : > { %v344_v34 = vpop.f32.mrf.mxu2  ;;  %v367_v35 = vpop.f32.mrf.mxu3 }
  0xa2   : > { %v345_v36 = vadd.f32 %v344_v34, %v292_v32  ;;  %v368_v37 = vadd.f32 %v367_v35, %v315_v33  ;;  %v396_v38 = vpop.f32.mrf.mxu0  ;;  %v419_v39 = vpop.f32.mrf.mxu1 }
  0xa5   : > { %1537 = vmatmul.msk.f32.vlgmr.msrb.gmra.mxu0 %vm265_vm0, %v1237_v40  ;;  %1539 = vmatmul.msk.f32.vlgmr.msrb.gmra.mxu1 %vm265_vm0, %v1237_v40 }
  0xa6   : > { %1541 = vmatmul.msk.f32.vlgmr.msrb.gmra.mxu2 %vm265_vm0, %v1237_v40  ;;  %1543 = vmatmul.msk.f32.vlgmr.msrb.gmra.mxu3 %vm265_vm0, %v1237_v40 }
  0xa9   : > { %v442_v41 = vpop.f32.mrf.mxu2  ;;  %v465_v42 = vpop.f32.mrf.mxu3 }
  0xaa   : > { %v443_v43 = vadd.f32 %v442_v41, %v396_v38  ;;  %v466_v44 = vadd.f32 %v465_v42, %v419_v39  ;;  %v399_v45 = vpop.f32.mrf.mxu0  ;;  %v422_v46 = vpop.f32.mrf.mxu1 }
  0xad   : > { %1538 = vmatmul.msk.f32.gmra.mxu0 %vm265_vm0, %v1238_v47  ;;  %1540 = vmatmul.msk.f32.gmra.mxu1 %vm265_vm0, %v1238_v47 }
  0xae   : > { %1542 = vmatmul.msk.f32.gmra.mxu2 %vm265_vm0, %v1238_v47  ;;  %1544 = vmatmul.msk.f32.gmra.mxu3 %vm265_vm0, %v1238_v47 }
  0xb1   : > { %v445_v48 = vpop.f32.mrf.mxu2  ;;  %v468_v49 = vpop.f32.mrf.mxu3 }
  0xb2   : > { %v446_v50 = vadd.f32 %v445_v48, %v399_v45  ;;  %v469_v51 = vadd.f32 %v468_v49, %v422_v46  ;;  %v505_v52 = vpop.f32.mrf.mxu0  ;;  %v528_v53 = vpop.f32.mrf.mxu1 }
  0xb3   : > { %v534_v54 = vadd.f32 %v505_v52, %v342_v29  ;;  %v535_v55 = vadd.f32 %v528_v53, %v365_v30 }
  0xb9   : > { %v564_v56 = vpop.f32.mrf.mxu2  ;;  %v587_v57 = vpop.f32.mrf.mxu3 }
  0xba   : > { %v593_v58 = vadd.f32 %v564_v56, %v443_v43  ;;  %v594_v59 = vadd.f32 %v587_v57, %v466_v44  ;;  %v508_v60 = vpop.f32.mrf.mxu0  ;;  %v531_v61 = vpop.f32.mrf.mxu1 }
  0xbb   : > { %v536_v62 = vadd.f32 %v508_v60, %v345_v36  ;;  %v537_v63 = vadd.f32 %v531_v61, %v368_v37 }
  0xc1   : > { %v567_v17 = vpop.f32.mrf.mxu2  ;;  %v590_v31 = vpop.f32.mrf.mxu3 }
  0xc2   : > { %v595_v0 = vadd.f32 %v567_v17, %v446_v50  ;;  %v596_v1 = vadd.f32 %v590_v31, %v469_v51  ;;  %v631_v2 = vpop.f32.mrf.mxu0  ;;  %v654_v3 = vpop.f32.mrf.mxu1 }
  0xc3   : > { %v660_v4 = vadd.f32 %v631_v2, %v534_v54  ;;  %v661_v5 = vadd.f32 %v654_v3, %v535_v55 }
  0xc9   : > { %v690_v6 = vpop.f32.mrf.mxu2  ;;  %v713_v7 = vpop.f32.mrf.mxu3 }
  0xca   : > { %v719_v8 = vadd.f32 %v690_v6, %v593_v58  ;;  %v720_v9 = vadd.f32 %v713_v7, %v594_v59  ;;  %v634_v10 = vpop.f32.mrf.mxu0  ;;  %v657_v11 = vpop.f32.mrf.mxu1 }
  0xcb   : > { %v662_v12 = vadd.f32 %v634_v10, %v536_v62  ;;  %v663_v13 = vadd.f32 %v657_v11, %v537_v63 }
  0xd1   : > { %v693_v14 = vpop.f32.mrf.mxu2  ;;  %v716_v15 = vpop.f32.mrf.mxu3 }
  0xd2   : > { %v721_v16 = vadd.f32 %v693_v14, %v595_v0  ;;  %v722_v18 = vadd.f32 %v716_v15, %v596_v1  ;;  %v757_v19 = vpop.f32.mrf.mxu0  ;;  %v780_v20 = vpop.f32.mrf.mxu1 }
  0xd3   : > { %v2169_v21 = vadd.f32 %v757_v19, %v660_v4  ;;  %v2171_v22 = vadd.f32 %v780_v20, %v661_v5 }
  0xd9   : > { %v816_v23 = vpop.f32.mrf.mxu2  ;;  %v839_v24 = vpop.f32.mrf.mxu3 }
  0xda   : > { %v2173_v25 = vadd.f32 %v816_v23, %v719_v8  ;;  %v2175_v26 = vadd.f32 %v839_v24, %v720_v9  ;;  %v760_v27 = vpop.f32.mrf.mxu0  ;;  %v783_v28 = vpop.f32.mrf.mxu1  ;;  %v1353_v24 = vld [vmem:[%s2218_s3] sm:$0x3] }
  0xdb   : > { %v2177_v29 = vadd.f32 %v760_v27, %v662_v12  ;;  %v2179_v30 = vadd.f32 %v783_v28, %v663_v13 }
  0xdc   : > { %v849_v32 = vmax.f32 %v2169_v21, %v2173_v25  ;;  %v850_v33 = vmax.f32 %v2171_v22, %v2175_v26 }
  0xe1   : > { %v819_v34 = vpop.f32.mrf.mxu2  ;;  %v842_v35 = vpop.f32.mrf.mxu3 }
  0xe2   : > { %v2185_v36 = vadd.f32 %v819_v34, %v721_v16  ;;  %v2187_v37 = vadd.f32 %v842_v35, %v722_v18  ;;  %v870_v38 = vpop.f32.mrf.mxu0  ;;  %v893_v39 = vpop.f32.mrf.mxu1 }
  0xe4   : > { %v851_v40 = vmax.f32 %v2177_v29, %v2185_v36  ;;  %v852_v41 = vmax.f32 %v2179_v30, %v2187_v37 }
  0xe9   : > { %v916_v42 = vpop.f32.mrf.mxu2  ;;  %v939_v43 = vpop.f32.mrf.mxu3 }
  0xea   : > { %v873_v44 = vpop.f32.mrf.mxu0  ;;  %v896_v45 = vpop.f32.mrf.mxu1  ;;  %v917_v6 = vadd.f32 %v916_v42, %v870_v38  ;;  %v940_v7 = vadd.f32 %v939_v43, %v893_v39 }
  0xf1   : > { %v919_v46 = vpop.f32.mrf.mxu2  ;;  %v942_v47 = vpop.f32.mrf.mxu3 }
  0xf2   : > { %v962_v48 = vpop.f32.mrf.mxu0  ;;  %v985_v49 = vpop.f32.mrf.mxu1  ;;  %v920_v39 = vadd.f32 %v919_v46, %v873_v44  ;;  %v943_v42 = vadd.f32 %v942_v47, %v896_v45 }
  0xf9   : > { %v1008_v50 = vpop.f32.mrf.mxu2  ;;  %v1031_v51 = vpop.f32.mrf.mxu3 }
  0xfa   : > { %v965_v52 = vpop.f32.mrf.mxu0  ;;  %v988_v53 = vpop.f32.mrf.mxu1  ;;  %v1009_v8 = vadd.f32 %v1008_v50, %v962_v48  ;;  %v1032_v9 = vadd.f32 %v1031_v51, %v985_v49  ;;  %v1355_v50 = vperm.slane %v1353_v24, 0 }
 0x101   : > { %v1011_v54 = vpop.f32.mrf.mxu2  ;;  %v1034_v55 = vpop.f32.mrf.mxu3 }
 0x102   : > { %v1054_v56 = vpop.f32.mrf.mxu0  ;;  %v1077_v57 = vpop.f32.mrf.mxu1  ;;  %v1012_v43 = vadd.f32 %v1011_v54, %v965_v52  ;;  %v1035_v48 = vadd.f32 %v1034_v55, %v988_v53 }
 0x103   : > { %v1083_v12 = vadd.f32 %v1054_v56, %v917_v6  ;;  %v1084_v13 = vadd.f32 %v1077_v57, %v940_v7  ;;  %v1356_v56 = vperm.slane %v1353_v24, 1 }
 0x109   : > { %v1104_v58 = vpop.f32.mrf.mxu2  ;;  %v1127_v59 = vpop.f32.mrf.mxu3 }
 0x10a   : > { %v1057_v60 = vpop.f32.mrf.mxu0  ;;  %v1080_v61 = vpop.f32.mrf.mxu1  ;;  %v1133_v14 = vadd.f32 %v1104_v58, %v1009_v8  ;;  %v1134_v15 = vadd.f32 %v1127_v59, %v1032_v9 }
 0x10b   : > { %v1085_v57 = vadd.f32 %v1057_v60, %v920_v39  ;;  %v1086_v58 = vadd.f32 %v1080_v61, %v943_v42 }
 0x111   : > { %v1107_v62 = vpop.f32.mrf.mxu2  ;;  %v1130_v63 = vpop.f32.mrf.mxu3 }
 0x112   : > { %v1154_v17 = vpop.f32.mrf.mxu0  ;;  %v1177_v31 = vpop.f32.mrf.mxu1  ;;  %v1135_v59 = vadd.f32 %v1107_v62, %v1012_v43 }
 0x113   : > { %v1183_v16 = vadd.f32 %v1154_v17, %v1083_v12  ;;  %v1184_v18 = vadd.f32 %v1177_v31, %v1084_v13  ;;  %v1136_v17 = vadd.f32 %v1130_v63, %v1035_v48 }
 0x119   : > { %v1204_v0 = vpop.f32.mrf.mxu2  ;;  %v1227_v1 = vpop.f32.mrf.mxu3 }
 0x11a   : > { %v1157_v2 = vpop.f32.mrf.mxu0  ;;  %v1180_v3 = vpop.f32.mrf.mxu1  ;;  %v1233_v19 = vadd.f32 %v1204_v0, %v1133_v14  ;;  %v1234_v20 = vadd.f32 %v1227_v1, %v1134_v15 }
 0x11b   : > { %v1185_v47 = vadd.f32 %v1157_v2, %v1085_v57  ;;  %v1186_v52 = vadd.f32 %v1180_v3, %v1086_v58 }
 0x121   : > { %v1207_v4 = vpop.f32.mrf.mxu2  ;;  %v1230_v5 = vpop.f32.mrf.mxu3 }
 0x122   : > { %v1262_v10 = vpop.f32.mrf.mxu0  ;;  %v1285_v11 = vpop.f32.mrf.mxu1  ;;  %v1235_v53 = vadd.f32 %v1207_v4, %v1135_v59  ;;  %v1236_v54 = vadd.f32 %v1230_v5, %v1136_v17 }
 0x123   : > { %v1291_v28 = vadd.f32 %v1262_v10, %v1183_v16  ;;  %v1292_v34 = vadd.f32 %v1285_v11, %v1184_v18 }
 0x129   : > { %v1312_v23 = vpop.f32.mrf.mxu2  ;;  %v1335_v27 = vpop.f32.mrf.mxu3 }
 0x12a   : > { %v1341_v35 = vadd.f32 %v1312_v23, %v1233_v19  ;;  %v1342_v38 = vadd.f32 %v1335_v27, %v1234_v20  ;;  %v1265_v45 = vpop.f32.mrf.mxu0  ;;  %v1288_v46 = vpop.f32.mrf.mxu1 }
 0x12b   : > { %v1293_v61 = vadd.f32 %v1265_v45, %v1185_v47  ;;  %v1294_v21 = vadd.f32 %v1288_v46, %v1186_v52 }
 0x12c   : > { %v1345_v49 = vmax.f32 %v1291_v28, %v1341_v35  ;;  %v1346_v51 = vmax.f32 %v1292_v34, %v1342_v38 }
 0x12e   : > { %v1349_v31 = vmax.f32 %v849_v32, %v1345_v49  ;;  %v1350_v44 = vmax.f32 %v850_v33, %v1346_v51 }
 0x130   : > { %v1359_v55 = vadd.f32 %v1355_v50, %v1349_v31  ;;  %v1360_v60 = vadd.f32 %v1356_v56, %v1350_v44 }
 0x131   : > { %v1315_v25 = vpop.f32.mrf.mxu2  ;;  %v1338_v32 = vpop.f32.mrf.mxu3 }
 0x132   : > { %v1363_v62 = vmax.f32 %v1359_v55, 0.0  ;;  %v1364_v22 = vmax.f32 %v1360_v60, 0.0  ;;  %v1343_v26 = vadd.f32 %v1315_v25, %v1235_v53  ;;  %v1344_v33 = vadd.f32 %v1338_v32, %v1236_v54 }
 0x134   : > { %1367 = vst [vmem:[%s234_s10] sm:$0xff] %v1363_v62  ;;  %v1347_v63 = vmax.f32 %v1293_v61, %v1343_v26  ;;  %v1348_v0 = vmax.f32 %v1294_v21, %v1344_v33 }
 0x135   : > { %1369 = vst.msk [vmem:[%s234_s10 + $0x8] sm:$0xff] %vm1368_vm1, %v1364_v22 }
 0x136   : > { %v1351_v1 = vmax.f32 %v851_v40, %v1347_v63  ;;  %v1352_v2 = vmax.f32 %v852_v41, %v1348_v0 }
 0x138   : > { %v1361_v3 = vadd.f32 %v1355_v50, %v1351_v1  ;;  %v1362_v4 = vadd.f32 %v1356_v56, %v1352_v2 }
 0x13a   : > { %v1365_v5 = vmax.f32 %v1361_v3, 0.0  ;;  %v1366_v6 = vmax.f32 %v1362_v4, 0.0 }
 0x13c   : > { %1370 = vst [vmem:[%s234_s10 + $0x10] sm:$0x3f] %v1365_v5 }
 0x13d   : > { %1372 = vst.msk [vmem:[%s234_s10 + $0x18] sm:$0x3f] %vm1371_vm2, %v1366_v6 }
 0x13e PF: > { %s15_s15 = sadd.s32 1, %s1611_s15  }
 0x13f   : > { %p12_p7 = scmp.ge.s32.totalorder %s15_s15, 4  }
 0x141   :  { %14 = sbr.rel (!%p12_p7) target bundleno = 1 (0x1), region = 83 }
 0x146   :  { %1394 = vsyncpa [#allocation3], 1 }
 0x147   :  { %1396 = vsyncpa [#allocation3 + $0x1], 1 }

</bundles_post_ra>
